<compile_context>
chip_gen: v6e
topology: v6e:2x2x1
jax: 0.10.0
libtpu: 0.0.40
codegen_flags: <defaults>
</compile_context>

<pallas_src>
import math
import functools

import jax
import jax.numpy as jnp
from jax import lax
from jax.experimental import pallas as pl
from jax.experimental.pallas import tpu as pltpu


D_K = 64
D_V = 64
D_FF = 2048
LN_EPS = 1e-5


def _vmem_limit_bytes():
    """Generation-aware VMEM budget (leave headroom below physical capacity)."""
    try:
        info = pltpu.get_tpu_info()
        cap = getattr(info, "vmem_capacity_bytes", None)
        if cap:
            return min(int(cap) * 3 // 4, 100 * 1024 * 1024)
    except Exception:
        pass
    return 32 * 1024 * 1024  # safe fallback on any generation


# ----------------------------------------------------------------------------
# Fused encoder-layer kernel
# ----------------------------------------------------------------------------

def _encoder_layer_kernel(x_ref, bias_ref, wqkv_ref, wo_ref, w1_ref, w2_ref,
                          out_ref, attn_ref, acc_ref, *, d_k, d_v):
    """One (batch, head) pair per grid step; epilogue at the last head.

    x_ref    : (1, S, D)      f32   layer input (resident across heads)
    bias_ref : (1, 1, S)      f32   additive key-pad bias (0 / -1e9)
    wqkv_ref : (1, D, 3*dk)   bf16  this head's fused Q|K|V weight (scale folded)
    wo_ref   : (1, dv, D)     bf16  this head's slice of the output projection
    w1_ref   : (D, d_ff)      bf16  FFN weight 1 (resident)
    w2_ref   : (d_ff, D)      bf16  FFN weight 2 (resident)
    out_ref  : (1, S, D)      f32   layer output (written at last head)
    attn_ref : (1, 1, S, S)   f32   attention probabilities for this head
    acc_ref  : (S, D)         f32   VMEM accumulator for sum_h ctx_h @ W_O_h
    """
    h = pl.program_id(1)

    @pl.when(h == 0)
    def _():
        acc_ref[...] = jnp.zeros_like(acc_ref)

    x = x_ref[0]                                        # (S, D) f32
    xb = x.astype(jnp.bfloat16)

    # Fused per-head Q|K|V projection (weight already bf16, scale pre-folded).
    qkv = jnp.dot(xb, wqkv_ref[0],
                  preferred_element_type=jnp.float32)   # (S, 3*dk) f32
    q = qkv[:, :d_k]
    k = qkv[:, d_k:2 * d_k]
    v = qkv[:, 2 * d_k:2 * d_k + d_v]

    # Scores: contract last dims directly (no XLU transpose of K).
    s = lax.dot_general(q.astype(jnp.bfloat16), k.astype(jnp.bfloat16),
                        dimension_numbers=(((1,), (1,)), ((), ())),
                        preferred_element_type=jnp.float32)     # (S, S) f32
    s = s + bias_ref[0]                                 # broadcast (1, S) bias

    # Numerically stable softmax (f32); attn is a returned output -> exact div.
    m = jnp.max(s, axis=-1, keepdims=True)
    p = jnp.exp(s - m)
    denom = jnp.sum(p, axis=-1, keepdims=True)
    attn = p / denom
    attn_ref[0, 0] = attn                               # (S, S) f32 writeback

    ctx = jnp.dot(attn.astype(jnp.bfloat16), v.astype(jnp.bfloat16),
                  preferred_element_type=jnp.float32)   # (S, dv) f32

    # Accumulate this head's slice of the output projection.
    acc_ref[...] += jnp.dot(ctx.astype(jnp.bfloat16), wo_ref[0],
                            preferred_element_type=jnp.float32)  # (S, D)

    @pl.when(h == pl.num_programs(1) - 1)
    def _():
        # ---- output projection epilogue: residual + LayerNorm ----
        y = acc_ref[...] + x
        mean = jnp.mean(y, axis=-1, keepdims=True)
        c = y - mean
        var = jnp.mean(c * c, axis=-1, keepdims=True)
        y1 = c * lax.rsqrt(var + LN_EPS)                # LN (gamma=1, beta=0)

        # ---- position-wise FFN + residual + LayerNorm ----
        hdn = jnp.dot(y1.astype(jnp.bfloat16), w1_ref[...],
                      preferred_element_type=jnp.float32)
        hdn = jnp.maximum(hdn, 0.0)
        y2 = jnp.dot(hdn.astype(jnp.bfloat16), w2_ref[...],
                     preferred_element_type=jnp.float32)
        y2 = y2 + y1
        mean2 = jnp.mean(y2, axis=-1, keepdims=True)
        c2 = y2 - mean2
        var2 = jnp.mean(c2 * c2, axis=-1, keepdims=True)
        out_ref[0] = c2 * lax.rsqrt(var2 + LN_EPS)


def encoder_layer(x, bias, lp, *, n_heads):
    """x: (B, S, D) f32, bias: (B, 1, S) f32 additive pad bias.

    Returns (out (B, S, D) f32, attn (B, H, S, S) f32)."""
    B, S, D = x.shape
    dff = lp["W_ff1"].shape[1]
    kernel = functools.partial(_encoder_layer_kernel, d_k=D_K, d_v=D_V)
    out, attn = pl.pallas_call(
        kernel,
        grid=(B, n_heads),
        in_specs=[
            pl.BlockSpec((1, S, D), lambda b, h: (b, 0, 0)),           # x
            pl.BlockSpec((1, 1, S), lambda b, h: (b, 0, 0)),           # bias
            pl.BlockSpec((1, D, 2 * D_K + D_V), lambda b, h: (h, 0, 0)),  # Wqkv
            pl.BlockSpec((1, D_V, D), lambda b, h: (h, 0, 0)),         # W_O
            pl.BlockSpec((D, dff), lambda b, h: (0, 0)),               # W_ff1
            pl.BlockSpec((dff, D), lambda b, h: (0, 0)),               # W_ff2
        ],
        out_specs=[
            pl.BlockSpec((1, S, D), lambda b, h: (b, 0, 0)),           # out
            pl.BlockSpec((1, 1, S, S), lambda b, h: (b, h, 0, 0)),     # attn
        ],
        out_shape=[
            jax.ShapeDtypeStruct((B, S, D), jnp.float32),
            # TODO(synk): emit attn in bf16 for realistic S to halve the HBM
            # writeback; kept f32 to match the reference output dtype.
            jax.ShapeDtypeStruct((B, n_heads, S, S), jnp.float32),
        ],
        scratch_shapes=[pltpu.VMEM((S, D), jnp.float32)],
        compiler_params=pltpu.CompilerParams(
            dimension_semantics=("parallel", "arbitrary"),
            vmem_limit_bytes=_vmem_limit_bytes()),
    )(x, bias, lp["W_qkv_hm"], lp["W_O_hm"], lp["W_ff1"], lp["W_ff2"])
    return out, attn


# ----------------------------------------------------------------------------
# Parameter init / layout preparation (weights pre-cast to bf16, head-major)
# ----------------------------------------------------------------------------

def init_params(key, n_heads, d_model, n_layers, src_vocab_size):
    keys = jax.random.split(key, 1 + 6 * n_layers)
    params = {
        "src_emb": jax.random.normal(keys[0], (src_vocab_size, d_model),
                                     jnp.float32),
        "layers": [],
    }
    init_scale = 0.02
    qk_scale = 1.0 / math.sqrt(D_K)
    for l in range(n_layers):
        k = keys[1 + 6 * l: 1 + 6 * (l + 1)]
        w_q = init_scale * jax.random.normal(k[0], (d_model, n_heads * D_K))
        w_k = init_scale * jax.random.normal(k[1], (d_model, n_heads * D_K))
        w_v = init_scale * jax.random.normal(k[2], (d_model, n_heads * D_V))
        w_o = init_scale * jax.random.normal(k[3], (n_heads * D_V, d_model))
        w_ff1 = init_scale * jax.random.normal(k[4], (d_model, D_FF))
        w_ff2 = init_scale * jax.random.normal(k[5], (D_FF, d_model))

        # Head-major fused QKV weight (H, D, 3*dk); 1/sqrt(d_k) folded into W_q.
        wq_hm = (w_q * qk_scale).reshape(d_model, n_heads, D_K).transpose(1, 0, 2)
        wk_hm = w_k.reshape(d_model, n_heads, D_K).transpose(1, 0, 2)
        wv_hm = w_v.reshape(d_model, n_heads, D_V).transpose(1, 0, 2)
        w_qkv_hm = jnp.concatenate([wq_hm, wk_hm, wv_hm], axis=-1)

        params["layers"].append({
            "W_qkv_hm": w_qkv_hm.astype(jnp.bfloat16),          # (H, D, 3*dk)
            "W_O_hm": w_o.reshape(n_heads, D_V, d_model).astype(jnp.bfloat16),
            "W_ff1": w_ff1.astype(jnp.bfloat16),                # (D, d_ff)
            "W_ff2": w_ff2.astype(jnp.bfloat16),                # (d_ff, D)
        })
    return params


def positional_encoding_table(max_len, d_model):
    position = jnp.arange(max_len, dtype=jnp.float32)[:, None]        # (L,1)
    div_term = jnp.exp(jnp.arange(0, d_model, 2, dtype=jnp.float32)
                       * (-math.log(10000.0) / d_model))              # (D/2,)
    pe_sin = jnp.sin(position * div_term)
    pe_cos = jnp.cos(position * div_term)
    pe = jnp.zeros((max_len, d_model), jnp.float32)
    pe = pe.at[:, 0::2].set(pe_sin)
    pe = pe.at[:, 1::2].set(pe_cos)
    return pe


# ----------------------------------------------------------------------------
# Encoder forward
# ----------------------------------------------------------------------------

def encoder_forward(params, enc_inputs, n_heads, d_model):
    """enc_inputs: (B, S) int32 token ids -> (enc_outputs, [attn per layer])."""
    B, S = enc_inputs.shape

    # Embedding gather + positional encoding (plain-JAX glue).
    enc_outputs = params["src_emb"][enc_inputs]                        # (B,S,D)
    pe = positional_encoding_table(S, d_model)                         # (S,D)
    x = enc_outputs + pe[None, :, :]
    # TODO(synk): PositionalEncoding dropout is identity (eval mode).

    # Additive key-pad bias row (B, 1, S): 0 for real tokens, -1e9 for PAD.
    bias = jnp.where(enc_inputs == 0, jnp.float32(-1e9),
                     jnp.float32(0.0))[:, None, :]

    attns = []
    for lp in params["layers"]:
        x, attn = encoder_layer(x, bias, lp, n_heads=n_heads)
        attns.append(attn)
    return x, attns


# ----------------------------------------------------------------------------
# Main
# ----------------------------------------------------------------------------

if __name__ == "__main__":
    n_heads = 2
    d_model = 64
    n_layers = 2
    src_vocab_size = 16
    batch = 2
    seq = 8

    key = jax.random.PRNGKey(0)
    k_param, k_tok = jax.random.split(key)

    params = init_params(k_param, n_heads, d_model, n_layers, src_vocab_size)

    # Token ids in [1, vocab); force some PAD (=0) tokens to exercise the mask.
    enc_inputs = jax.random.randint(k_tok, (batch, seq), 1, src_vocab_size,
                                    dtype=jnp.int32)
    enc_inputs = enc_inputs.at[:, -2:].set(0)

    fwd = jax.jit(functools.partial(encoder_forward,
                                    n_heads=n_heads, d_model=d_model))
    enc_outputs, enc_self_attns = fwd(params, enc_inputs)

    jax.block_until_ready(enc_outputs)
    for a in enc_self_attns:
        jax.block_until_ready(a)

    assert enc_outputs.shape == (batch, seq, d_model)
    assert len(enc_self_attns) == n_layers
    assert enc_self_attns[0].shape == (batch, n_heads, seq, seq)
    assert bool(jnp.all(jnp.isfinite(enc_outputs)))
    assert bool(jnp.all(jnp.isfinite(enc_self_attns[0])))
    # Softmax rows over non-PAD keys must sum to ~1.
    row_sums = jnp.sum(enc_self_attns[0], axis=-1)
    assert bool(jnp.all(jnp.abs(row_sums - 1.0) < 1e-3))

    print("KERNEL_OK")
</pallas_src>

<mosaic_0001>
module attributes {stable_mosaic.version = 11 : i64} {
  func.func @_encoder_layer_kernel(%arg0: i32, %arg1: i32, %arg2: memref<1x8x64xf32, #tpu.memory_space<vmem>>, %arg3: memref<1x1x8xf32, #tpu.memory_space<vmem>>, %arg4: memref<1x64x192xbf16, #tpu.memory_space<vmem>>, %arg5: memref<1x64x64xbf16, #tpu.memory_space<vmem>>, %arg6: memref<64x2048xbf16, #tpu.memory_space<vmem>>, %arg7: memref<2048x64xbf16, #tpu.memory_space<vmem>>, %arg8: memref<1x8x64xf32, #tpu.memory_space<vmem>>, %arg9: memref<1x1x8x8xf32, #tpu.memory_space<vmem>>, %arg10: memref<8x64xf32, #tpu.memory_space<vmem>>) attributes {dimension_semantics = [#tpu.dimension_semantics<parallel>, #tpu.dimension_semantics<arbitrary>], iteration_bounds = array<i64: 2, 2>, scalar_prefetch = 0 : i64, scratch_operands = 1 : i64, tpu.core_type = #tpu.core_type<tc>, window_params = [{transform_indices = @transform_0, window_bounds = array<i64: 1, 8, 64>}, {transform_indices = @transform_1, window_bounds = array<i64: 1, 1, 8>}, {transform_indices = @transform_2, window_bounds = array<i64: 1, 64, 192>}, {transform_indices = @transform_3, window_bounds = array<i64: 1, 64, 64>}, {pipeline_mode = #tpu.pipeline_mode<synchronous>, transform_indices = @transform_4, window_bounds = array<i64: 64, 2048>}, {pipeline_mode = #tpu.pipeline_mode<synchronous>, transform_indices = @transform_5, window_bounds = array<i64: 2048, 64>}, {transform_indices = @transform_6, window_bounds = array<i64: 1, 8, 64>}, {transform_indices = @transform_7, window_bounds = array<i64: 1, 1, 8, 8>}]} {
    %c0_i32 = arith.constant 0 : i32
    %0 = arith.cmpi eq, %arg1, %c0_i32 : i32
    %1 = arith.extui %0 : i1 to i32
    %c0_i32_0 = arith.constant 0 : i32
    %2 = arith.cmpi ne, %1, %c0_i32_0 : i32
    scf.if %2 {
      %cst_26 = arith.constant 0.000000e+00 : f32
      %44 = vector.broadcast %cst_26 : f32 to vector<8x64xf32>
      %c0_27 = arith.constant 0 : index
      %c0_28 = arith.constant 0 : index
      %45 = vector.load %arg10[%c0_27, %c0_28] : memref<8x64xf32, #tpu.memory_space<vmem>>, vector<8x64xf32>
      tpu.vector_store %arg10[%c0_27, %c0_28], %44 {strides = array<i32>} : memref<8x64xf32, #tpu.memory_space<vmem>>, vector<8x64xf32>,
    } else {
    }
    %c0 = arith.constant 0 : index
    %c0_1 = arith.constant 0 : index
    %c0_2 = arith.constant 0 : index
    %3 = vector.load %arg2[%c0, %c0_1, %c0_2] : memref<1x8x64xf32, #tpu.memory_space<vmem>>, vector<1x8x64xf32>
    %4 = vector.shape_cast %3 : vector<1x8x64xf32> to vector<8x64xf32>
    %5 = arith.truncf %4 : vector<8x64xf32> to vector<8x64xbf16>
    %c0_3 = arith.constant 0 : index
    %c0_4 = arith.constant 0 : index
    %c0_5 = arith.constant 0 : index
    %6 = vector.load %arg4[%c0_3, %c0_4, %c0_5] : memref<1x64x192xbf16, #tpu.memory_space<vmem>>, vector<1x64x192xbf16>
    %7 = vector.shape_cast %6 : vector<1x64x192xbf16> to vector<64x192xbf16>
    %cst = arith.constant dense<0.000000e+00> : vector<8x192xf32>
    %8 = tpu.matmul %5, %7, %cst {dimension_numbers = #tpu.dot_dimension_numbers<[1], [0], [0], [1], [0, 0, 1, 1], [], []>} : vector<8x64xbf16>, vector<64x192xbf16>, vector<8x192xf32> -> vector<8x192xf32>
    %9 = vector.extract_strided_slice %8 {offsets = [0, 0], sizes = [8, 64], strides = [1, 1]} : vector<8x192xf32> to vector<8x64xf32>
    %10 = vector.extract_strided_slice %8 {offsets = [0, 64], sizes = [8, 64], strides = [1, 1]} : vector<8x192xf32> to vector<8x64xf32>
    %11 = vector.extract_strided_slice %8 {offsets = [0, 128], sizes = [8, 64], strides = [1, 1]} : vector<8x192xf32> to vector<8x64xf32>
    %12 = arith.truncf %9 : vector<8x64xf32> to vector<8x64xbf16>
    %13 = arith.truncf %10 : vector<8x64xf32> to vector<8x64xbf16>
    %cst_6 = arith.constant dense<0.000000e+00> : vector<8x8xf32>
    %14 = tpu.matmul %12, %13, %cst_6 {dimension_numbers = #tpu.dot_dimension_numbers<[1], [1], [0], [0], [0, 0, 1, 0], [], []>} : vector<8x64xbf16>, vector<8x64xbf16>, vector<8x8xf32> -> vector<8x8xf32>
    %c0_7 = arith.constant 0 : index
    %c0_8 = arith.constant 0 : index
    %c0_9 = arith.constant 0 : index
    %15 = vector.load %arg3[%c0_7, %c0_8, %c0_9] : memref<1x1x8xf32, #tpu.memory_space<vmem>>, vector<1x1x8xf32>
    %16 = vector.shape_cast %15 : vector<1x1x8xf32> to vector<1x8xf32>
    %17 = vector.broadcast %16 : vector<1x8xf32> to vector<8x8xf32>
    %18 = arith.addf %14, %17 : vector<8x8xf32>
    %cst_10 = arith.constant dense<0xFF800000> : vector<8xf32>
    %19 = vector.multi_reduction <maximumf>, %18, %cst_10 [1] : vector<8x8xf32> to vector<8xf32>
    %20 = vector.shape_cast %19 : vector<8xf32> to vector<8x1xf32>
    %21 = vector.broadcast %20 : vector<8x1xf32> to vector<8x8xf32>
    %22 = arith.subf %18, %21 : vector<8x8xf32>
    %23 = math.exp %22 : vector<8x8xf32>
    %cst_11 = arith.constant dense<0.000000e+00> : vector<8xf32>
    %24 = vector.multi_reduction <add>, %23, %cst_11 [1] : vector<8x8xf32> to vector<8xf32>
    %25 = vector.shape_cast %24 : vector<8xf32> to vector<8x1xf32>
    %26 = vector.broadcast %25 : vector<8x1xf32> to vector<8x8xf32>
    %27 = arith.divf %23, %26 : vector<8x8xf32>
    %c0_12 = arith.constant 0 : index
    %c0_13 = arith.constant 0 : index
    %c0_14 = arith.constant 0 : index
    %c0_15 = arith.constant 0 : index
    %28 = vector.load %arg9[%c0_12, %c0_13, %c0_14, %c0_15] : memref<1x1x8x8xf32, #tpu.memory_space<vmem>>, vector<1x1x8x8xf32>
    %29 = vector.shape_cast %28 : vector<1x1x8x8xf32> to vector<8x8xf32>
    %30 = vector.shape_cast %27 : vector<8x8xf32> to vector<1x1x8x8xf32>
    tpu.vector_store %arg9[%c0_12, %c0_13, %c0_14, %c0_15], %30 {strides = array<i32>} : memref<1x1x8x8xf32, #tpu.memory_space<vmem>>, vector<1x1x8x8xf32>,
    %31 = arith.truncf %27 : vector<8x8xf32> to vector<8x8xbf16>
    %32 = arith.truncf %11 : vector<8x64xf32> to vector<8x64xbf16>
    %cst_16 = arith.constant dense<0.000000e+00> : vector<8x64xf32>
    %33 = tpu.matmul %31, %32, %cst_16 {dimension_numbers = #tpu.dot_dimension_numbers<[1], [0], [0], [1], [0, 0, 1, 1], [], []>} : vector<8x8xbf16>, vector<8x64xbf16>, vector<8x64xf32> -> vector<8x64xf32>
    %c0_17 = arith.constant 0 : index
    %c0_18 = arith.constant 0 : index
    %34 = vector.load %arg10[%c0_17, %c0_18] : memref<8x64xf32, #tpu.memory_space<vmem>>, vector<8x64xf32>
    %35 = arith.truncf %33 : vector<8x64xf32> to vector<8x64xbf16>
    %c0_19 = arith.constant 0 : index
    %c0_20 = arith.constant 0 : index
    %c0_21 = arith.constant 0 : index
    %36 = vector.load %arg5[%c0_19, %c0_20, %c0_21] : memref<1x64x64xbf16, #tpu.memory_space<vmem>>, vector<1x64x64xbf16>
    %37 = vector.shape_cast %36 : vector<1x64x64xbf16> to vector<64x64xbf16>
    %cst_22 = arith.constant dense<0.000000e+00> : vector<8x64xf32>
    %38 = tpu.matmul %35, %37, %cst_22 {dimension_numbers = #tpu.dot_dimension_numbers<[1], [0], [0], [1], [0, 0, 1, 1], [], []>} : vector<8x64xbf16>, vector<64x64xbf16>, vector<8x64xf32> -> vector<8x64xf32>
    %39 = arith.addf %34, %38 : vector<8x64xf32>
    %c0_23 = arith.constant 0 : index
    %c0_24 = arith.constant 0 : index
    %40 = vector.load %arg10[%c0_23, %c0_24] : memref<8x64xf32, #tpu.memory_space<vmem>>, vector<8x64xf32>
    tpu.vector_store %arg10[%c0_23, %c0_24], %39 {strides = array<i32>} : memref<8x64xf32, #tpu.memory_space<vmem>>, vector<8x64xf32>,
    %c1_i32 = arith.constant 1 : i32
    %41 = arith.cmpi eq, %arg1, %c1_i32 : i32
    %42 = arith.extui %41 : i1 to i32
    %c0_i32_25 = arith.constant 0 : i32
    %43 = arith.cmpi ne, %42, %c0_i32_25 : i32
    scf.if %43 {
      %c0_26 = arith.constant 0 : index
      %c0_27 = arith.constant 0 : index
      %44 = vector.load %arg10[%c0_26, %c0_27] : memref<8x64xf32, #tpu.memory_space<vmem>>, vector<8x64xf32>
      %45 = arith.addf %44, %4 : vector<8x64xf32>
      %cst_28 = arith.constant dense<0.000000e+00> : vector<8xf32>
      %46 = vector.multi_reduction <add>, %45, %cst_28 [1] : vector<8x64xf32> to vector<8xf32>
      %47 = vector.shape_cast %46 : vector<8xf32> to vector<8x1xf32>
      %cst_29 = arith.constant 6.400000e+01 : f32
      %48 = vector.broadcast %cst_29 : f32 to vector<8x1xf32>
      %49 = arith.divf %47, %48 : vector<8x1xf32>
      %50 = vector.broadcast %49 : vector<8x1xf32> to vector<8x64xf32>
      %51 = arith.subf %45, %50 : vector<8x64xf32>
      %52 = arith.mulf %51, %51 : vector<8x64xf32>
      %cst_30 = arith.constant dense<0.000000e+00> : vector<8xf32>
      %53 = vector.multi_reduction <add>, %52, %cst_30 [1] : vector<8x64xf32> to vector<8xf32>
      %54 = vector.shape_cast %53 : vector<8xf32> to vector<8x1xf32>
      %cst_31 = arith.constant 6.400000e+01 : f32
      %55 = vector.broadcast %cst_31 : f32 to vector<8x1xf32>
      %56 = arith.divf %54, %55 : vector<8x1xf32>
      %cst_32 = arith.constant 9.99999974E-6 : f32
      %57 = vector.broadcast %cst_32 : f32 to vector<8x1xf32>
      %58 = arith.addf %56, %57 : vector<8x1xf32>
      %59 = math.rsqrt %58 : vector<8x1xf32>
      %60 = vector.broadcast %59 : vector<8x1xf32> to vector<8x64xf32>
      %61 = arith.mulf %51, %60 : vector<8x64xf32>
      %62 = arith.truncf %61 : vector<8x64xf32> to vector<8x64xbf16>
      %c0_33 = arith.constant 0 : index
      %c0_34 = arith.constant 0 : index
      %63 = vector.load %arg6[%c0_33, %c0_34] : memref<64x2048xbf16, #tpu.memory_space<vmem>>, vector<64x2048xbf16>
      %cst_35 = arith.constant dense<0.000000e+00> : vector<8x2048xf32>
      %64 = tpu.matmul %62, %63, %cst_35 {dimension_numbers = #tpu.dot_dimension_numbers<[1], [0], [0], [1], [0, 0, 1, 1], [], []>} : vector<8x64xbf16>, vector<64x2048xbf16>, vector<8x2048xf32> -> vector<8x2048xf32>
      %cst_36 = arith.constant 0.000000e+00 : f32
      %65 = vector.broadcast %cst_36 : f32 to vector<8x2048xf32>
      %66 = arith.maximumf %64, %65 : vector<8x2048xf32>
      %67 = arith.truncf %66 : vector<8x2048xf32> to vector<8x2048xbf16>
      %c0_37 = arith.constant 0 : index
      %c0_38 = arith.constant 0 : index
      %68 = vector.load %arg7[%c0_37, %c0_38] : memref<2048x64xbf16, #tpu.memory_space<vmem>>, vector<2048x64xbf16>
      %cst_39 = arith.constant dense<0.000000e+00> : vector<8x64xf32>
      %69 = tpu.matmul %67, %68, %cst_39 {dimension_numbers = #tpu.dot_dimension_numbers<[1], [0], [0], [1], [0, 0, 1, 1], [], []>} : vector<8x2048xbf16>, vector<2048x64xbf16>, vector<8x64xf32> -> vector<8x64xf32>
      %70 = arith.addf %69, %61 : vector<8x64xf32>
      %cst_40 = arith.constant dense<0.000000e+00> : vector<8xf32>
      %71 = vector.multi_reduction <add>, %70, %cst_40 [1] : vector<8x64xf32> to vector<8xf32>
      %72 = vector.shape_cast %71 : vector<8xf32> to vector<8x1xf32>
      %cst_41 = arith.constant 6.400000e+01 : f32
      %73 = vector.broadcast %cst_41 : f32 to vector<8x1xf32>
      %74 = arith.divf %72, %73 : vector<8x1xf32>
      %75 = vector.broadcast %74 : vector<8x1xf32> to vector<8x64xf32>
      %76 = arith.subf %70, %75 : vector<8x64xf32>
      %77 = arith.mulf %76, %76 : vector<8x64xf32>
      %cst_42 = arith.constant dense<0.000000e+00> : vector<8xf32>
      %78 = vector.multi_reduction <add>, %77, %cst_42 [1] : vector<8x64xf32> to vector<8xf32>
      %79 = vector.shape_cast %78 : vector<8xf32> to vector<8x1xf32>
      %cst_43 = arith.constant 6.400000e+01 : f32
      %80 = vector.broadcast %cst_43 : f32 to vector<8x1xf32>
      %81 = arith.divf %79, %80 : vector<8x1xf32>
      %cst_44 = arith.constant 9.99999974E-6 : f32
      %82 = vector.broadcast %cst_44 : f32 to vector<8x1xf32>
      %83 = arith.addf %81, %82 : vector<8x1xf32>
      %84 = math.rsqrt %83 : vector<8x1xf32>
      %85 = vector.broadcast %84 : vector<8x1xf32> to vector<8x64xf32>
      %86 = arith.mulf %76, %85 : vector<8x64xf32>
      %c0_45 = arith.constant 0 : index
      %c0_46 = arith.constant 0 : index
      %c0_47 = arith.constant 0 : index
      %87 = vector.load %arg8[%c0_45, %c0_46, %c0_47] : memref<1x8x64xf32, #tpu.memory_space<vmem>>, vector<1x8x64xf32>
      %88 = vector.shape_cast %87 : vector<1x8x64xf32> to vector<8x64xf32>
      %89 = vector.shape_cast %86 : vector<8x64xf32> to vector<1x8x64xf32>
      tpu.vector_store %arg8[%c0_45, %c0_46, %c0_47], %89 {strides = array<i32>} : memref<1x8x64xf32, #tpu.memory_space<vmem>>, vector<1x8x64xf32>,
    } else {
    }
    return
  }
  func.func @transform_0(%arg0: i32, %arg1: i32) -> (i32, i32, i32) {
    %c0_i32 = arith.constant 0 : i32
    %c0_i32_0 = arith.constant 0 : i32
    %c0_i32_1 = arith.constant 0 : i32
    return %arg0, %c0_i32, %c0_i32_0 : i32, i32, i32
  }
  func.func @transform_1(%arg0: i32, %arg1: i32) -> (i32, i32, i32) {
    %c0_i32 = arith.constant 0 : i32
    %c0_i32_0 = arith.constant 0 : i32
    %c0_i32_1 = arith.constant 0 : i32
    return %arg0, %c0_i32, %c0_i32_0 : i32, i32, i32
  }
  func.func @transform_2(%arg0: i32, %arg1: i32) -> (i32, i32, i32) {
    %c0_i32 = arith.constant 0 : i32
    %c0_i32_0 = arith.constant 0 : i32
    %c0_i32_1 = arith.constant 0 : i32
    return %arg1, %c0_i32, %c0_i32_0 : i32, i32, i32
  }
  func.func @transform_3(%arg0: i32, %arg1: i32) -> (i32, i32, i32) {
    %c0_i32 = arith.constant 0 : i32
    %c0_i32_0 = arith.constant 0 : i32
    %c0_i32_1 = arith.constant 0 : i32
    return %arg1, %c0_i32, %c0_i32_0 : i32, i32, i32
  }
  func.func @transform_4(%arg0: i32, %arg1: i32) -> (i32, i32) {
    %c0_i32 = arith.constant 0 : i32
    %c0_i32_0 = arith.constant 0 : i32
    %c0_i32_1 = arith.constant 0 : i32
    return %c0_i32, %c0_i32_0 : i32, i32
  }
  func.func @transform_5(%arg0: i32, %arg1: i32) -> (i32, i32) {
    %c0_i32 = arith.constant 0 : i32
    %c0_i32_0 = arith.constant 0 : i32
    %c0_i32_1 = arith.constant 0 : i32
    return %c0_i32, %c0_i32_0 : i32, i32
  }
  func.func @transform_6(%arg0: i32, %arg1: i32) -> (i32, i32, i32) {
    %c0_i32 = arith.constant 0 : i32
    %c0_i32_0 = arith.constant 0 : i32
    %c0_i32_1 = arith.constant 0 : i32
    return %arg0, %c0_i32, %c0_i32_0 : i32, i32, i32
  }
  func.func @transform_7(%arg0: i32, %arg1: i32) -> (i32, i32, i32, i32) {
    %c0_i32 = arith.constant 0 : i32
    %c0_i32_0 = arith.constant 0 : i32
    %c0_i32_1 = arith.constant 0 : i32
    return %arg0, %arg1, %c0_i32, %c0_i32_0 : i32, i32, i32, i32
  }
}

module attributes {stable_mosaic.version = 11 : i64} {
  func.func @_encoder_layer_kernel(%arg0: i32, %arg1: i32, %arg2: memref<1x8x64xf32, #tpu.memory_space<vmem>>, %arg3: memref<1x1x8xf32, #tpu.memory_space<vmem>>, %arg4: memref<1x64x192xbf16, #tpu.memory_space<vmem>>, %arg5: memref<1x64x64xbf16, #tpu.memory_space<vmem>>, %arg6: memref<64x2048xbf16, #tpu.memory_space<vmem>>, %arg7: memref<2048x64xbf16, #tpu.memory_space<vmem>>, %arg8: memref<1x8x64xf32, #tpu.memory_space<vmem>>, %arg9: memref<1x1x8x8xf32, #tpu.memory_space<vmem>>, %arg10: memref<8x64xf32, #tpu.memory_space<vmem>>) attributes {dimension_semantics = [#tpu.dimension_semantics<parallel>, #tpu.dimension_semantics<arbitrary>], iteration_bounds = array<i64: 2, 2>, scalar_prefetch = 0 : i64, scratch_operands = 1 : i64, tpu.core_type = #tpu.core_type<tc>, window_params = [{transform_indices = @transform_0, window_bounds = array<i64: 1, 8, 64>}, {transform_indices = @transform_1, window_bounds = array<i64: 1, 1, 8>}, {transform_indices = @transform_2, window_bounds = array<i64: 1, 64, 192>}, {transform_indices = @transform_3, window_bounds = array<i64: 1, 64, 64>}, {pipeline_mode = #tpu.pipeline_mode<synchronous>, transform_indices = @transform_4, window_bounds = array<i64: 64, 2048>}, {pipeline_mode = #tpu.pipeline_mode<synchronous>, transform_indices = @transform_5, window_bounds = array<i64: 2048, 64>}, {transform_indices = @transform_6, window_bounds = array<i64: 1, 8, 64>}, {transform_indices = @transform_7, window_bounds = array<i64: 1, 1, 8, 8>}]} {
    %c0_i32 = arith.constant 0 : i32
    %0 = arith.cmpi eq, %arg1, %c0_i32 : i32
    %1 = arith.extui %0 : i1 to i32
    %c0_i32_0 = arith.constant 0 : i32
    %2 = arith.cmpi ne, %1, %c0_i32_0 : i32
    scf.if %2 {
      %cst_26 = arith.constant 0.000000e+00 : f32
      %44 = vector.broadcast %cst_26 : f32 to vector<8x64xf32>
      %c0_27 = arith.constant 0 : index
      %c0_28 = arith.constant 0 : index
      %45 = vector.load %arg10[%c0_27, %c0_28] : memref<8x64xf32, #tpu.memory_space<vmem>>, vector<8x64xf32>
      tpu.vector_store %arg10[%c0_27, %c0_28], %44 {strides = array<i32>} : memref<8x64xf32, #tpu.memory_space<vmem>>, vector<8x64xf32>,
    } else {
    }
    %c0 = arith.constant 0 : index
    %c0_1 = arith.constant 0 : index
    %c0_2 = arith.constant 0 : index
    %3 = vector.load %arg2[%c0, %c0_1, %c0_2] : memref<1x8x64xf32, #tpu.memory_space<vmem>>, vector<1x8x64xf32>
    %4 = vector.shape_cast %3 : vector<1x8x64xf32> to vector<8x64xf32>
    %5 = arith.truncf %4 : vector<8x64xf32> to vector<8x64xbf16>
    %c0_3 = arith.constant 0 : index
    %c0_4 = arith.constant 0 : index
    %c0_5 = arith.constant 0 : index
    %6 = vector.load %arg4[%c0_3, %c0_4, %c0_5] : memref<1x64x192xbf16, #tpu.memory_space<vmem>>, vector<1x64x192xbf16>
    %7 = vector.shape_cast %6 : vector<1x64x192xbf16> to vector<64x192xbf16>
    %cst = arith.constant dense<0.000000e+00> : vector<8x192xf32>
    %8 = tpu.matmul %5, %7, %cst {dimension_numbers = #tpu.dot_dimension_numbers<[1], [0], [0], [1], [0, 0, 1, 1], [], []>} : vector<8x64xbf16>, vector<64x192xbf16>, vector<8x192xf32> -> vector<8x192xf32>
    %9 = vector.extract_strided_slice %8 {offsets = [0, 0], sizes = [8, 64], strides = [1, 1]} : vector<8x192xf32> to vector<8x64xf32>
    %10 = vector.extract_strided_slice %8 {offsets = [0, 64], sizes = [8, 64], strides = [1, 1]} : vector<8x192xf32> to vector<8x64xf32>
    %11 = vector.extract_strided_slice %8 {offsets = [0, 128], sizes = [8, 64], strides = [1, 1]} : vector<8x192xf32> to vector<8x64xf32>
    %12 = arith.truncf %9 : vector<8x64xf32> to vector<8x64xbf16>
    %13 = arith.truncf %10 : vector<8x64xf32> to vector<8x64xbf16>
    %cst_6 = arith.constant dense<0.000000e+00> : vector<8x8xf32>
    %14 = tpu.matmul %12, %13, %cst_6 {dimension_numbers = #tpu.dot_dimension_numbers<[1], [1], [0], [0], [0, 0, 1, 0], [], []>} : vector<8x64xbf16>, vector<8x64xbf16>, vector<8x8xf32> -> vector<8x8xf32>
    %c0_7 = arith.constant 0 : index
    %c0_8 = arith.constant 0 : index
    %c0_9 = arith.constant 0 : index
    %15 = vector.load %arg3[%c0_7, %c0_8, %c0_9] : memref<1x1x8xf32, #tpu.memory_space<vmem>>, vector<1x1x8xf32>
    %16 = vector.shape_cast %15 : vector<1x1x8xf32> to vector<1x8xf32>
    %17 = vector.broadcast %16 : vector<1x8xf32> to vector<8x8xf32>
    %18 = arith.addf %14, %17 : vector<8x8xf32>
    %cst_10 = arith.constant dense<0xFF800000> : vector<8xf32>
    %19 = vector.multi_reduction <maximumf>, %18, %cst_10 [1] : vector<8x8xf32> to vector<8xf32>
    %20 = vector.shape_cast %19 : vector<8xf32> to vector<8x1xf32>
    %21 = vector.broadcast %20 : vector<8x1xf32> to vector<8x8xf32>
    %22 = arith.subf %18, %21 : vector<8x8xf32>
    %23 = math.exp %22 : vector<8x8xf32>
    %cst_11 = arith.constant dense<0.000000e+00> : vector<8xf32>
    %24 = vector.multi_reduction <add>, %23, %cst_11 [1] : vector<8x8xf32> to vector<8xf32>
    %25 = vector.shape_cast %24 : vector<8xf32> to vector<8x1xf32>
    %26 = vector.broadcast %25 : vector<8x1xf32> to vector<8x8xf32>
    %27 = arith.divf %23, %26 : vector<8x8xf32>
    %c0_12 = arith.constant 0 : index
    %c0_13 = arith.constant 0 : index
    %c0_14 = arith.constant 0 : index
    %c0_15 = arith.constant 0 : index
    %28 = vector.load %arg9[%c0_12, %c0_13, %c0_14, %c0_15] : memref<1x1x8x8xf32, #tpu.memory_space<vmem>>, vector<1x1x8x8xf32>
    %29 = vector.shape_cast %28 : vector<1x1x8x8xf32> to vector<8x8xf32>
    %30 = vector.shape_cast %27 : vector<8x8xf32> to vector<1x1x8x8xf32>
    tpu.vector_store %arg9[%c0_12, %c0_13, %c0_14, %c0_15], %30 {strides = array<i32>} : memref<1x1x8x8xf32, #tpu.memory_space<vmem>>, vector<1x1x8x8xf32>,
    %31 = arith.truncf %27 : vector<8x8xf32> to vector<8x8xbf16>
    %32 = arith.truncf %11 : vector<8x64xf32> to vector<8x64xbf16>
    %cst_16 = arith.constant dense<0.000000e+00> : vector<8x64xf32>
    %33 = tpu.matmul %31, %32, %cst_16 {dimension_numbers = #tpu.dot_dimension_numbers<[1], [0], [0], [1], [0, 0, 1, 1], [], []>} : vector<8x8xbf16>, vector<8x64xbf16>, vector<8x64xf32> -> vector<8x64xf32>
    %c0_17 = arith.constant 0 : index
    %c0_18 = arith.constant 0 : index
    %34 = vector.load %arg10[%c0_17, %c0_18] : memref<8x64xf32, #tpu.memory_space<vmem>>, vector<8x64xf32>
    %35 = arith.truncf %33 : vector<8x64xf32> to vector<8x64xbf16>
    %c0_19 = arith.constant 0 : index
    %c0_20 = arith.constant 0 : index
    %c0_21 = arith.constant 0 : index
    %36 = vector.load %arg5[%c0_19, %c0_20, %c0_21] : memref<1x64x64xbf16, #tpu.memory_space<vmem>>, vector<1x64x64xbf16>
    %37 = vector.shape_cast %36 : vector<1x64x64xbf16> to vector<64x64xbf16>
    %cst_22 = arith.constant dense<0.000000e+00> : vector<8x64xf32>
    %38 = tpu.matmul %35, %37, %cst_22 {dimension_numbers = #tpu.dot_dimension_numbers<[1], [0], [0], [1], [0, 0, 1, 1], [], []>} : vector<8x64xbf16>, vector<64x64xbf16>, vector<8x64xf32> -> vector<8x64xf32>
    %39 = arith.addf %34, %38 : vector<8x64xf32>
    %c0_23 = arith.constant 0 : index
    %c0_24 = arith.constant 0 : index
    %40 = vector.load %arg10[%c0_23, %c0_24] : memref<8x64xf32, #tpu.memory_space<vmem>>, vector<8x64xf32>
    tpu.vector_store %arg10[%c0_23, %c0_24], %39 {strides = array<i32>} : memref<8x64xf32, #tpu.memory_space<vmem>>, vector<8x64xf32>,
    %c1_i32 = arith.constant 1 : i32
    %41 = arith.cmpi eq, %arg1, %c1_i32 : i32
    %42 = arith.extui %41 : i1 to i32
    %c0_i32_25 = arith.constant 0 : i32
    %43 = arith.cmpi ne, %42, %c0_i32_25 : i32
    scf.if %43 {
      %c0_26 = arith.constant 0 : index
      %c0_27 = arith.constant 0 : index
      %44 = vector.load %arg10[%c0_26, %c0_27] : memref<8x64xf32, #tpu.memory_space<vmem>>, vector<8x64xf32>
      %45 = arith.addf %44, %4 : vector<8x64xf32>
      %cst_28 = arith.constant dense<0.000000e+00> : vector<8xf32>
      %46 = vector.multi_reduction <add>, %45, %cst_28 [1] : vector<8x64xf32> to vector<8xf32>
      %47 = vector.shape_cast %46 : vector<8xf32> to vector<8x1xf32>
      %cst_29 = arith.constant 6.400000e+01 : f32
      %48 = vector.broadcast %cst_29 : f32 to vector<8x1xf32>
      %49 = arith.divf %47, %48 : vector<8x1xf32>
      %50 = vector.broadcast %49 : vector<8x1xf32> to vector<8x64xf32>
      %51 = arith.subf %45, %50 : vector<8x64xf32>
      %52 = arith.mulf %51, %51 : vector<8x64xf32>
      %cst_30 = arith.constant dense<0.000000e+00> : vector<8xf32>
      %53 = vector.multi_reduction <add>, %52, %cst_30 [1] : vector<8x64xf32> to vector<8xf32>
      %54 = vector.shape_cast %53 : vector<8xf32> to vector<8x1xf32>
      %cst_31 = arith.constant 6.400000e+01 : f32
      %55 = vector.broadcast %cst_31 : f32 to vector<8x1xf32>
      %56 = arith.divf %54, %55 : vector<8x1xf32>
      %cst_32 = arith.constant 9.99999974E-6 : f32
      %57 = vector.broadcast %cst_32 : f32 to vector<8x1xf32>
      %58 = arith.addf %56, %57 : vector<8x1xf32>
      %59 = math.rsqrt %58 : vector<8x1xf32>
      %60 = vector.broadcast %59 : vector<8x1xf32> to vector<8x64xf32>
      %61 = arith.mulf %51, %60 : vector<8x64xf32>
      %62 = arith.truncf %61 : vector<8x64xf32> to vector<8x64xbf16>
      %c0_33 = arith.constant 0 : index
      %c0_34 = arith.constant 0 : index
      %63 = vector.load %arg6[%c0_33, %c0_34] : memref<64x2048xbf16, #tpu.memory_space<vmem>>, vector<64x2048xbf16>
      %cst_35 = arith.constant dense<0.000000e+00> : vector<8x2048xf32>
      %64 = tpu.matmul %62, %63, %cst_35 {dimension_numbers = #tpu.dot_dimension_numbers<[1], [0], [0], [1], [0, 0, 1, 1], [], []>} : vector<8x64xbf16>, vector<64x2048xbf16>, vector<8x2048xf32> -> vector<8x2048xf32>
      %cst_36 = arith.constant 0.000000e+00 : f32
      %65 = vector.broadcast %cst_36 : f32 to vector<8x2048xf32>
      %66 = arith.maximumf %64, %65 : vector<8x2048xf32>
      %67 = arith.truncf %66 : vector<8x2048xf32> to vector<8x2048xbf16>
      %c0_37 = arith.constant 0 : index
      %c0_38 = arith.constant 0 : index
      %68 = vector.load %arg7[%c0_37, %c0_38] : memref<2048x64xbf16, #tpu.memory_space<vmem>>, vector<2048x64xbf16>
      %cst_39 = arith.constant dense<0.000000e+00> : vector<8x64xf32>
      %69 = tpu.matmul %67, %68, %cst_39 {dimension_numbers = #tpu.dot_dimension_numbers<[1], [0], [0], [1], [0, 0, 1, 1], [], []>} : vector<8x2048xbf16>, vector<2048x64xbf16>, vector<8x64xf32> -> vector<8x64xf32>
      %70 = arith.addf %69, %61 : vector<8x64xf32>
      %cst_40 = arith.constant dense<0.000000e+00> : vector<8xf32>
      %71 = vector.multi_reduction <add>, %70, %cst_40 [1] : vector<8x64xf32> to vector<8xf32>
      %72 = vector.shape_cast %71 : vector<8xf32> to vector<8x1xf32>
      %cst_41 = arith.constant 6.400000e+01 : f32
      %73 = vector.broadcast %cst_41 : f32 to vector<8x1xf32>
      %74 = arith.divf %72, %73 : vector<8x1xf32>
      %75 = vector.broadcast %74 : vector<8x1xf32> to vector<8x64xf32>
      %76 = arith.subf %70, %75 : vector<8x64xf32>
      %77 = arith.mulf %76, %76 : vector<8x64xf32>
      %cst_42 = arith.constant dense<0.000000e+00> : vector<8xf32>
      %78 = vector.multi_reduction <add>, %77, %cst_42 [1] : vector<8x64xf32> to vector<8xf32>
      %79 = vector.shape_cast %78 : vector<8xf32> to vector<8x1xf32>
      %cst_43 = arith.constant 6.400000e+01 : f32
      %80 = vector.broadcast %cst_43 : f32 to vector<8x1xf32>
      %81 = arith.divf %79, %80 : vector<8x1xf32>
      %cst_44 = arith.constant 9.99999974E-6 : f32
      %82 = vector.broadcast %cst_44 : f32 to vector<8x1xf32>
      %83 = arith.addf %81, %82 : vector<8x1xf32>
      %84 = math.rsqrt %83 : vector<8x1xf32>
      %85 = vector.broadcast %84 : vector<8x1xf32> to vector<8x64xf32>
      %86 = arith.mulf %76, %85 : vector<8x64xf32>
      %c0_45 = arith.constant 0 : index
      %c0_46 = arith.constant 0 : index
      %c0_47 = arith.constant 0 : index
      %87 = vector.load %arg8[%c0_45, %c0_46, %c0_47] : memref<1x8x64xf32, #tpu.memory_space<vmem>>, vector<1x8x64xf32>
      %88 = vector.shape_cast %87 : vector<1x8x64xf32> to vector<8x64xf32>
      %89 = vector.shape_cast %86 : vector<8x64xf32> to vector<1x8x64xf32>
      tpu.vector_store %arg8[%c0_45, %c0_46, %c0_47], %89 {strides = array<i32>} : memref<1x8x64xf32, #tpu.memory_space<vmem>>, vector<1x8x64xf32>,
    } else {
    }
    return
  }
  func.func @transform_0(%arg0: i32, %arg1: i32) -> (i32, i32, i32) {
    %c0_i32 = arith.constant 0 : i32
    %c0_i32_0 = arith.constant 0 : i32
    %c0_i32_1 = arith.constant 0 : i32
    return %arg0, %c0_i32, %c0_i32_0 : i32, i32, i32
  }
  func.func @transform_1(%arg0: i32, %arg1: i32) -> (i32, i32, i32) {
    %c0_i32 = arith.constant 0 : i32
    %c0_i32_0 = arith.constant 0 : i32
    %c0_i32_1 = arith.constant 0 : i32
    return %arg0, %c0_i32, %c0_i32_0 : i32, i32, i32
  }
  func.func @transform_2(%arg0: i32, %arg1: i32) -> (i32, i32, i32) {
    %c0_i32 = arith.constant 0 : i32
    %c0_i32_0 = arith.constant 0 : i32
    %c0_i32_1 = arith.constant 0 : i32
    return %arg1, %c0_i32, %c0_i32_0 : i32, i32, i32
  }
  func.func @transform_3(%arg0: i32, %arg1: i32) -> (i32, i32, i32) {
    %c0_i32 = arith.constant 0 : i32
    %c0_i32_0 = arith.constant 0 : i32
    %c0_i32_1 = arith.constant 0 : i32
    return %arg1, %c0_i32, %c0_i32_0 : i32, i32, i32
  }
  func.func @transform_4(%arg0: i32, %arg1: i32) -> (i32, i32) {
    %c0_i32 = arith.constant 0 : i32
    %c0_i32_0 = arith.constant 0 : i32
    %c0_i32_1 = arith.constant 0 : i32
    return %c0_i32, %c0_i32_0 : i32, i32
  }
  func.func @transform_5(%arg0: i32, %arg1: i32) -> (i32, i32) {
    %c0_i32 = arith.constant 0 : i32
    %c0_i32_0 = arith.constant 0 : i32
    %c0_i32_1 = arith.constant 0 : i32
    return %c0_i32, %c0_i32_0 : i32, i32
  }
  func.func @transform_6(%arg0: i32, %arg1: i32) -> (i32, i32, i32) {
    %c0_i32 = arith.constant 0 : i32
    %c0_i32_0 = arith.constant 0 : i32
    %c0_i32_1 = arith.constant 0 : i32
    return %arg0, %c0_i32, %c0_i32_0 : i32, i32, i32
  }
  func.func @transform_7(%arg0: i32, %arg1: i32) -> (i32, i32, i32, i32) {
    %c0_i32 = arith.constant 0 : i32
    %c0_i32_0 = arith.constant 0 : i32
    %c0_i32_1 = arith.constant 0 : i32
    return %arg0, %arg1, %c0_i32, %c0_i32_0 : i32, i32, i32, i32
  }
}

</mosaic_0001>

<bundles_post_ra>
// kernel: encoder_forward.3
= control target key start
LH: loop header
LB: loop body
LE: loop exit
PB: predicated region body
PF: predicated region fallthrough
CT: control target
= control target key end

     0   :  { %s4753_s0 = inlined_call_operand.vmem [shape: f32[2,8,64], index: 0, kind: input, shape index: {}]   ;;  %s4754_s1 = inlined_call_operand.vmem [shape: f32[2,1,8], index: 1, kind: input, shape index: {}]   ;;  %s4755_s2 = inlined_call_operand.vmem [shape: bf16[2,64,192], index: 2, kind: input, shape index: {}]   ;;  %s4756_s3 = inlined_call_operand.vmem [shape: bf16[2,64,64], index: 3, kind: input, shape index: {}]   ;;  %s4757_s4 = inlined_call_operand.vmem [shape: bf16[64,2048], index: 4, kind: input, shape index: {}]   ;;  %s4758_s5 = inlined_call_operand.vmem [shape: bf16[2048,64], index: 5, kind: input, shape index: {}]   ;;  %s4759_s6 = inlined_call_operand.hbm [shape: f32[2,8,64], index: 6, kind: output, shape index: {0}]   ;;  %s4760_s7 = inlined_call_operand.hbm [shape: f32[2,2,8,8], index: 7, kind: output, shape index: {1}]  }
   0x1   :  { %4780 = sst [smem:[#allocation24_spill]] %s4759_s6 }
   0x2   :  { %4781 = sst [smem:[#allocation25_spill]] %s4760_s7 }
   0x3   :  { %13 = vsyncpa [#allocation4], 0 }
   0x4   :  { %15 = vsyncpa [#allocation4 + $0x1], 0 }
   0x5   :  { %16 = vsyncpa [#allocation6], 0 }
   0x6   :  { %18 = vsyncpa [#allocation6 + $0x1], 0  ;;  %s3853_s24 = smov 0   ;;  %s3855_s25 = smov 0  }
   0x7   :  { %s3857_s26 = smov 0   ;;  %s3859_s27 = smov 0  }
   0x8   :  { %s3861_s28 = smov 0   ;;  %s3863_s29 = smov 0  }
   0x9   :  { %s3865_s30 = smov 0   ;;  %s3867_s8 = smov 0  }
   0xa   :  { %s3869_s9 = smov 0   ;;  %s3871_s10 = smov 0  }
   0xb   :  { %s3873_s11 = smov 0  }
   0xc LB: > { %4782 = sst [smem:[#allocation9_spill]] %s3763_s24  ;;  %s2950_s12 = sadd.s32 4294967295, %s3803_s11   ;;  %s3803_s11 = sphi %s3873_s11, %s24_s11   ;;  %s3799_s10 = sphi %s3871_s10, %s4825_s10   ;;  %s3795_s9 = sphi %s3869_s9, %s4824_s9   ;;  %s3791_s8 = sphi %s3867_s8, %s4823_s8   ;;  %s3787_s30 = sphi %s3865_s30, %s4822_s30   ;;  %s3783_s29 = sphi %s3863_s29, %s4821_s29   ;;  %s3779_s28 = sphi %s3861_s28, %s4827_s28   ;;  %s3775_s27 = sphi %s3859_s27, %s4826_s27   ;;  %s3771_s26 = sphi %s3857_s26, %s4819_s26   ;;  %s3767_s25 = sphi %s3855_s25, %s4818_s25   ;;  %s3763_s24 = sphi %s3853_s24, %s4817_s24  }
   0xd   : > { %4783 = sst [smem:[#allocation10_spill]] %s3767_s25  ;;  %s2951_s13 = sadd.s32 4294967294, %s3803_s11  }
   0xe   : > { %4784 = sst [smem:[#allocation11_spill]] %s3771_s26  ;;  %s33_s14 = sadd.s32 1, %s3795_s9 }
   0xf   : > { %4785 = sst [smem:[#allocation12_spill]] %s3775_s27  ;;  %s36_s15 = sadd.s32 1, %s3799_s10 }
  0x10   : > { %4786 = sst [smem:[#allocation13_spill]] %s3783_s29  ;;  %p34_p0 = scmp.ge.s32.totalorder %s33_s14, 2 }
  0x11   : > { %4787 = sst [smem:[#allocation14_spill]] %s3795_s9  ;;  %s189_s16 = sadd.s32 1, %s3783_s29 }
  0x12   : > { %4788 = sst [smem:[#allocation15_spill]] %s3799_s10  ;;  %p199_p1 = scmp.ne.s32.totalorder %s3783_s29, %s3779_s28 }
  0x13   : > { %4789 = sst [smem:[#allocation16_spill]] %s3803_s11  ;;  %p3915_p2 = scmp.eq.s32.totalorder %s2950_s12, 3 }
  0x14   : > { %s4829_s14 = smov (%p34_p0, %s33_s14), 0  ;;  %s4831_s15 = smov (!%p34_p0, %s36_s15), %s3799_s10 }
  0x15   : > { %4791 = sst [smem:[#allocation17_spill]] %s4829_s14  ;;  %p3924_p3 = por %p3915_p2, %p199_p1 }
  0x16   : > { %p205_p4 = scmp.ne.s32.totalorder %s3779_s28, %s3775_s27  ;;  %p38_p5 = scmp.ge.s32.totalorder %s4831_s15, 2 }
  0x17   : > { %p3930_p6 = scmp.eq.s32.totalorder %s2951_s13, 3  ;;  %s213_s20 = ssub.s32 %s3795_s9, %s4829_s14 }
  0x18   : > { %s217_s21 = sadd.s32 1, %s3771_s26  ;;  %s4833_s15 = smov (%p38_p5, %s4831_s15), 0 }
  0x19   : > { %4794 = sst [smem:[#allocation18_spill]] %s4833_s15  ;;  %p3941_p7 = por %p3930_p6, %p205_p4 }
  0x1a   : > { %p227_p8 = scmp.ne.s32.totalorder %s3771_s26, %s3767_s25  ;;  %s186_s23 = ssub.s32 %s3799_s10, %s4833_s15 }
  0x1b   : > { %s4795_s22 = scalar_select %p3941_p7, 1, 0 }
  0x1c   : > { %p233_p9 = scmp.ne.s32.totalorder %s3767_s25, %s3763_s24  ;;  %p187_p10 = scmp.eq.s32.totalorder %s186_s23, 0 }
  0x1d   : > { %4796 = sst [smem:[#allocation19_spill]] %s4795_s22  ;;  %s214_s12 = sor.u32 %s213_s20, %s186_s23 }
  0x1e   : > { %p215_p11 = scmp.eq.s32.totalorder %s214_s12, 0  ;;  %p3953_p12 = por %p227_p8, %p3915_p2 }
  0x1f   : > { %s3958_s14 = scalar_select %p187_p10, %s3783_s29, %s189_s16  }
  0x20   : > { %s4797_s13 = scalar_select %p3953_p12, 1, 0 }
  0x21   : > { %4799 = sst [smem:[#allocation21_spill]] %s3958_s14  ;;  %p3965_p13 = por %p233_p9, %p3930_p6 }
  0x22   : > { %4798 = sst [smem:[#allocation20_spill]] %s4797_s13  ;;  %p2954_p0 = scmp.ge.s32.totalorder %s3803_s11, 1 }
  0x23   : > { %s3961_s9 = scalar_select %p215_p11, %s3771_s26, %s217_s21  }
  0x24   : > { %s4801_s27 = scalar_select %p3965_p13, 1, 0 }
  0x25   : > { %4800 = sst [smem:[#allocation22_spill]] %s3961_s9  ;;  %p287_p1 = scmp.lt.s32.totalorder %s3803_s11, 5 }
  0x26   : > { %4802 = sst [smem:[#allocation23_spill]] %s4801_s27 }
  0x27   : > { %p288_p4 = pnand %p2954_p0, %p287_p1 }
  0x28   : > { %s4767_s16 = sand.u32 (!%p288_p4), 1, %s3779_s28   ;;  %s4769_s17 = sand.u32 (!%p288_p4), 1, %s3767_s25  }
  0x29   : > { %291 = sbr.rel (%p288_p4) target bundleno = 2460 (0x99c), region = 44  ;;  %s3975_s19 = sshll.u32 (!%p288_p4), %s4767_s16, 3 }
  0x2a   : > { %s3979_s20 = sshll.u32 (!%p288_p4), %s4769_s17, 3  ;;  %p336_p2 = scmp.lt.s32.totalorder (!%p288_p4), %s3791_s8, 1 }
  0x2b   : > { %p343_p5 = scmp.lt.s32.totalorder (!%p288_p4), %s3787_s30, 1  ;;  %s328_s25 = scalar_lea.vmem (!%p288_p4), [#allocation3], %s3975_s19 }
  0x2c   : > { %s335_s6 = scalar_lea.vmem (!%p288_p4), [#allocation5], %s3979_s20  ;;  %p2962_p6 = scmp.ne.s32.totalorder (!%p288_p4), %s3787_s30, 0 }
  0x2e   : > { %s3984_s21 = scalar_select %p336_p2, %s3791_s8, 1 }
  0x2f   : > { %s344_s23 = scalar_select %p343_p5, %s3787_s30, 1 }
  0x30   : > { %s2957_s12 = sshll.u32 %s3984_s21, 3  ;;  %s342_s14 = scalar_lea.vmem %s4754_s1, %s3984_s21 }
  0x31   : > { %s339_s9 = scalar_lea.vmem %s4753_s0, %s2957_s12  ;;  %s3188_s26 = sshll.u32 %s344_s23, 6 }
  0x32   : > { %s347_s24 = scalar_lea.vmem %s4755_s2, %s3188_s26  ;;  %s3189_s22 = sshll.u32 %s344_s23, 5 }
  0x33   : > { %s4001_s13 = scalar_lea.vmem %s4756_s3, %s3189_s22  ;;  %357 = sbr.rel (%p2962_p6) target bundleno = 58 (0x3a), region = 48 }
  0x38   : > { %vm358_vm0 = vcmask 523264   ;;  %v3805_v0 = vmov 0.0  }
  0x39   : > { %359 = vst.msk [vmem:[#allocation2] sm:$0xff] %vm358_vm0, %v3805_v0 }
  0x3a PF: > { %v3505_v1 = vld [vmem:[%s347_s24 + $0x34] ss:$8 sps:$4 sm:$0xff]   ;;  %v3507_v2 = vld [vmem:[%s347_s24 + $0x30] ss:$8 sps:$4 sm:$0xff]   ;;  %v3806_v3 = vmov 0   ;;  %v4006_v10 = vld [vmem:[%s339_s9] sm:$0xff] }
  0x3b   : > { %446 = vmatprep.mubr.bf16.mxu0 %v3806_v3  ;;  %422 = vmatprep.subr.bf16.mxu0 %v3505_v1  ;;  %v3508_v4 = vld [vmem:[%s347_s24 + $0x24] ss:$8 sps:$4 sm:$0xff]   ;;  %v3510_v5 = vld [vmem:[%s347_s24 + $0x20] ss:$8 sps:$4 sm:$0xff]   ;;  %v3511_v6 = vld [vmem:[%s347_s24 + $0x14] ss:$8 sps:$4 sm:$0xff]   ;;  %v361_v11 = vpack.c.bf16 %v4006_v10, %v4006_v10 }
  0x3c   : > { %423 = vmatpush1.bf16.msra.mxu0 %v3507_v2  ;;  %v3513_v7 = vld [vmem:[%s347_s24 + $0x10] ss:$8 sps:$4 sm:$0xff]   ;;  %v3514_v8 = vld [vmem:[%s347_s24 + $0x4] ss:$8 sps:$4 sm:$0xff]   ;;  %v3516_v9 = vld [vmem:[%s347_s24] ss:$8 sps:$4 sm:$0xff]  }
  0x3d   : > { %424 = vmatprep.subr.bf16.mxu0 %v3508_v4  ;;  %vm410_vm1 = vcmask 523264   ;;  %v3807_v12 = vmov 0.0   ;;  %vm3808_vm2 = vmmov 0   ;;  %s3809_s7 = smov 64   ;;  %vm530_vm3 = vcmask 1043456   ;;  %v3517_v34 = vld [vmem:[%s4001_s13 + $0x18] sm:$0xff]  }
  0x3e   : > { %3375 = vmatprep.subr.bf16.mxu1 %v3807_v12  ;;  %3377 = vmatprep.mubr.msk.bf16.mxu1 %vm3808_vm2, %v3807_v12  ;;  %v2972_v22 = vld [vmem:[%s342_s14] ss:$0 sm:$0xff]  ;;  %vm512_vm4 = vcmask 64512   ;;  %v3518_v35 = vld [vmem:[%s4001_s13 + $0x10] sm:$0xff]   ;;  %v3519_v36 = vld [vmem:[%s4001_s13 + $0x8] sm:$0xff]   ;;  %p2980_p8 = scmp.ne.s32.totalorder %s3787_s30, 1 }
  0x3f   : > { %v3520_v41 = vld [vmem:[%s4001_s13] sm:$0xff]  }
  0x40   : > { %425 = vmatpush1.bf16.msra.mxu0 %v3510_v5  ;;  %v574_v47 = vld [vmem:[#allocation2] sm:$0xff] }
  0x41   : > { %426 = vmatprep.subr.bf16.mxu0 %v3511_v6 }
  0x44   : > { %427 = vmatpush1.bf16.msra.mxu0 %v3513_v7 }
  0x45   : > { %428 = vmatprep.subr.bf16.mxu0 %v3514_v8 }
  0x48   : > { %429 = vmatpush1.bf16.msra.mxu0 %v3516_v9 }
  0x49   : > { %3387 = vmatprep.subr.bf16.mxu0 %v3807_v12 }
  0x4b   : > { %2971 = vmatmul.mubr.msk.bf16.vlgmr.msra.gmra.mxu0 %vm410_vm1, %v361_v11 }
  0x4c   : > { %3395 = vmatprep.mubr.msk.bf16.mxu0 %vm3808_vm2, %v3807_v12  ;;  %3388 = vmatpush3.bf16.msra.mxu0 %v3517_v34 }
  0x4d   : > { %3389 = vmatprep.subr.bf16.mxu0 %v3807_v12 }
  0x50   : > { %3390 = vmatpush3.bf16.msra.mxu0 %v3518_v35 }
  0x51   : > { %3391 = vmatprep.subr.bf16.mxu0 %v3807_v12 }
  0x54   : > { %3392 = vmatpush3.bf16.msra.mxu0 %v3519_v36 }
  0x55   : > { %3393 = vmatprep.subr.bf16.mxu0 %v3807_v12 }
  0x58   : > { %3394 = vmatpush3.bf16.msra.mxu0 %v3520_v41 }
 0x10b   : > { %v448_v13 = vpop.f32.mrf.mxu0 }
 0x10c   : > { %v455_v14 = vpack.c.bf16 %v448_v13, %v448_v13 }
 0x10d   : > { %v450_v15 = vpop.f32.mrf.mxu0 }
 0x10e   : > { %464 = vrot.lane.b32.xlu0 %v455_v14, %s3809_s7  ;;  %v526_v20 = vpack.c.bf16 %v450_v15, %v450_v15 }
 0x10f   : > { %v452_v16 = vpop.f32.mrf.mxu0 }
 0x110   : > { %v532_v21 = vsel %vm530_vm3, %v526_v20, 0 }
 0x111   : > { %v453_v17 = vpop.f32.mrf.mxu0 }
 0x180   : > { %v465_v18 = vpop.permute.xlu0 %464 }
 0x181   : > { %v470_v19 = vsel %vm410_vm1, %v465_v18, 0 }
 0x182   : > { %3376 = vmatpush3.bf16.xpose.msra.mxu1 %v470_v19 }
 0x183   : > { %3381 = vmatprep.subr.bf16.mxu1 %v3807_v12 }
 0x189   : > { %3378 = vmatmul.mubr.msk.bf16.vlgmr.msra.gmra.mxu1 %vm410_vm1, %v455_v14 }
 0x18a   : > { %3382 = vmatpush3.bf16.msra.mxu1 %v532_v21  ;;  %3383 = vmatprep.mubr.msk.bf16.mxu1 %vm3808_vm2, %v3807_v12 }
 0x249   : > { %v506_v23 = vpop.f32.mrf.mxu1 }
 0x24a   : > { %v507_v24 = vadd.f32 %v2972_v22, %v506_v23 }
 0x24b   : > { %v3379_v25 = vpop.f32.mrf.mxu1 }
 0x24c   : > { %v513_v26 = vsel %vm512_vm4, %v507_v24, -inf }
 0x24d   : > { %514 = vmax.xlane.f32.xlu0 %v513_v26  ;;  %v509_v27 = vpop.f32.mrf.mxu1 }
 0x24f   : > { %v3380_v28 = vpop.f32.mrf.mxu1 }
 0x2d6   : > { %v515_v29 = vpop.xlane.xlu0 %514 }
 0x2d7   : > { %v516_v30 = vsub.f32 %v507_v24, %v515_v29 }
 0x2d9   : > { %v517_v31 = vmul.f32 1.442695, %v516_v30 }
 0x2db   : > { %3521 = vpow2.f32 %v517_v31 }
 0x2e8   : > { %v3522_v32 = vpop.eup %3521 }
 0x2e9   : > { %v519_v33 = vsel %vm512_vm4, %v3522_v32, 0.0 }
 0x2ea   : > { %520 = vadd.xlane.f32.xlu1 %v519_v33 }
 0x373   : > { %v521_v37 = vpop.xlane.xlu1 %520 }
 0x374   : > { %3523 = vrcp.f32 %v521_v37 }
 0x381   : > { %v3524_v38 = vpop.eup %3523 }
 0x382   : > { %v523_v39 = vmul.f32 %v3524_v38, %v3522_v32 }
 0x384   : > { %524 = vst.msk [vmem:[%s335_s6] sm:$0xff] %vm512_vm4, %v523_v39  ;;  %v525_v40 = vpack.c.bf16 %v523_v39, %v523_v39 }
 0x386   : > { %3384 = vmatmul.mubr.msk.bf16.vlgmr.msra.gmra.mxu1 %vm512_vm4, %v525_v40 }
 0x446   : > { %v568_v42 = vpop.f32.mrf.mxu1 }
 0x447   : > { %v575_v43 = vpack.c.bf16 %v568_v42, %v568_v42 }
 0x448   : > { %v3385_v44 = vpop.f32.mrf.mxu1 }
 0x449   : > { %3396 = vmatmul.mubr.msk.bf16.vlgmr.msra.gmra.mxu0 %vm410_vm1, %v575_v43 }
 0x44a   : > { %v571_v45 = vpop.f32.mrf.mxu1 }
 0x44c   : > { %v3386_v46 = vpop.f32.mrf.mxu1 }
 0x509   : > { %v645_v48 = vpop.f32.mrf.mxu0 }
 0x50a   : > { %v651_v49 = vadd.f32 %v645_v48, %v574_v47 }
 0x50b   : > { %v3397_v50 = vpop.f32.mrf.mxu0  ;;  %656 = sbr.rel (%p2980_p8) target bundleno = 2410 (0x96a), region = 52 }
 0x50c   : > { %652 = vst.msk [vmem:[#allocation2] sm:$0xff] %vm410_vm1, %v651_v49 }
 0x50d   : > { %v648_v51 = vpop.f32.mrf.mxu0 }
 0x50f   : > { %v3398_v52 = vpop.f32.mrf.mxu0 }
 0x510   : > { %v722_v61 = vld [vmem:[%s4757_s4 + $0x180] sm:$0xff]  ;;  %v723_v63 = vld [vmem:[%s4757_s4 + $0x188] sm:$0xff]  ;;  %v724_v29 = vld [vmem:[%s4757_s4 + $0x190] sm:$0xff]  ;;  %v3810_v37 = vmov 0  }
 0x511   : > { %v730_v62 = vld [vmem:[%s4757_s4 + $0x1c0] sm:$0xff]  ;;  %v731_v1 = vld [vmem:[%s4757_s4 + $0x1c8] sm:$0xff]  ;;  %v732_v30 = vld [vmem:[%s4757_s4 + $0x1d0] sm:$0xff]  ;;  %1093 = vmatprep.mubr.bf16.mxu0 %v3810_v37  ;;  %1134 = vmatprep.mubr.bf16.mxu1 %v3810_v37 }
 0x512   : > { %v3030_v0 = vcombine.high %v722_v61, %v730_v62  ;;  %v3032_v2 = vcombine.high %v723_v63, %v731_v1  ;;  %v3029_v3 = vcombine.low %v722_v61, %v730_v62  ;;  %v3031_v4 = vcombine.low %v723_v63, %v731_v1  ;;  %v706_v5 = vld [vmem:[%s4757_s4 + $0x100] sm:$0xff]  ;;  %v707_v7 = vld [vmem:[%s4757_s4 + $0x108] sm:$0xff]  ;;  %v725_v31 = vld [vmem:[%s4757_s4 + $0x198] sm:$0xff] }
 0x513   : > { %v657_v53 = vld [vmem:[#allocation2] sm:$0xff]  ;;  %v715_v9 = vld [vmem:[%s4757_s4 + $0x148] sm:$0xff]  ;;  %v3034_v32 = vcombine.high %v724_v29, %v732_v30  ;;  %v733_v33 = vld [vmem:[%s4757_s4 + $0x1d8] sm:$0xff]  ;;  %v3033_v34 = vcombine.low %v724_v29, %v732_v30 }
 0x514   : > { %v658_v54 = vadd.f32 %v657_v53, %v4006_v10  ;;  %1069 = vmatprep.subr.bf16.mxu0 %v3030_v0  ;;  %1110 = vmatprep.subr.bf16.mxu1 %v3032_v2  ;;  %v714_v6 = vld [vmem:[%s4757_s4 + $0x140] sm:$0xff]  ;;  %v3016_v10 = vcombine.high %v707_v7, %v715_v9  ;;  %v3015_v12 = vcombine.low %v707_v7, %v715_v9  ;;  %v691_v15 = vld [vmem:[%s4757_s4 + $0x88] sm:$0xff]  ;;  %v708_v41 = vld [vmem:[%s4757_s4 + $0x110] sm:$0xff] }
 0x515   : > { %1070 = vmatpush1.bf16.msra.mxu0 %v3029_v3  ;;  %1111 = vmatpush1.bf16.msra.mxu1 %v3031_v4  ;;  %v3014_v8 = vcombine.high %v706_v5, %v714_v6  ;;  %v3013_v11 = vcombine.low %v706_v5, %v714_v6  ;;  %v690_v13 = vld [vmem:[%s4757_s4 + $0x80] sm:$0xff]  ;;  %v699_v17 = vld [vmem:[%s4757_s4 + $0xc8] sm:$0xff]  ;;  %v3035_v35 = vcombine.low %v725_v31, %v733_v33  ;;  %v716_v43 = vld [vmem:[%s4757_s4 + $0x150] sm:$0xff] }
 0x516   : > { %v659_v55 = vsel %vm410_vm1, %v658_v54, 0.0  ;;  %1112 = vmatprep.subr.bf16.mxu1 %v3016_v10  ;;  %v698_v14 = vld [vmem:[%s4757_s4 + $0xc0] sm:$0xff]  ;;  %v3000_v18 = vcombine.high %v691_v15, %v699_v17  ;;  %v2999_v20 = vcombine.low %v691_v15, %v699_v17  ;;  %v675_v23 = vld [vmem:[%s4757_s4 + $0x8] sm:$0xff]  ;;  %v3036_v36 = vcombine.high %v725_v31, %v733_v33  ;;  %v709_v44 = vld [vmem:[%s4757_s4 + $0x118] sm:$0xff] }
 0x517   : > { %660 = vadd.xlane.f32.xlu0 %v659_v55  ;;  %1071 = vmatprep.subr.bf16.mxu0 %v3014_v8  ;;  %v2998_v16 = vcombine.high %v690_v13, %v698_v14  ;;  %v2997_v19 = vcombine.low %v690_v13, %v698_v14  ;;  %v674_v21 = vld [vmem:[%s4757_s4] sm:$0xff]  ;;  %v683_v25 = vld [vmem:[%s4757_s4 + $0x48] sm:$0xff]  ;;  %v717_v45 = vld [vmem:[%s4757_s4 + $0x158] sm:$0xff]  ;;  %v3018_v48 = vcombine.high %v708_v41, %v716_v43 }
 0x518   : > { %v682_v22 = vld [vmem:[%s4757_s4 + $0x40] sm:$0xff]  ;;  %v2984_v26 = vcombine.high %v675_v23, %v683_v25  ;;  %v2983_v28 = vcombine.low %v675_v23, %v683_v25  ;;  %v3020_v49 = vcombine.high %v709_v44, %v717_v45  ;;  %v692_v50 = vld [vmem:[%s4757_s4 + $0x90] sm:$0xff]  ;;  %v693_v52 = vld [vmem:[%s4757_s4 + $0x98] sm:$0xff]  ;;  %v3019_v55 = vcombine.low %v709_v44, %v717_v45 }
 0x519   : > { %1072 = vmatpush1.bf16.msra.mxu0 %v3013_v11  ;;  %1113 = vmatpush1.bf16.msra.mxu1 %v3015_v12  ;;  %v2982_v24 = vcombine.high %v674_v21, %v682_v22  ;;  %v2981_v27 = vcombine.low %v674_v21, %v682_v22  ;;  %v700_v51 = vld [vmem:[%s4757_s4 + $0xd0] sm:$0xff]  ;;  %v701_v53 = vld [vmem:[%s4757_s4 + $0xd8] sm:$0xff]  ;;  %v726_v2 = vld [vmem:[%s4757_s4 + $0x1a0] sm:$0xff] }
 0x51a   : > { %1073 = vmatprep.subr.bf16.mxu0 %v2998_v16  ;;  %1114 = vmatprep.subr.bf16.mxu1 %v3000_v18  ;;  %v685_v61 = vld [vmem:[%s4757_s4 + $0x58] sm:$0xff]  ;;  %v3001_v62 = vcombine.low %v692_v50, %v700_v51  ;;  %v3003_v63 = vcombine.low %v693_v52, %v701_v53  ;;  %v734_v3 = vld [vmem:[%s4757_s4 + $0x1e0] sm:$0xff]  ;;  %v727_v4 = vld [vmem:[%s4757_s4 + $0x1a8] sm:$0xff] }
 0x51b   : > { %v735_v5 = vld [vmem:[%s4757_s4 + $0x1e8] sm:$0xff]  ;;  %v3038_v8 = vcombine.high %v726_v2, %v734_v3  ;;  %v710_v10 = vld [vmem:[%s4757_s4 + $0x120] sm:$0xff]  ;;  %v3037_v14 = vcombine.low %v726_v2, %v734_v3  ;;  %v720_v44 = vld [vmem:[%s4757_s4 + $0x170] sm:$0xff] }
 0x51c   : > { %v3040_v9 = vcombine.high %v727_v4, %v735_v5  ;;  %v718_v11 = vld [vmem:[%s4757_s4 + $0x160] sm:$0xff]  ;;  %v711_v12 = vld [vmem:[%s4757_s4 + $0x128] sm:$0xff]  ;;  %v3039_v15 = vcombine.low %v727_v4, %v735_v5  ;;  %v713_v45 = vld [vmem:[%s4757_s4 + $0x138] sm:$0xff] }
 0x51d   : > { %1074 = vmatpush1.bf16.msra.mxu0 %v2997_v19  ;;  %1115 = vmatpush1.bf16.msra.mxu1 %v2999_v20  ;;  %v719_v13 = vld [vmem:[%s4757_s4 + $0x168] sm:$0xff]  ;;  %v3022_v16 = vcombine.high %v710_v10, %v718_v11  ;;  %v694_v18 = vld [vmem:[%s4757_s4 + $0xa0] sm:$0xff]  ;;  %v3021_v22 = vcombine.low %v710_v10, %v718_v11  ;;  %v3529_v10 = vld [vmem:[%s4758_s5 + $0x70] sm:$0xff]  }
 0x51e   : > { %1075 = vmatprep.subr.bf16.mxu0 %v2982_v24  ;;  %1116 = vmatprep.subr.bf16.mxu1 %v2984_v26  ;;  %v3024_v17 = vcombine.high %v711_v12, %v719_v13  ;;  %v702_v19 = vld [vmem:[%s4757_s4 + $0xe0] sm:$0xff]  ;;  %v695_v20 = vld [vmem:[%s4757_s4 + $0xa8] sm:$0xff]  ;;  %v3023_v23 = vcombine.low %v711_v12, %v719_v13  ;;  %v3530_v11 = vld [vmem:[%s4758_s5 + $0xf0] sm:$0xff]  }
 0x51f   : > { %v703_v21 = vld [vmem:[%s4757_s4 + $0xe8] sm:$0xff]  ;;  %v3006_v24 = vcombine.high %v694_v18, %v702_v19  ;;  %v678_v26 = vld [vmem:[%s4757_s4 + $0x20] sm:$0xff]  ;;  %v3005_v30 = vcombine.low %v694_v18, %v702_v19  ;;  %v3531_v12 = vld [vmem:[%s4758_s5 + $0x30] sm:$0xff]  }
 0x520   : > { %v3008_v25 = vcombine.high %v695_v20, %v703_v21  ;;  %v687_v29 = vld [vmem:[%s4757_s4 + $0x68] sm:$0xff]  ;;  %v3007_v31 = vcombine.low %v695_v20, %v703_v21  ;;  %v3532_v13 = vld [vmem:[%s4758_s5 + $0xb0] sm:$0xff]   ;;  %v3538_v18 = vld [vmem:[%s4758_s5 + $0xe0] sm:$0xff]  }
 0x521   : > { %1076 = vmatpush1.bf16.msra.mxu0 %v2981_v27  ;;  %1117 = vmatpush1.bf16.msra.mxu1 %v2983_v28  ;;  %v686_v27 = vld [vmem:[%s4757_s4 + $0x60] sm:$0xff]  ;;  %v679_v28 = vld [vmem:[%s4757_s4 + $0x28] sm:$0xff]  ;;  %v3541_v21 = vld [vmem:[%s4758_s5 + $0x58] sm:$0xff]  }
 0x522   : > { %1151 = vmatprep.subr.bf16.mxu0 %v3034_v32  ;;  %1192 = vmatprep.subr.bf16.mxu1 %v3036_v36  ;;  %v2990_v32 = vcombine.high %v678_v26, %v686_v27  ;;  %v2992_v33 = vcombine.high %v679_v28, %v687_v29  ;;  %v729_v36 = vld [vmem:[%s4757_s4 + $0x1b8] sm:$0xff]  ;;  %v3539_v19 = vld [vmem:[%s4758_s5 + $0x20] sm:$0xff]  }
 0x523   : > { %v3540_v20 = vld [vmem:[%s4758_s5 + $0xa0] sm:$0xff]  }
 0x5a0   : > { %v661_v56 = vpop.xlane.xlu0 %660 }
 0x5a1   : > { %v663_v57 = vmul.f32 0.015625, %v661_v56  ;;  %v3002_v56 = vcombine.high %v692_v50, %v700_v51 }
 0x5a3   : > { %v4036_v58 = vsub.f32 %v658_v54, %v663_v57  ;;  %v3017_v54 = vcombine.low %v708_v41, %v716_v43  ;;  %v3004_v57 = vcombine.high %v693_v52, %v701_v53  ;;  %v712_v43 = vld [vmem:[%s4757_s4 + $0x130] sm:$0xff] }
 0x5a4   : > { %v3026_v51 = vcombine.high %v712_v43, %v720_v44  ;;  %v696_v53 = vld [vmem:[%s4757_s4 + $0xb0] sm:$0xff] }
 0x5a5   : > { %v665_v59 = vmul.f32 %v4036_v58, %v4036_v58 }
 0x5a7   : > { %v666_v60 = vsel %vm410_vm1, %v665_v59, 0.0  ;;  %v684_v59 = vld [vmem:[%s4757_s4 + $0x50] sm:$0xff] }
 0x5a8   : > { %667 = vadd.xlane.f32.xlu0 %v666_v60  ;;  %v677_v60 = vld [vmem:[%s4757_s4 + $0x18] sm:$0xff] }
 0x5a9   : > { %v2988_v1 = vcombine.high %v677_v60, %v685_v61  ;;  %v2987_v7 = vcombine.low %v677_v60, %v685_v61  ;;  %v680_v61 = vld [vmem:[%s4757_s4 + $0x30] sm:$0xff] }
 0x631   : > { %v668_v38 = vpop.xlane.xlu0 %667 }
 0x632   : > { %v669_v39 = vmul.f32 0.015625, %v668_v38  ;;  %v737_v38 = vld [vmem:[%s4757_s4 + $0x1f8] sm:$0xff] }
 0x633   : > { %v3043_v50 = vcombine.low %v729_v36, %v737_v38 }
 0x634   : > { %v670_v40 = vadd.f32 1e-05, %v669_v39  ;;  %v2989_v39 = vcombine.low %v678_v26, %v686_v27  ;;  %v3546_v26 = vld [vmem:[%s4758_s5 + $0xd0] sm:$0xff]  }
 0x635   : > { %v3547_v27 = vld [vmem:[%s4758_s5 + $0x10] sm:$0xff]  }
 0x636   : > { %3653 = vrsqrt.f32 %v670_v40  ;;  %v2991_v40 = vcombine.low %v679_v28, %v687_v29  ;;  %v3548_v28 = vld [vmem:[%s4758_s5 + $0x90] sm:$0xff]   ;;  %v3549_v29 = vld [vmem:[%s4758_s5 + $0x48] sm:$0xff]  }
 0x643   : > { %v3654_v42 = vpop.eup %3653 }
 0x644   : > { %v4116_v46 = vmul.f32 %v3654_v42, %v4036_v58  ;;  %v676_v58 = vld [vmem:[%s4757_s4 + $0x10] sm:$0xff]  ;;  %v3044_v42 = vcombine.high %v729_v36, %v737_v38  ;;  %v3556_v36 = vld [vmem:[%s4758_s5 + $0x80] sm:$0xff]   ;;  %v3557_v38 = vld [vmem:[%s4758_s5 + $0x178] sm:$0xff]  }
 0x645   : > { %v2986_v0 = vcombine.high %v676_v58, %v684_v59  ;;  %v2985_v6 = vcombine.low %v676_v58, %v684_v59 }
 0x646   : > { %v4120_v47 = vpack.c.bf16 %v4116_v46, %v4116_v46 }
 0x648   : > { %3045 = vmatmul.mubr.msk.bf16.vlgmr.msra.gmra.mxu0 %vm410_vm1, %v4120_v47  ;;  %3046 = vmatmul.mubr.msk.bf16.vlgmr.msra.gmra.mxu1 %vm410_vm1, %v4120_v47 }
 0x649   : > { %1152 = vmatpush1.bf16.msra.mxu0 %v3033_v34  ;;  %1193 = vmatpush1.bf16.msra.mxu1 %v3035_v35  ;;  %v728_v34 = vld [vmem:[%s4757_s4 + $0x1b0] sm:$0xff] }
 0x64a   : > { %1153 = vmatprep.subr.bf16.mxu0 %v3018_v48  ;;  %1194 = vmatprep.subr.bf16.mxu1 %v3020_v49  ;;  %v736_v35 = vld [vmem:[%s4757_s4 + $0x1f0] sm:$0xff]  ;;  %v721_v48 = vld [vmem:[%s4757_s4 + $0x178] sm:$0xff] }
 0x64b   : > { %1175 = vmatprep.mubr.bf16.mxu0 %v3810_v37  ;;  %1216 = vmatprep.mubr.bf16.mxu1 %v3810_v37  ;;  %v3042_v41 = vcombine.high %v728_v34, %v736_v35  ;;  %v3041_v49 = vcombine.low %v728_v34, %v736_v35  ;;  %v3028_v52 = vcombine.high %v713_v45, %v721_v48  ;;  %v3554_v34 = vld [vmem:[%s4758_s5 + $0xc0] sm:$0xff]  }
 0x64c   : > { %v3027_v58 = vcombine.low %v713_v45, %v721_v48  ;;  %v3555_v35 = vld [vmem:[%s4758_s5] sm:$0xff]  }
 0x64d   : > { %1154 = vmatpush1.bf16.msra.mxu0 %v3017_v54  ;;  %1195 = vmatpush1.bf16.msra.mxu1 %v3019_v55  ;;  %v704_v54 = vld [vmem:[%s4757_s4 + $0xf0] sm:$0xff]  ;;  %v697_v55 = vld [vmem:[%s4757_s4 + $0xb8] sm:$0xff] }
 0x64e   : > { %1155 = vmatprep.subr.bf16.mxu0 %v3002_v56  ;;  %1196 = vmatprep.subr.bf16.mxu1 %v3004_v57  ;;  %v705_v56 = vld [vmem:[%s4757_s4 + $0xf8] sm:$0xff]  ;;  %v3025_v57 = vcombine.low %v712_v43, %v720_v44  ;;  %v3010_v59 = vcombine.high %v696_v53, %v704_v54 }
 0x64f   : > { %v3012_v60 = vcombine.high %v697_v55, %v705_v56  ;;  %v3011_v2 = vcombine.low %v697_v55, %v705_v56  ;;  %v3560_v55 = vld [vmem:[%s4758_s5 + $0x1b8] sm:$0xff]  }
 0x651   : > { %1156 = vmatpush1.bf16.msra.mxu0 %v3001_v62  ;;  %1197 = vmatpush1.bf16.msra.mxu1 %v3003_v63  ;;  %v688_v62 = vld [vmem:[%s4757_s4 + $0x70] sm:$0xff]  ;;  %v681_v63 = vld [vmem:[%s4757_s4 + $0x38] sm:$0xff] }
 0x652   : > { %1157 = vmatprep.subr.bf16.mxu0 %v2986_v0  ;;  %1198 = vmatprep.subr.bf16.mxu1 %v2988_v1  ;;  %v689_v0 = vld [vmem:[%s4757_s4 + $0x78] sm:$0xff]  ;;  %v3009_v1 = vcombine.low %v696_v53, %v704_v54  ;;  %v2994_v3 = vcombine.high %v680_v61, %v688_v62  ;;  %v2993_v5 = vcombine.low %v680_v61, %v688_v62  ;;  %v3562_v61 = vld [vmem:[%s4758_s5 + $0x1f0] sm:$0xff]  }
 0x653   : > { %v2996_v4 = vcombine.high %v681_v63, %v689_v0  ;;  %v3559_v54 = vld [vmem:[%s4758_s5 + $0x138] sm:$0xff]   ;;  %v3563_v62 = vld [vmem:[%s4758_s5 + $0x130] sm:$0xff]  }
 0x655   : > { %1158 = vmatpush1.bf16.msra.mxu0 %v2985_v6  ;;  %1199 = vmatpush1.bf16.msra.mxu1 %v2987_v7  ;;  %v2995_v6 = vcombine.low %v681_v63, %v689_v0  ;;  %v3525_v7 = vld [vmem:[%s4758_s5 + $0x78] sm:$0xff]   ;;  %v3564_v63 = vld [vmem:[%s4758_s5 + $0x1b0] sm:$0xff]   ;;  %v3565_v0 = vld [vmem:[%s4758_s5 + $0x168] sm:$0xff]  }
 0x656   : > { %1233 = vmatprep.subr.bf16.mxu0 %v3038_v8  ;;  %1274 = vmatprep.subr.bf16.mxu1 %v3040_v9  ;;  %v3527_v8 = vld [vmem:[%s4758_s5 + $0x38] sm:$0xff]  }
 0x657   : > { %v3528_v9 = vld [vmem:[%s4758_s5 + $0xb8] sm:$0xff]  }
 0x658   : > { %3047 = vmatmul.mubr.msk.bf16.vlgmr.msra.gmra.mxu0 %vm410_vm1, %v4120_v47  ;;  %3048 = vmatmul.mubr.msk.bf16.vlgmr.msra.gmra.mxu1 %vm410_vm1, %v4120_v47 }
 0x659   : > { %1234 = vmatpush1.bf16.msra.mxu0 %v3037_v14  ;;  %1275 = vmatpush1.bf16.msra.mxu1 %v3039_v15  ;;  %v3533_v14 = vld [vmem:[%s4758_s5 + $0x68] sm:$0xff]  }
 0x65a   : > { %1235 = vmatprep.subr.bf16.mxu0 %v3022_v16  ;;  %1276 = vmatprep.subr.bf16.mxu1 %v3024_v17  ;;  %v3535_v15 = vld [vmem:[%s4758_s5 + $0x28] sm:$0xff]   ;;  %v3537_v17 = vld [vmem:[%s4758_s5 + $0x60] sm:$0xff]  }
 0x65b   : > { %1257 = vmatprep.mubr.bf16.mxu0 %v3810_v37  ;;  %1298 = vmatprep.mubr.bf16.mxu1 %v3810_v37  ;;  %v3536_v16 = vld [vmem:[%s4758_s5 + $0xa8] sm:$0xff]  }
 0x65d   : > { %1236 = vmatpush1.bf16.msra.mxu0 %v3021_v22  ;;  %1277 = vmatpush1.bf16.msra.mxu1 %v3023_v23  ;;  %v3542_v22 = vld [vmem:[%s4758_s5 + $0xd8] sm:$0xff]  }
 0x65e   : > { %1237 = vmatprep.subr.bf16.mxu0 %v3006_v24  ;;  %1278 = vmatprep.subr.bf16.mxu1 %v3008_v25  ;;  %v3543_v23 = vld [vmem:[%s4758_s5 + $0x18] sm:$0xff]   ;;  %v3545_v25 = vld [vmem:[%s4758_s5 + $0x50] sm:$0xff]  }
 0x65f   : > { %v3544_v24 = vld [vmem:[%s4758_s5 + $0x98] sm:$0xff]  }
 0x661   : > { %1238 = vmatpush1.bf16.msra.mxu0 %v3005_v30  ;;  %1279 = vmatpush1.bf16.msra.mxu1 %v3007_v31  ;;  %v3550_v30 = vld [vmem:[%s4758_s5 + $0xc8] sm:$0xff]  }
 0x662   : > { %1239 = vmatprep.subr.bf16.mxu0 %v2990_v32  ;;  %1280 = vmatprep.subr.bf16.mxu1 %v2992_v33  ;;  %v3551_v31 = vld [vmem:[%s4758_s5 + $0x8] sm:$0xff]   ;;  %v3553_v33 = vld [vmem:[%s4758_s5 + $0x40] sm:$0xff]  }
 0x663   : > { %v3552_v32 = vld [vmem:[%s4758_s5 + $0x88] sm:$0xff]  }
 0x665   : > { %1240 = vmatpush1.bf16.msra.mxu0 %v2989_v39  ;;  %1281 = vmatpush1.bf16.msra.mxu1 %v2991_v40  ;;  %v3558_v39 = vld [vmem:[%s4758_s5 + $0x1f8] sm:$0xff]  }
 0x666   : > { %1315 = vmatprep.subr.bf16.mxu0 %v3042_v41  ;;  %1356 = vmatprep.subr.bf16.mxu1 %v3044_v42 }
 0x668   : > { %3049 = vmatmul.mubr.msk.bf16.vlgmr.msra.gmra.mxu0 %vm410_vm1, %v4120_v47  ;;  %3050 = vmatmul.mubr.msk.bf16.vlgmr.msra.gmra.mxu1 %vm410_vm1, %v4120_v47 }
 0x669   : > { %1316 = vmatpush1.bf16.msra.mxu0 %v3041_v49  ;;  %1357 = vmatpush1.bf16.msra.mxu1 %v3043_v50 }
 0x66a   : > { %1317 = vmatprep.subr.bf16.mxu0 %v3026_v51  ;;  %1358 = vmatprep.subr.bf16.mxu1 %v3028_v52 }
 0x66b   : > { %1339 = vmatprep.mubr.bf16.mxu0 %v3810_v37  ;;  %1380 = vmatprep.mubr.bf16.mxu1 %v3810_v37  ;;  %v3526_v37 = vld [vmem:[%s4758_s5 + $0xf8] sm:$0xff]  }
 0x66d   : > { %1318 = vmatpush1.bf16.msra.mxu0 %v3025_v57  ;;  %1359 = vmatpush1.bf16.msra.mxu1 %v3027_v58 }
 0x66e   : > { %1319 = vmatprep.subr.bf16.mxu0 %v3010_v59  ;;  %1360 = vmatprep.subr.bf16.mxu1 %v3012_v60  ;;  %v3561_v60 = vld [vmem:[%s4758_s5 + $0x170] sm:$0xff]  }
 0x671   : > { %1320 = vmatpush1.bf16.msra.mxu0 %v3009_v1  ;;  %1361 = vmatpush1.bf16.msra.mxu1 %v3011_v2  ;;  %v3566_v1 = vld [vmem:[%s4758_s5 + $0x1e8] sm:$0xff]  }
 0x672   : > { %1321 = vmatprep.subr.bf16.mxu0 %v2994_v3  ;;  %1362 = vmatprep.subr.bf16.mxu1 %v2996_v4  ;;  %v3567_v2 = vld [vmem:[%s4758_s5 + $0x128] sm:$0xff]   ;;  %v3569_v4 = vld [vmem:[%s4758_s5 + $0x160] sm:$0xff]  }
 0x673   : > { %v3568_v3 = vld [vmem:[%s4758_s5 + $0x1a8] sm:$0xff]  }
 0x675   : > { %1322 = vmatpush1.bf16.msra.mxu0 %v2993_v5  ;;  %1363 = vmatpush1.bf16.msra.mxu1 %v2995_v6  ;;  %v3570_v5 = vld [vmem:[%s4758_s5 + $0x1e0] sm:$0xff]  }
 0x676   : > { %3199 = vmatprep.subr.bf16.mxu0 %v3525_v7  ;;  %3221 = vmatprep.subr.bf16.mxu1 %v3526_v37  ;;  %v3571_v37 = vld [vmem:[%s4758_s5 + $0x120] sm:$0xff]  }
 0x678   : > { %3051 = vmatmul.mubr.msk.bf16.vlgmr.msra.gmra.mxu0 %vm410_vm1, %v4120_v47  ;;  %3052 = vmatmul.mubr.msk.bf16.vlgmr.msra.gmra.mxu1 %vm410_vm1, %v4120_v47  ;;  %v3534_v47 = vld [vmem:[%s4758_s5 + $0xe8] sm:$0xff]  }
 0x679   : > { %3200 = vmatpush3.bf16.msra.mxu0 %v3527_v8  ;;  %3222 = vmatpush3.bf16.msra.mxu1 %v3528_v9  ;;  %v3572_v8 = vld [vmem:[%s4758_s5 + $0x1a0] sm:$0xff]  }
 0x67a   : > { %3201 = vmatprep.subr.bf16.mxu0 %v3529_v10  ;;  %3223 = vmatprep.subr.bf16.mxu1 %v3530_v11  ;;  %v3573_v11 = vld [vmem:[%s4758_s5 + $0x158] sm:$0xff]  }
 0x67d   : > { %3202 = vmatpush3.bf16.msra.mxu0 %v3531_v12  ;;  %3224 = vmatpush3.bf16.msra.mxu1 %v3532_v13  ;;  %v3574_v12 = vld [vmem:[%s4758_s5 + $0x1d8] sm:$0xff]  }
 0x67e   : > { %3203 = vmatprep.subr.bf16.mxu0 %v3533_v14  ;;  %3225 = vmatprep.subr.bf16.mxu1 %v3534_v47 }
 0x681   : > { %3204 = vmatpush3.bf16.msra.mxu0 %v3535_v15  ;;  %3226 = vmatpush3.bf16.msra.mxu1 %v3536_v16 }
 0x682   : > { %3205 = vmatprep.subr.bf16.mxu0 %v3537_v17  ;;  %3227 = vmatprep.subr.bf16.mxu1 %v3538_v18  ;;  %v3575_v18 = vld [vmem:[%s4758_s5 + $0x118] sm:$0xff]  }
 0x685   : > { %3206 = vmatpush3.bf16.msra.mxu0 %v3539_v19  ;;  %3228 = vmatpush3.bf16.msra.mxu1 %v3540_v20  ;;  %v3576_v19 = vld [vmem:[%s4758_s5 + $0x198] sm:$0xff]  }
 0x686   : > { %3207 = vmatprep.subr.bf16.mxu0 %v3541_v21  ;;  %3229 = vmatprep.subr.bf16.mxu1 %v3542_v22  ;;  %v3577_v22 = vld [vmem:[%s4758_s5 + $0x150] sm:$0xff]  }
 0x689   : > { %3208 = vmatpush3.bf16.msra.mxu0 %v3543_v23  ;;  %3230 = vmatpush3.bf16.msra.mxu1 %v3544_v24  ;;  %v3578_v23 = vld [vmem:[%s4758_s5 + $0x1d0] sm:$0xff]  }
 0x68a   : > { %3209 = vmatprep.subr.bf16.mxu0 %v3545_v25  ;;  %3231 = vmatprep.subr.bf16.mxu1 %v3546_v26  ;;  %v3579_v24 = vld [vmem:[%s4758_s5 + $0x110] sm:$0xff]   ;;  %v3581_v26 = vld [vmem:[%s4758_s5 + $0x148] sm:$0xff]  }
 0x68b   : > { %v3580_v25 = vld [vmem:[%s4758_s5 + $0x190] sm:$0xff]  }
 0x68d   : > { %3210 = vmatpush3.bf16.msra.mxu0 %v3547_v27  ;;  %3232 = vmatpush3.bf16.msra.mxu1 %v3548_v28  ;;  %v3582_v27 = vld [vmem:[%s4758_s5 + $0x1c8] sm:$0xff]  }
 0x68e   : > { %3211 = vmatprep.subr.bf16.mxu0 %v3549_v29  ;;  %3233 = vmatprep.subr.bf16.mxu1 %v3550_v30  ;;  %v3583_v28 = vld [vmem:[%s4758_s5 + $0x108] sm:$0xff]   ;;  %v3585_v30 = vld [vmem:[%s4758_s5 + $0x140] sm:$0xff]  }
 0x68f   : > { %v3584_v29 = vld [vmem:[%s4758_s5 + $0x188] sm:$0xff]  }
 0x691   : > { %3212 = vmatpush3.bf16.msra.mxu0 %v3551_v31  ;;  %3234 = vmatpush3.bf16.msra.mxu1 %v3552_v32  ;;  %v3586_v31 = vld [vmem:[%s4758_s5 + $0x1c0] sm:$0xff]  }
 0x692   : > { %3213 = vmatprep.subr.bf16.mxu0 %v3553_v33  ;;  %3235 = vmatprep.subr.bf16.mxu1 %v3554_v34  ;;  %v3587_v34 = vld [vmem:[%s4758_s5 + $0x100] sm:$0xff]  }
 0x695   : > { %3214 = vmatpush3.bf16.msra.mxu0 %v3555_v35  ;;  %3236 = vmatpush3.bf16.msra.mxu1 %v3556_v36  ;;  %v3588_v35 = vld [vmem:[%s4758_s5 + $0x180] sm:$0xff]  }
 0x696   : > { %3243 = vmatprep.subr.bf16.mxu0 %v3557_v38  ;;  %3265 = vmatprep.subr.bf16.mxu1 %v3558_v39 }
 0x708   : > { %v1095_v40 = vpop.f32.mrf.mxu0  ;;  %v1136_v41 = vpop.f32.mrf.mxu1 }
 0x709   : > { %v1389_v42 = vmax.f32 %v1095_v40, 0.0  ;;  %v1391_v43 = vmax.f32 %v1136_v41, 0.0  ;;  %v3589_v41 = vld [vmem:[%s4758_s5 + $0x278] sm:$0xff]  }
 0x70a   : > { %v1097_v44 = vpop.f32.mrf.mxu0  ;;  %v1138_v45 = vpop.f32.mrf.mxu1 }
 0x70b   : > { %v1390_v48 = vmax.f32 %v1097_v44, 0.0  ;;  %v1392_v49 = vmax.f32 %v1138_v45, 0.0  ;;  %v1405_v56 = vpack.c.bf16 %v1389_v42, %v1389_v42  ;;  %v1407_v57 = vpack.c.bf16 %v1391_v43, %v1391_v43  ;;  %v3590_v42 = vld [vmem:[%s4758_s5 + $0x2f8] sm:$0xff]  }
 0x70c   : > { %v1099_v50 = vpop.f32.mrf.mxu0  ;;  %v1140_v51 = vpop.f32.mrf.mxu1 }
 0x70d   : > { %v1406_v52 = vpack.c.bf16 %v1390_v48, %v1390_v48  ;;  %v1408_v53 = vpack.c.bf16 %v1392_v49, %v1392_v49  ;;  %v3591_v49 = vld [vmem:[%s4758_s5 + $0x238] sm:$0xff]  }
 0x70e   : > { %v1100_v58 = vpop.f32.mrf.mxu0  ;;  %v1141_v59 = vpop.f32.mrf.mxu1 }
 0x70f   : > { %2477 = vmatprep.mubr.bf16.mxu0 %v1406_v52  ;;  %2517 = vmatprep.mubr.bf16.mxu1 %v1408_v53  ;;  %v3595_v59 = vld [vmem:[%s4758_s5 + $0x230] sm:$0xff]  }
 0x710   : > { %2478 = vmatmul.mubr.bf16.vlgmr.msra.gmra.mxu0 %v1405_v56  ;;  %2518 = vmatmul.mubr.bf16.vlgmr.msra.gmra.mxu1 %v1407_v57  ;;  %v3593_v56 = vld [vmem:[%s4758_s5 + $0x270] sm:$0xff]  }
 0x711   : > { %3244 = vmatpush3.bf16.msra.mxu0 %v3559_v54  ;;  %3266 = vmatpush3.bf16.msra.mxu1 %v3560_v55  ;;  %v3592_v54 = vld [vmem:[%s4758_s5 + $0x2b8] sm:$0xff]   ;;  %v3594_v57 = vld [vmem:[%s4758_s5 + $0x2f0] sm:$0xff]  }
 0x712   : > { %3245 = vmatprep.subr.bf16.mxu0 %v3561_v60  ;;  %3267 = vmatprep.subr.bf16.mxu1 %v3562_v61  ;;  %v3596_v60 = vld [vmem:[%s4758_s5 + $0x2b0] sm:$0xff]   ;;  %v3597_v61 = vld [vmem:[%s4758_s5 + $0x268] sm:$0xff]  }
 0x715   : > { %3246 = vmatpush3.bf16.msra.mxu0 %v3563_v62  ;;  %3268 = vmatpush3.bf16.msra.mxu1 %v3564_v63  ;;  %v3598_v62 = vld [vmem:[%s4758_s5 + $0x2e8] sm:$0xff]  }
 0x716   : > { %3247 = vmatprep.subr.bf16.mxu0 %v3565_v0  ;;  %3269 = vmatprep.subr.bf16.mxu1 %v3566_v1  ;;  %v3599_v63 = vld [vmem:[%s4758_s5 + $0x228] sm:$0xff]   ;;  %v3601_v1 = vld [vmem:[%s4758_s5 + $0x260] sm:$0xff]  }
 0x717   : > { %v3600_v0 = vld [vmem:[%s4758_s5 + $0x2a8] sm:$0xff]  }
 0x718   : > { %v4402_v6 = vpop.f32.mrf.mxu0  ;;  %v4404_v7 = vpop.f32.mrf.mxu1 }
 0x719   : > { %3248 = vmatpush3.bf16.msra.mxu0 %v3567_v2  ;;  %3270 = vmatpush3.bf16.msra.mxu1 %v3568_v3  ;;  %v1393_v36 = vmax.f32 %v4402_v6, 0.0  ;;  %v1395_v38 = vmax.f32 %v4404_v7, 0.0  ;;  %v3602_v2 = vld [vmem:[%s4758_s5 + $0x2e0] sm:$0xff]  }
 0x71a   : > { %v1179_v9 = vpop.f32.mrf.mxu0  ;;  %v1220_v10 = vpop.f32.mrf.mxu1  ;;  %3249 = vmatprep.subr.bf16.mxu0 %v3569_v4  ;;  %3271 = vmatprep.subr.bf16.mxu1 %v3570_v5  ;;  %v3603_v5 = vld [vmem:[%s4758_s5 + $0x220] sm:$0xff]  }
 0x71b   : > { %v1394_v13 = vmax.f32 %v1179_v9, 0.0  ;;  %v1396_v14 = vmax.f32 %v1220_v10, 0.0  ;;  %v1409_v50 = vpack.c.bf16 %v1393_v36, %v1393_v36  ;;  %v1411_v51 = vpack.c.bf16 %v1395_v38, %v1395_v38  ;;  %v3606_v9 = vld [vmem:[%s4758_s5 + $0x2d8] sm:$0xff]   ;;  %v3625_v38 = vld [vmem:[%s4758_s5 + $0x370] sm:$0xff]  }
 0x71c   : > { %v1181_v47 = vpop.f32.mrf.mxu0  ;;  %v1222_v15 = vpop.f32.mrf.mxu1  ;;  %v3624_v36 = vld [vmem:[%s4758_s5 + $0x3b8] sm:$0xff]  }
 0x71d   : > { %v1410_v16 = vpack.c.bf16 %v1394_v13, %v1394_v13  ;;  %v1412_v17 = vpack.c.bf16 %v1396_v14, %v1396_v14  ;;  %3250 = vmatpush3.bf16.msra.mxu0 %v3571_v37  ;;  %3272 = vmatpush3.bf16.msra.mxu1 %v3572_v8  ;;  %v3604_v37 = vld [vmem:[%s4758_s5 + $0x2a0] sm:$0xff]   ;;  %v3605_v8 = vld [vmem:[%s4758_s5 + $0x258] sm:$0xff]   ;;  %v3609_v15 = vld [vmem:[%s4758_s5 + $0x250] sm:$0xff]  }
 0x71e   : > { %v1182_v20 = vpop.f32.mrf.mxu0  ;;  %v1223_v21 = vpop.f32.mrf.mxu1  ;;  %3251 = vmatprep.subr.bf16.mxu0 %v3573_v11  ;;  %3273 = vmatprep.subr.bf16.mxu1 %v3574_v12  ;;  %v3607_v12 = vld [vmem:[%s4758_s5 + $0x218] sm:$0xff]  }
 0x71f   : > { %2557 = vmatprep.mubr.bf16.mxu0 %v1410_v16  ;;  %2597 = vmatprep.mubr.bf16.mxu1 %v1412_v17  ;;  %v3608_v47 = vld [vmem:[%s4758_s5 + $0x298] sm:$0xff]   ;;  %v3610_v16 = vld [vmem:[%s4758_s5 + $0x2d0] sm:$0xff]   ;;  %v3614_v20 = vld [vmem:[%s4758_s5 + $0x2c8] sm:$0xff]  }
 0x720   : > { %v3611_v17 = vld [vmem:[%s4758_s5 + $0x210] sm:$0xff]   ;;  %v3615_v21 = vld [vmem:[%s4758_s5 + $0x208] sm:$0xff]  }
 0x721   : > { %3252 = vmatpush3.bf16.msra.mxu0 %v3575_v18  ;;  %3274 = vmatpush3.bf16.msra.mxu1 %v3576_v19  ;;  %v3612_v18 = vld [vmem:[%s4758_s5 + $0x290] sm:$0xff]   ;;  %v3613_v19 = vld [vmem:[%s4758_s5 + $0x248] sm:$0xff]  }
 0x722   : > { %3253 = vmatprep.subr.bf16.mxu0 %v3577_v22  ;;  %3275 = vmatprep.subr.bf16.mxu1 %v3578_v23  ;;  %v3616_v22 = vld [vmem:[%s4758_s5 + $0x288] sm:$0xff]   ;;  %v3617_v23 = vld [vmem:[%s4758_s5 + $0x240] sm:$0xff]  }
 0x725   : > { %3254 = vmatpush3.bf16.msra.mxu0 %v3579_v24  ;;  %3276 = vmatpush3.bf16.msra.mxu1 %v3580_v25  ;;  %v3618_v24 = vld [vmem:[%s4758_s5 + $0x2c0] sm:$0xff]  }
 0x726   : > { %3255 = vmatprep.subr.bf16.mxu0 %v3581_v26  ;;  %3277 = vmatprep.subr.bf16.mxu1 %v3582_v27  ;;  %v3619_v25 = vld [vmem:[%s4758_s5 + $0x200] sm:$0xff]  }
 0x727   : > { %v3620_v27 = vld [vmem:[%s4758_s5 + $0x280] sm:$0xff]  }
 0x728   : > { %v4454_v32 = vpop.f32.mrf.mxu0  ;;  %v4456_v33 = vpop.f32.mrf.mxu1 }
 0x729   : > { %3256 = vmatpush3.bf16.msra.mxu0 %v3583_v28  ;;  %3278 = vmatpush3.bf16.msra.mxu1 %v3584_v29  ;;  %v1397_v26 = vmax.f32 %v4454_v32, 0.0  ;;  %v3621_v28 = vld [vmem:[%s4758_s5 + $0x378] sm:$0xff]   ;;  %v1399_v29 = vmax.f32 %v4456_v33, 0.0 }
 0x72a   : > { %v1261_v39 = vpop.f32.mrf.mxu0  ;;  %v1302_v40 = vpop.f32.mrf.mxu1  ;;  %3257 = vmatprep.subr.bf16.mxu0 %v3585_v30  ;;  %3279 = vmatprep.subr.bf16.mxu1 %v3586_v31  ;;  %v3622_v30 = vld [vmem:[%s4758_s5 + $0x3f8] sm:$0xff]  }
 0x72b   : > { %v1398_v43 = vmax.f32 %v1261_v39, 0.0  ;;  %v1400_v44 = vmax.f32 %v1302_v40, 0.0  ;;  %v3623_v32 = vld [vmem:[%s4758_s5 + $0x338] sm:$0xff]   ;;  %v1415_v33 = vpack.c.bf16 %v1399_v29, %v1399_v29  ;;  %v3626_v40 = vld [vmem:[%s4758_s5 + $0x3f0] sm:$0xff]  }
 0x72c   : > { %v1263_v45 = vpop.f32.mrf.mxu0  ;;  %v1304_v48 = vpop.f32.mrf.mxu1 }
 0x72d   : > { %3258 = vmatpush3.bf16.msra.mxu0 %v3587_v34  ;;  %3280 = vmatpush3.bf16.msra.mxu1 %v3588_v35  ;;  %v1414_v55 = vpack.c.bf16 %v1398_v43, %v1398_v43  ;;  %v1416_v58 = vpack.c.bf16 %v1400_v44, %v1400_v44  ;;  %v1413_v35 = vpack.c.bf16 %v1397_v26, %v1397_v26  ;;  %v3628_v43 = vld [vmem:[%s4758_s5 + $0x3b0] sm:$0xff]   ;;  %v3629_v44 = vld [vmem:[%s4758_s5 + $0x368] sm:$0xff]  }
 0x72e   : > { %v1264_v52 = vpop.f32.mrf.mxu0  ;;  %v1305_v53 = vpop.f32.mrf.mxu1  ;;  %3287 = vmatprep.subr.bf16.mxu0 %v3589_v41  ;;  %3309 = vmatprep.subr.bf16.mxu1 %v3590_v42  ;;  %v3627_v42 = vld [vmem:[%s4758_s5 + $0x330] sm:$0xff]   ;;  %v3630_v45 = vld [vmem:[%s4758_s5 + $0x3e8] sm:$0xff]  }
 0x72f   : > { %v3631_v48 = vld [vmem:[%s4758_s5 + $0x328] sm:$0xff]   ;;  %v3635_v52 = vld [vmem:[%s4758_s5 + $0x320] sm:$0xff]  }
 0x730   : > { %2558 = vmatmul.mubr.bf16.vlgmr.msra.gmra.mxu0 %v1409_v50  ;;  %2598 = vmatmul.mubr.bf16.vlgmr.msra.gmra.mxu1 %v1411_v51  ;;  %v3633_v50 = vld [vmem:[%s4758_s5 + $0x360] sm:$0xff]  }
 0x731   : > { %3288 = vmatpush3.bf16.msra.mxu0 %v3591_v49  ;;  %2637 = vmatprep.mubr.bf16.mxu0 %v1414_v55  ;;  %v3632_v49 = vld [vmem:[%s4758_s5 + $0x3a8] sm:$0xff]   ;;  %v3634_v51 = vld [vmem:[%s4758_s5 + $0x3e0] sm:$0xff]   ;;  %v3638_v55 = vld [vmem:[%s4758_s5 + $0x3d8] sm:$0xff]  }
 0x732   : > { %3310 = vmatpush3.bf16.msra.mxu1 %v3592_v54  ;;  %2677 = vmatprep.mubr.bf16.mxu1 %v1416_v58  ;;  %v3636_v53 = vld [vmem:[%s4758_s5 + $0x3a0] sm:$0xff]   ;;  %v3637_v54 = vld [vmem:[%s4758_s5 + $0x358] sm:$0xff]   ;;  %v3641_v58 = vld [vmem:[%s4758_s5 + $0x350] sm:$0xff]  }
 0x733   : > { %3289 = vmatprep.subr.bf16.mxu0 %v3593_v56  ;;  %3311 = vmatprep.subr.bf16.mxu1 %v3594_v57  ;;  %v3639_v56 = vld [vmem:[%s4758_s5 + $0x318] sm:$0xff]  }
 0x734   : > { %v3640_v57 = vld [vmem:[%s4758_s5 + $0x398] sm:$0xff]  }
 0x735   : > { %3290 = vmatpush3.bf16.msra.mxu0 %v3595_v59  ;;  %v3642_v59 = vld [vmem:[%s4758_s5 + $0x3d0] sm:$0xff]  }
 0x736   : > { %3312 = vmatpush3.bf16.msra.mxu1 %v3596_v60  ;;  %3291 = vmatprep.subr.bf16.mxu0 %v3597_v61  ;;  %v3643_v60 = vld [vmem:[%s4758_s5 + $0x310] sm:$0xff]  }
 0x737   : > { %3313 = vmatprep.subr.bf16.mxu1 %v3598_v62  ;;  %v3644_v61 = vld [vmem:[%s4758_s5 + $0x390] sm:$0xff]   ;;  %v3645_v62 = vld [vmem:[%s4758_s5 + $0x348] sm:$0xff]  }
 0x738   : > { %v4508_v3 = vpop.f32.mrf.mxu0  ;;  %v4510_v4 = vpop.f32.mrf.mxu1 }
 0x739   : > { %3292 = vmatpush3.bf16.msra.mxu0 %v3599_v63  ;;  %v3646_v63 = vld [vmem:[%s4758_s5 + $0x3c8] sm:$0xff]  }
 0x73a   : > { %3314 = vmatpush3.bf16.msra.mxu1 %v3600_v0  ;;  %v1343_v6 = vpop.f32.mrf.mxu0  ;;  %v1384_v7 = vpop.f32.mrf.mxu1  ;;  %3293 = vmatprep.subr.bf16.mxu0 %v3601_v1  ;;  %v3647_v0 = vld [vmem:[%s4758_s5 + $0x308] sm:$0xff]  }
 0x73b   : > { %3315 = vmatprep.subr.bf16.mxu1 %v3602_v2  ;;  %v1402_v31 = vmax.f32 %v1343_v6, 0.0  ;;  %v1404_v34 = vmax.f32 %v1384_v7, 0.0  ;;  %v3648_v1 = vld [vmem:[%s4758_s5 + $0x388] sm:$0xff]   ;;  %v3649_v2 = vld [vmem:[%s4758_s5 + $0x340] sm:$0xff]   ;;  %v1401_v7 = vmax.f32 %v4508_v3, 0.0 }
 0x73c   : > { %v1345_v10 = vpop.f32.mrf.mxu0  ;;  %v1386_v11 = vpop.f32.mrf.mxu1  ;;  %v3651_v6 = vld [vmem:[%s4758_s5 + $0x300] sm:$0xff]  }
 0x73d   : > { %3294 = vmatpush3.bf16.msra.mxu0 %v3603_v5  ;;  %v1418_v39 = vpack.c.bf16 %v1402_v31, %v1402_v31  ;;  %v1420_v41 = vpack.c.bf16 %v1404_v34, %v1404_v34  ;;  %v3650_v5 = vld [vmem:[%s4758_s5 + $0x3c0] sm:$0xff]  }
 0x73e   : > { %3316 = vmatpush3.bf16.msra.mxu1 %v3604_v37  ;;  %v1346_v13 = vpop.f32.mrf.mxu0  ;;  %v1387_v14 = vpop.f32.mrf.mxu1  ;;  %3295 = vmatprep.subr.bf16.mxu0 %v3605_v8  ;;  %v3652_v37 = vld [vmem:[%s4758_s5 + $0x380] sm:$0xff]   ;;  %v1403_v8 = vmax.f32 %v4510_v4, 0.0 }
 0x73f   : > { %3317 = vmatprep.subr.bf16.mxu1 %v3606_v9  ;;  %v1417_v9 = vpack.c.bf16 %v1401_v7, %v1401_v7 }
 0x740   : > { %v1419_v10 = vpack.c.bf16 %v1403_v8, %v1403_v8 }
 0x741   : > { %3296 = vmatpush3.bf16.msra.mxu0 %v3607_v12 }
 0x742   : > { %3318 = vmatpush3.bf16.msra.mxu1 %v3608_v47  ;;  %3297 = vmatprep.subr.bf16.mxu0 %v3609_v15 }
 0x743   : > { %3319 = vmatprep.subr.bf16.mxu1 %v3610_v16 }
 0x745   : > { %3298 = vmatpush3.bf16.msra.mxu0 %v3611_v17 }
 0x746   : > { %3320 = vmatpush3.bf16.msra.mxu1 %v3612_v18  ;;  %3299 = vmatprep.subr.bf16.mxu0 %v3613_v19 }
 0x747   : > { %3321 = vmatprep.subr.bf16.mxu1 %v3614_v20 }
 0x749   : > { %3300 = vmatpush3.bf16.msra.mxu0 %v3615_v21 }
 0x74a   : > { %3322 = vmatpush3.bf16.msra.mxu1 %v3616_v22  ;;  %3301 = vmatprep.subr.bf16.mxu0 %v3617_v23 }
 0x74b   : > { %3323 = vmatprep.subr.bf16.mxu1 %v3618_v24 }
 0x74d   : > { %3302 = vmatpush3.bf16.msra.mxu0 %v3619_v25 }
 0x74e   : > { %3324 = vmatpush3.bf16.msra.mxu1 %v3620_v27  ;;  %3331 = vmatprep.subr.bf16.mxu0 %v3621_v28 }
 0x74f   : > { %3353 = vmatprep.subr.bf16.mxu1 %v3622_v30 }
 0x750   : > { %2638 = vmatmul.mubr.bf16.vlgmr.msra.gmra.mxu0 %v1413_v35 }
 0x751   : > { %2678 = vmatmul.mubr.bf16.vlgmr.msra.gmra.mxu1 %v1415_v33  ;;  %3332 = vmatpush3.bf16.msra.mxu0 %v3623_v32 }
 0x752   : > { %2717 = vmatprep.mubr.bf16.mxu0 %v1418_v39  ;;  %3354 = vmatpush3.bf16.msra.mxu1 %v3624_v36 }
 0x753   : > { %2757 = vmatprep.mubr.bf16.mxu1 %v1420_v41  ;;  %3333 = vmatprep.subr.bf16.mxu0 %v3625_v38 }
 0x754   : > { %3355 = vmatprep.subr.bf16.mxu1 %v3626_v40 }
 0x755   : > { %3334 = vmatpush3.bf16.msra.mxu0 %v3627_v42 }
 0x756   : > { %3356 = vmatpush3.bf16.msra.mxu1 %v3628_v43  ;;  %3335 = vmatprep.subr.bf16.mxu0 %v3629_v44 }
 0x757   : > { %3357 = vmatprep.subr.bf16.mxu1 %v3630_v45 }
 0x759   : > { %3336 = vmatpush3.bf16.msra.mxu0 %v3631_v48 }
 0x75a   : > { %3358 = vmatpush3.bf16.msra.mxu1 %v3632_v49  ;;  %3337 = vmatprep.subr.bf16.mxu0 %v3633_v50 }
 0x75b   : > { %3359 = vmatprep.subr.bf16.mxu1 %v3634_v51 }
 0x75d   : > { %3338 = vmatpush3.bf16.msra.mxu0 %v3635_v52 }
 0x75e   : > { %3360 = vmatpush3.bf16.msra.mxu1 %v3636_v53  ;;  %3339 = vmatprep.subr.bf16.mxu0 %v3637_v54 }
 0x75f   : > { %3361 = vmatprep.subr.bf16.mxu1 %v3638_v55 }
 0x761   : > { %3340 = vmatpush3.bf16.msra.mxu0 %v3639_v56 }
 0x762   : > { %3362 = vmatpush3.bf16.msra.mxu1 %v3640_v57  ;;  %3341 = vmatprep.subr.bf16.mxu0 %v3641_v58 }
 0x763   : > { %3363 = vmatprep.subr.bf16.mxu1 %v3642_v59 }
 0x765   : > { %3342 = vmatpush3.bf16.msra.mxu0 %v3643_v60 }
 0x766   : > { %3364 = vmatpush3.bf16.msra.mxu1 %v3644_v61  ;;  %3343 = vmatprep.subr.bf16.mxu0 %v3645_v62 }
 0x767   : > { %3365 = vmatprep.subr.bf16.mxu1 %v3646_v63 }
 0x769   : > { %3344 = vmatpush3.bf16.msra.mxu0 %v3647_v0 }
 0x76a   : > { %3366 = vmatpush3.bf16.msra.mxu1 %v3648_v1  ;;  %3345 = vmatprep.subr.bf16.mxu0 %v3649_v2 }
 0x76b   : > { %3367 = vmatprep.subr.bf16.mxu1 %v3650_v5 }
 0x76d   : > { %3346 = vmatpush3.bf16.msra.mxu0 %v3651_v6 }
 0x76e   : > { %3368 = vmatpush3.bf16.msra.mxu1 %v3652_v37 }
 0x770   : > { %2718 = vmatmul.mubr.bf16.vlgmr.msra.gmra.mxu0 %v1417_v9 }
 0x771   : > { %2758 = vmatmul.mubr.bf16.vlgmr.msra.gmra.mxu1 %v1419_v10 }
 0x7d0   : > { %v3215_v11 = vpop.f32.mrf.mxu0  ;;  %v3237_v12 = vpop.f32.mrf.mxu1 }
 0x7d2   : > { %v3216_v13 = vpop.f32.mrf.mxu0  ;;  %v3238_v14 = vpop.f32.mrf.mxu1 }
 0x7d3   : > { %v3217_v3 = vadd.f32 %v3216_v13, %v3215_v11  ;;  %v3239_v47 = vadd.f32 %v3238_v14, %v3237_v12 }
 0x7d4   : > { %v3218_v15 = vpop.f32.mrf.mxu0  ;;  %v3240_v16 = vpop.f32.mrf.mxu1 }
 0x7d5   : > { %v2480_v17 = vadd.f32 %v3217_v3, %v4116_v46 }
 0x7d6   : > { %v3219_v18 = vpop.f32.mrf.mxu0  ;;  %v3241_v19 = vpop.f32.mrf.mxu1 }
 0x7d7   : > { %v2520_v4 = vadd.f32 %v3239_v47, %v2480_v17 }
 0x7f0   : > { %v3259_v20 = vpop.f32.mrf.mxu0  ;;  %v3281_v21 = vpop.f32.mrf.mxu1 }
 0x7f2   : > { %v3260_v22 = vpop.f32.mrf.mxu0  ;;  %v3282_v23 = vpop.f32.mrf.mxu1 }
 0x7f3   : > { %v3261_v46 = vadd.f32 %v3260_v22, %v3259_v20  ;;  %v3283_v38 = vadd.f32 %v3282_v23, %v3281_v21 }
 0x7f4   : > { %v3262_v24 = vpop.f32.mrf.mxu0  ;;  %v3284_v25 = vpop.f32.mrf.mxu1 }
 0x7f5   : > { %v2560_v33 = vadd.f32 %v3261_v46, %v2520_v4 }
 0x7f6   : > { %v3263_v26 = vpop.f32.mrf.mxu0  ;;  %v3285_v27 = vpop.f32.mrf.mxu1 }
 0x7f7   : > { %v2600_v40 = vadd.f32 %v3283_v38, %v2560_v33 }
 0x810   : > { %v3303_v28 = vpop.f32.mrf.mxu0 }
 0x811   : > { %v3325_v29 = vpop.f32.mrf.mxu1 }
 0x812   : > { %v3304_v30 = vpop.f32.mrf.mxu0 }
 0x813   : > { %v3326_v31 = vpop.f32.mrf.mxu1  ;;  %v3305_v39 = vadd.f32 %v3304_v30, %v3303_v28 }
 0x814   : > { %v3306_v34 = vpop.f32.mrf.mxu0  ;;  %v3327_v43 = vadd.f32 %v3326_v31, %v3325_v29 }
 0x815   : > { %v3328_v32 = vpop.f32.mrf.mxu1  ;;  %v2640_v41 = vadd.f32 %v3305_v39, %v2600_v40 }
 0x816   : > { %v3307_v35 = vpop.f32.mrf.mxu0 }
 0x817   : > { %v3329_v36 = vpop.f32.mrf.mxu1  ;;  %v2680_v48 = vadd.f32 %v3327_v43, %v2640_v41 }
 0x830   : > { %v3347_v42 = vpop.f32.mrf.mxu0 }
 0x831   : > { %v3369_v44 = vpop.f32.mrf.mxu1 }
 0x832   : > { %v3348_v45 = vpop.f32.mrf.mxu0 }
 0x833   : > { %v3349_v49 = vadd.f32 %v3348_v45, %v3347_v42  ;;  %v3370_v50 = vpop.f32.mrf.mxu1 }
 0x834   : > { %v3350_v51 = vpop.f32.mrf.mxu0  ;;  %v3371_v53 = vadd.f32 %v3370_v50, %v3369_v44 }
 0x835   : > { %v2720_v52 = vadd.f32 %v3349_v49, %v2680_v48  ;;  %v3372_v54 = vpop.f32.mrf.mxu1 }
 0x836   : > { %v3351_v55 = vpop.f32.mrf.mxu0 }
 0x837   : > { %v3373_v56 = vpop.f32.mrf.mxu1  ;;  %v2760_v57 = vadd.f32 %v3371_v53, %v2720_v52 }
 0x839   : > { %v2765_v58 = vsel %vm410_vm1, %v2760_v57, 0.0 }
 0x83a   : > { %2766 = vadd.xlane.f32.xlu1 %v2765_v58 }
 0x8c3   : > { %v2767_v59 = vpop.xlane.xlu1 %2766 }
 0x8c4   : > { %v2768_v60 = vmul.f32 0.015625, %v2767_v59 }
 0x8c6   : > { %v2769_v61 = vsub.f32 %v2760_v57, %v2768_v60 }
 0x8c8   : > { %v2770_v62 = vmul.f32 %v2769_v61, %v2769_v61 }
 0x8ca   : > { %v2771_v63 = vsel %vm410_vm1, %v2770_v62, 0.0 }
 0x8cb   : > { %2772 = vadd.xlane.f32.xlu1 %v2771_v63 }
 0x954   : > { %v2773_v0 = vpop.xlane.xlu1 %2772 }
 0x955   : > { %v2774_v1 = vmul.f32 0.015625, %v2773_v0 }
 0x957   : > { %v2775_v2 = vadd.f32 1e-05, %v2774_v1 }
 0x959   : > { %3655 = vrsqrt.f32 %v2775_v2 }
 0x966   : > { %v3656_v5 = vpop.eup %3655 }
 0x967   : > { %v2777_v6 = vmul.f32 %v3656_v5, %v2769_v61 }
 0x969   : > { %2778 = vst.msk [vmem:[%s328_s25] sm:$0xff] %vm410_vm1, %v2777_v6 }
 0x96a PF: > { %s3183_s17 = sshll.u32 %s3791_s8, 7  ;;  %s4803_s12 = sld [smem:[#allocation24_spill]] }
 0x96b   : > { %s2798_s24 = sshll.u32 %s328_s25, 4  ;;  %s4804_s26 = sand.u32 1, %s3779_s28   ;;  %s2799_s24 = int_to_ptr.vmem [resolvable:$true] %s2798_s24 }
 0x96c   : > { %s2780_s27 = scalar_lea.sflag [#allocation4], %s4804_s26  ;;  %s3657_s29 = scalar_lea.vmem %s2799_s24, 128 }
 0x96d   : > { %p3658_p9 = scmp.ne.s32.totalorder %s2799_s24, %s3657_s29  ;;  %s3811_s9 = smov [#allocation3]  }
 0x96e   : > { %s3661_s10 = sshll.u32 %s3811_s9, 4  ;;  %s3662_s10 = int_to_ptr.vmem [resolvable:$false] %s3661_s10 }
 0x96f   : > { %p3659_p10 = pnand %p3658_p9, %p3924_p3  ;;  %s3663_s11 = scalar_lea.vmem %s3662_s10, 256 }
 0x970   : > { %s2796_s7 = scalar_lea.hbm %s4803_s12, %s3183_s17  ;;  %p3664_p0 = scmp.lt.s32.totalorder %s2799_s24, %s3662_s10 }
 0x971   : > { %p3660_p11 = pneg %p3659_p10  ;;  %p3665_p1 = scmp.lt.s32.totalorder %s3663_s11, %s3657_s29 }
 0x973   : > { %p3666_p4 = por %p3665_p1, %p3664_p0 }
 0x975   : > { %p3667_p2 = pnand %p3666_p4, %p3660_p11 }
 0x977   : > { %3670 = shalt.err (!%p3667_p2)
}
 0x978   : > { %s3671_s14 = scalar_lea.hbm %s2796_s7, 128  ;;  %s3675_s15 = scalar_lea.hbm %s4803_s12, 256 }
 0x979   : > { %p3672_p5 = scmp.ne.s32.totalorder %s2796_s7, %s3671_s14  ;;  %p3676_p9 = scmp.lt.s32.totalorder %s2796_s7, %s4803_s12 }
 0x97a   : > { %p3677_p10 = scmp.lt.s32.totalorder %s3675_s15, %s3671_s14 }
 0x97b   : > { %p3673_p6 = pnand %p3672_p5, %p3924_p3 }
 0x97c   : > { %p3678_p13 = por %p3677_p10, %p3676_p9 }
 0x97d   : > { %p3674_p8 = pneg %p3673_p6 }
 0x97f   : > { %p3679_p7 = pnand %p3678_p13, %p3674_p8 }
 0x981   : > { %3682 = shalt.err (!%p3679_p7)
}
 0x982   : > { %s4805_s16 = sld [smem:[#allocation10_spill]]  ;;  %s3184_s21 = sshll.u32 %s3791_s8, 1 }
 0x983   : > { %3399 = dma.vmem_to_hbm [thread:$0]  (%p3924_p3), %s2799_s24, 128, %s2796_s7, %s2780_s27  }
 0x984   : > { %s2813_s23 = sshll.u32 %s335_s6, 4  ;;  %s2809_s26 = sadd.s32 %s3787_s30, %s3184_s21  ;;  %s2814_s23 = int_to_ptr.vmem [resolvable:$true] %s2813_s23 }
 0x985   : > { %s3185_s29 = sshll.u32 %s2809_s26, 7  ;;  %s4807_s11 = sld [smem:[#allocation25_spill]] }
 0x986   : > { %s3683_s22 = scalar_lea.vmem %s2814_s23, 128  ;;  %s3812_s18 = smov [#allocation5]  }
 0x987   : > { %p3684_p7 = scmp.ne.s32.totalorder %s2814_s23, %s3683_s22  ;;  %s3687_s13 = sshll.u32 %s3812_s18, 4  ;;  %s3688_s13 = int_to_ptr.vmem [resolvable:$false] %s3687_s13 }
 0x988   : > { %s4809_s19 = sand.u32 1, %s4805_s16   ;;  %s3689_s8 = scalar_lea.vmem %s3688_s13, 256 }
 0x989   : > { %s2785_s15 = scalar_lea.sflag [#allocation6], %s4809_s19  ;;  %p3685_p13 = pnand %p3684_p7, %p3953_p12 }
 0x98a   : > { %p3690_p3 = scmp.lt.s32.totalorder %s2814_s23, %s3688_s13  ;;  %p3691_p0 = scmp.lt.s32.totalorder %s3689_s8, %s3683_s22 }
 0x98b   : > { %s4808_s14 = smov %s4807_s11  ;;  %s2811_s25 = scalar_lea.hbm %s4807_s11, %s3185_s29 }
 0x98c   : > { %p3686_p11 = pneg %p3685_p13  ;;  %p3692_p1 = por %p3691_p0, %p3690_p3 }
 0x98e   : > { %p3693_p4 = pnand %p3692_p1, %p3686_p11 }
 0x990   : > { %3696 = shalt.err (!%p3693_p4)
}
 0x991   : > { %s3697_s6 = scalar_lea.hbm %s2811_s25, 128  ;;  %s3701_s7 = scalar_lea.hbm %s4808_s14, 512 }
 0x992   : > { %p3698_p2 = scmp.ne.s32.totalorder %s2811_s25, %s3697_s6  ;;  %p3702_p8 = scmp.lt.s32.totalorder %s2811_s25, %s4808_s14 }
 0x993   : > { %p3703_p9 = scmp.lt.s32.totalorder %s3701_s7, %s3697_s6 }
 0x994   : > { %p3699_p5 = pnand %p3698_p2, %p3953_p12 }
 0x995   : > { %p3704_p10 = por %p3703_p9, %p3702_p8 }
 0x996   : > { %p3700_p6 = pneg %p3699_p5 }
 0x998   : > { %p3705_p7 = pnand %p3704_p10, %p3700_p6 }
 0x99a   : > { %3708 = shalt.err (!%p3705_p7)
}
 0x99b   : > { %3400 = dma.vmem_to_hbm [thread:$0]  (%p3953_p12), %s2814_s23, 128, %s2811_s25, %s2785_s15  }
 0x99c PF: > { %s4810_s16 = sld [smem:[#allocation16_spill]] }
 0x99d   : > { %s4811_s21 = sld [smem:[#allocation12_spill]] }
 0x99e   : > { %s4812_s26 = sld [smem:[#allocation19_spill]] }
 0x9a2   : > { %p3410_p13 = scmp.ge.s32.totalorder %s4810_s16, 2 }
 0x9a3   : > { %s2825_s29 = sand.u32 1, %s4811_s21  }
 0x9a4   : > { %p4813_p11 = scmp.ne.s32.totalorder %s4812_s26, 0  ;;  %s2826_s9 = scalar_lea.sflag [#allocation4], %s2825_s29 }
 0x9a6   : > { %p3404_p3 = pnand %p3410_p13, %p4813_p11 }
 0x9a8   : > { %p3405_p0 = pneg %p3404_p3 }
 0x9aa   : > { %3754 = dma.done.wait (%p3405_p0), %s2826_s9, 128  }
 0x9ab   : > { %3756 = vsyncadd (%p3405_p0), %s2826_s9, 4294967168  ;;  %s4814_s10 = sld [smem:[#allocation9_spill]] }
 0x9ac   : > { %s4815_s11 = sld [smem:[#allocation23_spill]] }
 0x9b1   : > { %s2834_s19 = sand.u32 1, %s4814_s10  }
 0x9b2   : > { %p4816_p1 = scmp.ne.s32.totalorder %s4815_s11, 0  ;;  %s2835_s17 = scalar_lea.sflag [#allocation6], %s2834_s19 }
 0x9b4   : > { %p3407_p4 = pnand %p3410_p13, %p4816_p1 }
 0x9b6   : > { %p3408_p2 = pneg %p3407_p4 }
 0x9b8   : > { %3758 = dma.done.wait (%p3408_p2), %s2835_s17, 128  }
 0x9b9   : > { %3760 = vsyncadd (%p3408_p2), %s2835_s17, 4294967168  ;;  %s24_s11 = sadd.s32 1, %s4810_s16   ;;  %s4817_s24 = sld [smem:[#allocation10_spill]] }
 0x9ba   : > { %p21_p12 = scmp.ge.s32.totalorder %s24_s11, 6   ;;  %s4818_s25 = sld [smem:[#allocation11_spill]] }
 0x9bb   : > { %s4819_s26 = sld [smem:[#allocation22_spill]]  ;;  %s4826_s27 = smov %s3779_s28 }
 0x9bc   : > { %s4820_s23 = sld [smem:[#allocation13_spill]] }
 0x9bd   : > { %s4821_s29 = sld [smem:[#allocation21_spill]] }
 0x9be   : > { %s4822_s30 = sld [smem:[#allocation14_spill]]  ;;  %23 = sbr.rel (!%p21_p12) target bundleno = 12 (0xc), region = 113 }
 0x9bf   : > { %s4823_s8 = sld [smem:[#allocation15_spill]] }
 0x9c0   : > { %s4824_s9 = sld [smem:[#allocation17_spill]] }
 0x9c1   : > { %s4825_s10 = sld [smem:[#allocation18_spill]] }
 0x9c2   : > { %s4827_s28 = smov %s4820_s23 }
 0x9c3   :  { %2840 = vsyncpa [#allocation4], 1 }
 0x9c4   :  { %2842 = vsyncpa [#allocation4 + $0x1], 1 }
 0x9c5   :  { %2843 = vsyncpa [#allocation6], 1 }
 0x9c6   :  { %2845 = vsyncpa [#allocation6 + $0x1], 1 }

// kernel: encoder_forward.2
= control target key start
LH: loop header
LB: loop body
LE: loop exit
PB: predicated region body
PF: predicated region fallthrough
CT: control target
= control target key end

     0   :  { %s4567_s0 = inlined_call_operand.vmem [shape: f32[2,8,64], index: 0, kind: input, shape index: {}]   ;;  %s4568_s1 = inlined_call_operand.vmem [shape: f32[2,1,8], index: 1, kind: input, shape index: {}]   ;;  %s4569_s2 = inlined_call_operand.vmem [shape: bf16[2,64,192], index: 2, kind: input, shape index: {}]   ;;  %s4570_s3 = inlined_call_operand.vmem [shape: bf16[2,64,64], index: 3, kind: input, shape index: {}]   ;;  %s4571_s4 = inlined_call_operand.vmem [shape: bf16[64,2048], index: 4, kind: input, shape index: {}]   ;;  %s4572_s5 = inlined_call_operand.vmem [shape: bf16[2048,64], index: 5, kind: input, shape index: {}]   ;;  %s4573_s6 = inlined_call_operand.vmem [shape: f32[2,8,64], index: 6, kind: output, shape index: {0}]   ;;  %s4574_s7 = inlined_call_operand.hbm [shape: f32[2,2,8,8], index: 7, kind: output, shape index: {1}]  }
   0x1   :  { %4586 = sst [smem:[#allocation15_spill]] %s4574_s7 }
   0x2   :  { %13 = vsyncpa [#allocation4], 0 }
   0x3   :  { %15 = vsyncpa [#allocation4 + $0x1], 0  ;;  %s3748_s24 = smov 0   ;;  %s3750_s25 = smov 0  }
   0x4   :  { %s3752_s26 = smov 0   ;;  %s3754_s27 = smov 0  }
   0x5   :  { %s3756_s28 = smov 0   ;;  %s3758_s29 = smov 0  }
   0x6   :  { %s3760_s30 = smov 0   ;;  %s3762_s8 = smov 0  }
   0x7 LB: > { %4587 = sst [smem:[#allocation6_spill]] %s3671_s24  ;;  %s2931_s9 = sadd.s32 4294967295, %s3699_s8   ;;  %s3699_s8 = sphi %s3762_s8, %s21_s8   ;;  %s3695_s30 = sphi %s3760_s30, %s4609_s30   ;;  %s3691_s29 = sphi %s3758_s29, %s4613_s29   ;;  %s3687_s28 = sphi %s3756_s28, %s4607_s28   ;;  %s3683_s27 = sphi %s3754_s27, %s4606_s27   ;;  %s3679_s26 = sphi %s3752_s26, %s4612_s26   ;;  %s3675_s25 = sphi %s3750_s25, %s4611_s25   ;;  %s3671_s24 = sphi %s3748_s24, %s4610_s24  }
   0x8   : > { %4588 = sst [smem:[#allocation7_spill]] %s3679_s26  ;;  %s2932_s10 = sadd.s32 4294967294, %s3699_s8  }
   0x9   : > { %4589 = sst [smem:[#allocation8_spill]] %s3691_s29  ;;  %s30_s11 = sadd.s32 1, %s3691_s29 }
   0xa   : > { %4590 = sst [smem:[#allocation9_spill]] %s3695_s30  ;;  %p31_p0 = scmp.ge.s32.totalorder %s30_s11, 2 }
   0xb   : > { %4591 = sst [smem:[#allocation10_spill]] %s3699_s8  ;;  %s33_s12 = sadd.s32 1, %s3695_s30 }
   0xc   : > { %p224_p1 = scmp.ne.s32.totalorder %s3679_s26, %s3675_s25  ;;  %p225_p2 = scmp.eq.s32.totalorder %s2931_s9, 3 }
   0xd   : > { %s4615_s11 = smov (%p31_p0, %s30_s11), 0  ;;  %s4617_s12 = smov (!%p31_p0, %s33_s12), %s3695_s30 }
   0xe   : > { %4592 = sst [smem:[#allocation11_spill]] %s4615_s11  ;;  %s210_s13 = ssub.s32 %s3691_s29, %s4615_s11 }
   0xf   : > { %p3799_p3 = por %p225_p2, %p224_p1  ;;  %p35_p4 = scmp.ge.s32.totalorder %s4617_s12, 2 }
  0x10   : > { %p230_p5 = scmp.ne.s32.totalorder %s3675_s25, %s3671_s24  ;;  %p231_p6 = scmp.eq.s32.totalorder %s2932_s10, 3 }
  0x11   : > { %p2935_p7 = scmp.ge.s32.totalorder %s3699_s8, 1  ;;  %s4619_s12 = smov (%p35_p4, %s4617_s12), 0 }
  0x12   : > { %4594 = sst [smem:[#allocation12_spill]] %s4619_s12  ;;  %p3808_p8 = por %p231_p6, %p230_p5 }
  0x13   : > { %p284_p9 = scmp.lt.s32.totalorder %s3699_s8, 5  ;;  %s209_s16 = ssub.s32 %s3695_s30, %s4619_s12 }
  0x14   : > { %s4595_s15 = scalar_select %p3808_p8, 1, 0 }
  0x15   : > { %s214_s17 = sadd.s32 1, %s3679_s26  ;;  %s211_s18 = sor.u32 %s210_s13, %s209_s16 }
  0x16   : > { %4596 = sst [smem:[#allocation13_spill]] %s4595_s15  ;;  %p285_p10 = pnand %p2935_p7, %p284_p9 }
  0x17   : > { %p212_p11 = scmp.eq.s32.totalorder %s211_s18, 0  ;;  %s4578_s20 = sand.u32 (!%p285_p10), 1, %s3675_s25  }
  0x18   : > { %288 = sbr.rel (%p285_p10) target bundleno = 2421 (0x975), region = 44  ;;  %p332_p12 = scmp.lt.s32.totalorder (!%p285_p10), %s3687_s28, 1 }
  0x19   : > { %s3817_s19 = scalar_select %p212_p11, %s3679_s26, %s214_s17  }
  0x1a   : > { %s3823_s21 = sshll.u32 (!%p285_p10), %s4578_s20, 3  ;;  %p339_p13 = scmp.lt.s32.totalorder (!%p285_p10), %s3683_s27, 1 }
  0x1b   : > { %4597 = sst [smem:[#allocation14_spill]] %s3817_s19  ;;  %s331_s13 = scalar_lea.vmem (!%p285_p10), [#allocation3], %s3823_s21 }
  0x1c   : > { %p2943_p0 = scmp.ne.s32.totalorder (!%p285_p10), %s3683_s27, 0 }
  0x1d   : > { %s3827_s22 = scalar_select %p332_p12, %s3687_s28, 1 }
  0x1e   : > { %s340_s23 = scalar_select %p339_p13, %s3683_s27, 1 }
  0x1f   : > { %s2937_s9 = sshll.u32 %s3827_s22, 3  ;;  %s338_s16 = scalar_lea.vmem %s4568_s1, %s3827_s22 }
  0x20   : > { %s335_s12 = scalar_lea.vmem %s4567_s0, %s2937_s9  ;;  %s3167_s11 = sshll.u32 %s340_s23, 6 }
  0x21   : > { %s343_s29 = scalar_lea.vmem %s4569_s2, %s3167_s11  ;;  %s3168_s19 = sshll.u32 %s340_s23, 5 }
  0x22   : > { %s3844_s24 = scalar_lea.vmem %s4570_s3, %s3168_s19  ;;  %s3849_s10 = scalar_lea.vmem %s4573_s6, %s2937_s9 }
  0x23   : > { %357 = sbr.rel (%p2943_p0) target bundleno = 42 (0x2a), region = 48 }
  0x28   : > { %vm358_vm0 = vcmask 523264   ;;  %v3701_v0 = vmov 0.0  }
  0x29   : > { %359 = vst.msk [vmem:[#allocation2] sm:$0xff] %vm358_vm0, %v3701_v0 }
  0x2a PF: > { %v3455_v1 = vld [vmem:[%s343_s29 + $0x34] ss:$8 sps:$4 sm:$0xff]   ;;  %v3457_v2 = vld [vmem:[%s343_s29 + $0x30] ss:$8 sps:$4 sm:$0xff]   ;;  %v3702_v3 = vmov 0   ;;  %v3853_v10 = vld [vmem:[%s335_s12] sm:$0xff] }
  0x2b   : > { %446 = vmatprep.mubr.bf16.mxu0 %v3702_v3  ;;  %422 = vmatprep.subr.bf16.mxu0 %v3455_v1  ;;  %v3458_v4 = vld [vmem:[%s343_s29 + $0x24] ss:$8 sps:$4 sm:$0xff]   ;;  %v3460_v5 = vld [vmem:[%s343_s29 + $0x20] ss:$8 sps:$4 sm:$0xff]   ;;  %v3461_v6 = vld [vmem:[%s343_s29 + $0x14] ss:$8 sps:$4 sm:$0xff]   ;;  %v361_v11 = vpack.c.bf16 %v3853_v10, %v3853_v10 }
  0x2c   : > { %423 = vmatpush1.bf16.msra.mxu0 %v3457_v2  ;;  %v3463_v7 = vld [vmem:[%s343_s29 + $0x10] ss:$8 sps:$4 sm:$0xff]   ;;  %v3464_v8 = vld [vmem:[%s343_s29 + $0x4] ss:$8 sps:$4 sm:$0xff]   ;;  %v3466_v9 = vld [vmem:[%s343_s29] ss:$8 sps:$4 sm:$0xff]  }
  0x2d   : > { %424 = vmatprep.subr.bf16.mxu0 %v3458_v4  ;;  %vm410_vm1 = vcmask 523264   ;;  %v3703_v12 = vmov 0.0   ;;  %vm3704_vm2 = vmmov 0   ;;  %s3705_s7 = smov 64   ;;  %vm530_vm3 = vcmask 1043456   ;;  %v3467_v34 = vld [vmem:[%s3844_s24 + $0x18] sm:$0xff]  }
  0x2e   : > { %3354 = vmatprep.subr.bf16.mxu1 %v3703_v12  ;;  %3356 = vmatprep.mubr.msk.bf16.mxu1 %vm3704_vm2, %v3703_v12  ;;  %v2953_v22 = vld [vmem:[%s338_s16] ss:$0 sm:$0xff]  ;;  %vm512_vm4 = vcmask 64512   ;;  %v3468_v35 = vld [vmem:[%s3844_s24 + $0x10] sm:$0xff]   ;;  %v3469_v36 = vld [vmem:[%s3844_s24 + $0x8] sm:$0xff]   ;;  %p2961_p1 = scmp.ne.s32.totalorder %s3683_s27, 1 }
  0x2f   : > { %v3470_v41 = vld [vmem:[%s3844_s24] sm:$0xff]  }
  0x30   : > { %425 = vmatpush1.bf16.msra.mxu0 %v3460_v5  ;;  %v574_v47 = vld [vmem:[#allocation2] sm:$0xff] }
  0x31   : > { %426 = vmatprep.subr.bf16.mxu0 %v3461_v6 }
  0x34   : > { %427 = vmatpush1.bf16.msra.mxu0 %v3463_v7 }
  0x35   : > { %428 = vmatprep.subr.bf16.mxu0 %v3464_v8 }
  0x38   : > { %429 = vmatpush1.bf16.msra.mxu0 %v3466_v9 }
  0x39   : > { %3366 = vmatprep.subr.bf16.mxu0 %v3703_v12 }
  0x3b   : > { %2952 = vmatmul.mubr.msk.bf16.vlgmr.msra.gmra.mxu0 %vm410_vm1, %v361_v11 }
  0x3c   : > { %3374 = vmatprep.mubr.msk.bf16.mxu0 %vm3704_vm2, %v3703_v12  ;;  %3367 = vmatpush3.bf16.msra.mxu0 %v3467_v34 }
  0x3d   : > { %3368 = vmatprep.subr.bf16.mxu0 %v3703_v12 }
  0x40   : > { %3369 = vmatpush3.bf16.msra.mxu0 %v3468_v35 }
  0x41   : > { %3370 = vmatprep.subr.bf16.mxu0 %v3703_v12 }
  0x44   : > { %3371 = vmatpush3.bf16.msra.mxu0 %v3469_v36 }
  0x45   : > { %3372 = vmatprep.subr.bf16.mxu0 %v3703_v12 }
  0x48   : > { %3373 = vmatpush3.bf16.msra.mxu0 %v3470_v41 }
  0xfb   : > { %v448_v13 = vpop.f32.mrf.mxu0 }
  0xfc   : > { %v455_v14 = vpack.c.bf16 %v448_v13, %v448_v13 }
  0xfd   : > { %v450_v15 = vpop.f32.mrf.mxu0 }
  0xfe   : > { %464 = vrot.lane.b32.xlu0 %v455_v14, %s3705_s7  ;;  %v526_v20 = vpack.c.bf16 %v450_v15, %v450_v15 }
  0xff   : > { %v452_v16 = vpop.f32.mrf.mxu0 }
 0x100   : > { %v532_v21 = vsel %vm530_vm3, %v526_v20, 0 }
 0x101   : > { %v453_v17 = vpop.f32.mrf.mxu0 }
 0x170   : > { %v465_v18 = vpop.permute.xlu0 %464 }
 0x171   : > { %v470_v19 = vsel %vm410_vm1, %v465_v18, 0 }
 0x172   : > { %3355 = vmatpush3.bf16.xpose.msra.mxu1 %v470_v19 }
 0x173   : > { %3360 = vmatprep.subr.bf16.mxu1 %v3703_v12 }
 0x179   : > { %3357 = vmatmul.mubr.msk.bf16.vlgmr.msra.gmra.mxu1 %vm410_vm1, %v455_v14 }
 0x17a   : > { %3361 = vmatpush3.bf16.msra.mxu1 %v532_v21  ;;  %3362 = vmatprep.mubr.msk.bf16.mxu1 %vm3704_vm2, %v3703_v12 }
 0x239   : > { %v506_v23 = vpop.f32.mrf.mxu1 }
 0x23a   : > { %v507_v24 = vadd.f32 %v2953_v22, %v506_v23 }
 0x23b   : > { %v3358_v25 = vpop.f32.mrf.mxu1 }
 0x23c   : > { %v513_v26 = vsel %vm512_vm4, %v507_v24, -inf }
 0x23d   : > { %514 = vmax.xlane.f32.xlu0 %v513_v26  ;;  %v509_v27 = vpop.f32.mrf.mxu1 }
 0x23f   : > { %v3359_v28 = vpop.f32.mrf.mxu1 }
 0x2c6   : > { %v515_v29 = vpop.xlane.xlu0 %514 }
 0x2c7   : > { %v516_v30 = vsub.f32 %v507_v24, %v515_v29 }
 0x2c9   : > { %v517_v31 = vmul.f32 1.442695, %v516_v30 }
 0x2cb   : > { %3471 = vpow2.f32 %v517_v31 }
 0x2d8   : > { %v3472_v32 = vpop.eup %3471 }
 0x2d9   : > { %v519_v33 = vsel %vm512_vm4, %v3472_v32, 0.0 }
 0x2da   : > { %520 = vadd.xlane.f32.xlu1 %v519_v33 }
 0x363   : > { %v521_v37 = vpop.xlane.xlu1 %520 }
 0x364   : > { %3473 = vrcp.f32 %v521_v37 }
 0x371   : > { %v3474_v38 = vpop.eup %3473 }
 0x372   : > { %v523_v39 = vmul.f32 %v3474_v38, %v3472_v32 }
 0x374   : > { %524 = vst.msk [vmem:[%s331_s13] sm:$0xff] %vm512_vm4, %v523_v39  ;;  %v525_v40 = vpack.c.bf16 %v523_v39, %v523_v39 }
 0x376   : > { %3363 = vmatmul.mubr.msk.bf16.vlgmr.msra.gmra.mxu1 %vm512_vm4, %v525_v40 }
 0x436   : > { %v568_v42 = vpop.f32.mrf.mxu1 }
 0x437   : > { %v575_v43 = vpack.c.bf16 %v568_v42, %v568_v42 }
 0x438   : > { %v3364_v44 = vpop.f32.mrf.mxu1 }
 0x439   : > { %3375 = vmatmul.mubr.msk.bf16.vlgmr.msra.gmra.mxu0 %vm410_vm1, %v575_v43 }
 0x43a   : > { %v571_v45 = vpop.f32.mrf.mxu1 }
 0x43c   : > { %v3365_v46 = vpop.f32.mrf.mxu1 }
 0x4f9   : > { %v645_v48 = vpop.f32.mrf.mxu0 }
 0x4fa   : > { %v651_v49 = vadd.f32 %v645_v48, %v574_v47 }
 0x4fb   : > { %v3376_v50 = vpop.f32.mrf.mxu0  ;;  %656 = sbr.rel (%p2961_p1) target bundleno = 2394 (0x95a), region = 52 }
 0x4fc   : > { %652 = vst.msk [vmem:[#allocation2] sm:$0xff] %vm410_vm1, %v651_v49 }
 0x4fd   : > { %v648_v51 = vpop.f32.mrf.mxu0 }
 0x4ff   : > { %v3377_v52 = vpop.f32.mrf.mxu0 }
 0x500   : > { %v722_v61 = vld [vmem:[%s4571_s4 + $0x180] sm:$0xff]  ;;  %v723_v63 = vld [vmem:[%s4571_s4 + $0x188] sm:$0xff]  ;;  %v724_v29 = vld [vmem:[%s4571_s4 + $0x190] sm:$0xff]  ;;  %v3706_v37 = vmov 0  }
 0x501   : > { %v730_v62 = vld [vmem:[%s4571_s4 + $0x1c0] sm:$0xff]  ;;  %v731_v1 = vld [vmem:[%s4571_s4 + $0x1c8] sm:$0xff]  ;;  %v732_v30 = vld [vmem:[%s4571_s4 + $0x1d0] sm:$0xff]  ;;  %1093 = vmatprep.mubr.bf16.mxu0 %v3706_v37  ;;  %1134 = vmatprep.mubr.bf16.mxu1 %v3706_v37 }
 0x502   : > { %v3011_v0 = vcombine.high %v722_v61, %v730_v62  ;;  %v3013_v2 = vcombine.high %v723_v63, %v731_v1  ;;  %v3010_v3 = vcombine.low %v722_v61, %v730_v62  ;;  %v3012_v4 = vcombine.low %v723_v63, %v731_v1  ;;  %v706_v5 = vld [vmem:[%s4571_s4 + $0x100] sm:$0xff]  ;;  %v707_v7 = vld [vmem:[%s4571_s4 + $0x108] sm:$0xff]  ;;  %v725_v31 = vld [vmem:[%s4571_s4 + $0x198] sm:$0xff] }
 0x503   : > { %v657_v53 = vld [vmem:[#allocation2] sm:$0xff]  ;;  %v715_v9 = vld [vmem:[%s4571_s4 + $0x148] sm:$0xff]  ;;  %v3015_v32 = vcombine.high %v724_v29, %v732_v30  ;;  %v733_v33 = vld [vmem:[%s4571_s4 + $0x1d8] sm:$0xff]  ;;  %v3014_v34 = vcombine.low %v724_v29, %v732_v30 }
 0x504   : > { %v658_v54 = vadd.f32 %v657_v53, %v3853_v10  ;;  %1069 = vmatprep.subr.bf16.mxu0 %v3011_v0  ;;  %1110 = vmatprep.subr.bf16.mxu1 %v3013_v2  ;;  %v714_v6 = vld [vmem:[%s4571_s4 + $0x140] sm:$0xff]  ;;  %v2997_v10 = vcombine.high %v707_v7, %v715_v9  ;;  %v2996_v12 = vcombine.low %v707_v7, %v715_v9  ;;  %v691_v15 = vld [vmem:[%s4571_s4 + $0x88] sm:$0xff]  ;;  %v708_v41 = vld [vmem:[%s4571_s4 + $0x110] sm:$0xff] }
 0x505   : > { %1070 = vmatpush1.bf16.msra.mxu0 %v3010_v3  ;;  %1111 = vmatpush1.bf16.msra.mxu1 %v3012_v4  ;;  %v2995_v8 = vcombine.high %v706_v5, %v714_v6  ;;  %v2994_v11 = vcombine.low %v706_v5, %v714_v6  ;;  %v690_v13 = vld [vmem:[%s4571_s4 + $0x80] sm:$0xff]  ;;  %v699_v17 = vld [vmem:[%s4571_s4 + $0xc8] sm:$0xff]  ;;  %v3016_v35 = vcombine.low %v725_v31, %v733_v33  ;;  %v716_v43 = vld [vmem:[%s4571_s4 + $0x150] sm:$0xff] }
 0x506   : > { %v659_v55 = vsel %vm410_vm1, %v658_v54, 0.0  ;;  %1112 = vmatprep.subr.bf16.mxu1 %v2997_v10  ;;  %v698_v14 = vld [vmem:[%s4571_s4 + $0xc0] sm:$0xff]  ;;  %v2981_v18 = vcombine.high %v691_v15, %v699_v17  ;;  %v2980_v20 = vcombine.low %v691_v15, %v699_v17  ;;  %v675_v23 = vld [vmem:[%s4571_s4 + $0x8] sm:$0xff]  ;;  %v3017_v36 = vcombine.high %v725_v31, %v733_v33  ;;  %v709_v44 = vld [vmem:[%s4571_s4 + $0x118] sm:$0xff] }
 0x507   : > { %660 = vadd.xlane.f32.xlu0 %v659_v55  ;;  %1071 = vmatprep.subr.bf16.mxu0 %v2995_v8  ;;  %v2979_v16 = vcombine.high %v690_v13, %v698_v14  ;;  %v2978_v19 = vcombine.low %v690_v13, %v698_v14  ;;  %v674_v21 = vld [vmem:[%s4571_s4] sm:$0xff]  ;;  %v683_v25 = vld [vmem:[%s4571_s4 + $0x48] sm:$0xff]  ;;  %v717_v45 = vld [vmem:[%s4571_s4 + $0x158] sm:$0xff]  ;;  %v2999_v48 = vcombine.high %v708_v41, %v716_v43 }
 0x508   : > { %v682_v22 = vld [vmem:[%s4571_s4 + $0x40] sm:$0xff]  ;;  %v2965_v26 = vcombine.high %v675_v23, %v683_v25  ;;  %v2964_v28 = vcombine.low %v675_v23, %v683_v25  ;;  %v3001_v49 = vcombine.high %v709_v44, %v717_v45  ;;  %v692_v50 = vld [vmem:[%s4571_s4 + $0x90] sm:$0xff]  ;;  %v693_v52 = vld [vmem:[%s4571_s4 + $0x98] sm:$0xff]  ;;  %v3000_v55 = vcombine.low %v709_v44, %v717_v45 }
 0x509   : > { %1072 = vmatpush1.bf16.msra.mxu0 %v2994_v11  ;;  %1113 = vmatpush1.bf16.msra.mxu1 %v2996_v12  ;;  %v2963_v24 = vcombine.high %v674_v21, %v682_v22  ;;  %v2962_v27 = vcombine.low %v674_v21, %v682_v22  ;;  %v700_v51 = vld [vmem:[%s4571_s4 + $0xd0] sm:$0xff]  ;;  %v701_v53 = vld [vmem:[%s4571_s4 + $0xd8] sm:$0xff]  ;;  %v726_v2 = vld [vmem:[%s4571_s4 + $0x1a0] sm:$0xff] }
 0x50a   : > { %1073 = vmatprep.subr.bf16.mxu0 %v2979_v16  ;;  %1114 = vmatprep.subr.bf16.mxu1 %v2981_v18  ;;  %v685_v61 = vld [vmem:[%s4571_s4 + $0x58] sm:$0xff]  ;;  %v2982_v62 = vcombine.low %v692_v50, %v700_v51  ;;  %v2984_v63 = vcombine.low %v693_v52, %v701_v53  ;;  %v734_v3 = vld [vmem:[%s4571_s4 + $0x1e0] sm:$0xff]  ;;  %v727_v4 = vld [vmem:[%s4571_s4 + $0x1a8] sm:$0xff] }
 0x50b   : > { %v735_v5 = vld [vmem:[%s4571_s4 + $0x1e8] sm:$0xff]  ;;  %v3019_v8 = vcombine.high %v726_v2, %v734_v3  ;;  %v710_v10 = vld [vmem:[%s4571_s4 + $0x120] sm:$0xff]  ;;  %v3018_v14 = vcombine.low %v726_v2, %v734_v3  ;;  %v720_v44 = vld [vmem:[%s4571_s4 + $0x170] sm:$0xff] }
 0x50c   : > { %v3021_v9 = vcombine.high %v727_v4, %v735_v5  ;;  %v718_v11 = vld [vmem:[%s4571_s4 + $0x160] sm:$0xff]  ;;  %v711_v12 = vld [vmem:[%s4571_s4 + $0x128] sm:$0xff]  ;;  %v3020_v15 = vcombine.low %v727_v4, %v735_v5  ;;  %v713_v45 = vld [vmem:[%s4571_s4 + $0x138] sm:$0xff] }
 0x50d   : > { %1074 = vmatpush1.bf16.msra.mxu0 %v2978_v19  ;;  %1115 = vmatpush1.bf16.msra.mxu1 %v2980_v20  ;;  %v719_v13 = vld [vmem:[%s4571_s4 + $0x168] sm:$0xff]  ;;  %v3003_v16 = vcombine.high %v710_v10, %v718_v11  ;;  %v694_v18 = vld [vmem:[%s4571_s4 + $0xa0] sm:$0xff]  ;;  %v3002_v22 = vcombine.low %v710_v10, %v718_v11  ;;  %v3479_v10 = vld [vmem:[%s4572_s5 + $0x70] sm:$0xff]  }
 0x50e   : > { %1075 = vmatprep.subr.bf16.mxu0 %v2963_v24  ;;  %1116 = vmatprep.subr.bf16.mxu1 %v2965_v26  ;;  %v3005_v17 = vcombine.high %v711_v12, %v719_v13  ;;  %v702_v19 = vld [vmem:[%s4571_s4 + $0xe0] sm:$0xff]  ;;  %v695_v20 = vld [vmem:[%s4571_s4 + $0xa8] sm:$0xff]  ;;  %v3004_v23 = vcombine.low %v711_v12, %v719_v13  ;;  %v3480_v11 = vld [vmem:[%s4572_s5 + $0xf0] sm:$0xff]  }
 0x50f   : > { %v703_v21 = vld [vmem:[%s4571_s4 + $0xe8] sm:$0xff]  ;;  %v2987_v24 = vcombine.high %v694_v18, %v702_v19  ;;  %v678_v26 = vld [vmem:[%s4571_s4 + $0x20] sm:$0xff]  ;;  %v2986_v30 = vcombine.low %v694_v18, %v702_v19  ;;  %v3481_v12 = vld [vmem:[%s4572_s5 + $0x30] sm:$0xff]  }
 0x510   : > { %v2989_v25 = vcombine.high %v695_v20, %v703_v21  ;;  %v687_v29 = vld [vmem:[%s4571_s4 + $0x68] sm:$0xff]  ;;  %v2988_v31 = vcombine.low %v695_v20, %v703_v21  ;;  %v3482_v13 = vld [vmem:[%s4572_s5 + $0xb0] sm:$0xff]   ;;  %v3488_v18 = vld [vmem:[%s4572_s5 + $0xe0] sm:$0xff]  }
 0x511   : > { %1076 = vmatpush1.bf16.msra.mxu0 %v2962_v27  ;;  %1117 = vmatpush1.bf16.msra.mxu1 %v2964_v28  ;;  %v686_v27 = vld [vmem:[%s4571_s4 + $0x60] sm:$0xff]  ;;  %v679_v28 = vld [vmem:[%s4571_s4 + $0x28] sm:$0xff]  ;;  %v3491_v21 = vld [vmem:[%s4572_s5 + $0x58] sm:$0xff]  }
 0x512   : > { %1151 = vmatprep.subr.bf16.mxu0 %v3015_v32  ;;  %1192 = vmatprep.subr.bf16.mxu1 %v3017_v36  ;;  %v2971_v32 = vcombine.high %v678_v26, %v686_v27  ;;  %v2973_v33 = vcombine.high %v679_v28, %v687_v29  ;;  %v729_v36 = vld [vmem:[%s4571_s4 + $0x1b8] sm:$0xff]  ;;  %v3489_v19 = vld [vmem:[%s4572_s5 + $0x20] sm:$0xff]  }
 0x513   : > { %v3490_v20 = vld [vmem:[%s4572_s5 + $0xa0] sm:$0xff]  }
 0x590   : > { %v661_v56 = vpop.xlane.xlu0 %660 }
 0x591   : > { %v663_v57 = vmul.f32 0.015625, %v661_v56  ;;  %v2983_v56 = vcombine.high %v692_v50, %v700_v51 }
 0x593   : > { %v3883_v58 = vsub.f32 %v658_v54, %v663_v57  ;;  %v2998_v54 = vcombine.low %v708_v41, %v716_v43  ;;  %v2985_v57 = vcombine.high %v693_v52, %v701_v53  ;;  %v712_v43 = vld [vmem:[%s4571_s4 + $0x130] sm:$0xff] }
 0x594   : > { %v3007_v51 = vcombine.high %v712_v43, %v720_v44  ;;  %v696_v53 = vld [vmem:[%s4571_s4 + $0xb0] sm:$0xff] }
 0x595   : > { %v665_v59 = vmul.f32 %v3883_v58, %v3883_v58 }
 0x597   : > { %v666_v60 = vsel %vm410_vm1, %v665_v59, 0.0  ;;  %v684_v59 = vld [vmem:[%s4571_s4 + $0x50] sm:$0xff] }
 0x598   : > { %667 = vadd.xlane.f32.xlu0 %v666_v60  ;;  %v677_v60 = vld [vmem:[%s4571_s4 + $0x18] sm:$0xff] }
 0x599   : > { %v2969_v1 = vcombine.high %v677_v60, %v685_v61  ;;  %v2968_v7 = vcombine.low %v677_v60, %v685_v61  ;;  %v680_v61 = vld [vmem:[%s4571_s4 + $0x30] sm:$0xff] }
 0x621   : > { %v668_v38 = vpop.xlane.xlu0 %667 }
 0x622   : > { %v669_v39 = vmul.f32 0.015625, %v668_v38  ;;  %v737_v38 = vld [vmem:[%s4571_s4 + $0x1f8] sm:$0xff] }
 0x623   : > { %v3024_v50 = vcombine.low %v729_v36, %v737_v38 }
 0x624   : > { %v670_v40 = vadd.f32 1e-05, %v669_v39  ;;  %v2970_v39 = vcombine.low %v678_v26, %v686_v27  ;;  %v3496_v26 = vld [vmem:[%s4572_s5 + $0xd0] sm:$0xff]  }
 0x625   : > { %v3497_v27 = vld [vmem:[%s4572_s5 + $0x10] sm:$0xff]  }
 0x626   : > { %3603 = vrsqrt.f32 %v670_v40  ;;  %v2972_v40 = vcombine.low %v679_v28, %v687_v29  ;;  %v3498_v28 = vld [vmem:[%s4572_s5 + $0x90] sm:$0xff]   ;;  %v3499_v29 = vld [vmem:[%s4572_s5 + $0x48] sm:$0xff]  }
 0x633   : > { %v3604_v42 = vpop.eup %3603 }
 0x634   : > { %v3963_v46 = vmul.f32 %v3604_v42, %v3883_v58  ;;  %v676_v58 = vld [vmem:[%s4571_s4 + $0x10] sm:$0xff]  ;;  %v3025_v42 = vcombine.high %v729_v36, %v737_v38  ;;  %v3506_v36 = vld [vmem:[%s4572_s5 + $0x80] sm:$0xff]   ;;  %v3507_v38 = vld [vmem:[%s4572_s5 + $0x178] sm:$0xff]  }
 0x635   : > { %v2967_v0 = vcombine.high %v676_v58, %v684_v59  ;;  %v2966_v6 = vcombine.low %v676_v58, %v684_v59 }
 0x636   : > { %v3967_v47 = vpack.c.bf16 %v3963_v46, %v3963_v46 }
 0x638   : > { %3026 = vmatmul.mubr.msk.bf16.vlgmr.msra.gmra.mxu0 %vm410_vm1, %v3967_v47  ;;  %3027 = vmatmul.mubr.msk.bf16.vlgmr.msra.gmra.mxu1 %vm410_vm1, %v3967_v47 }
 0x639   : > { %1152 = vmatpush1.bf16.msra.mxu0 %v3014_v34  ;;  %1193 = vmatpush1.bf16.msra.mxu1 %v3016_v35  ;;  %v728_v34 = vld [vmem:[%s4571_s4 + $0x1b0] sm:$0xff] }
 0x63a   : > { %1153 = vmatprep.subr.bf16.mxu0 %v2999_v48  ;;  %1194 = vmatprep.subr.bf16.mxu1 %v3001_v49  ;;  %v736_v35 = vld [vmem:[%s4571_s4 + $0x1f0] sm:$0xff]  ;;  %v721_v48 = vld [vmem:[%s4571_s4 + $0x178] sm:$0xff] }
 0x63b   : > { %1175 = vmatprep.mubr.bf16.mxu0 %v3706_v37  ;;  %1216 = vmatprep.mubr.bf16.mxu1 %v3706_v37  ;;  %v3023_v41 = vcombine.high %v728_v34, %v736_v35  ;;  %v3022_v49 = vcombine.low %v728_v34, %v736_v35  ;;  %v3009_v52 = vcombine.high %v713_v45, %v721_v48  ;;  %v3504_v34 = vld [vmem:[%s4572_s5 + $0xc0] sm:$0xff]  }
 0x63c   : > { %v3008_v58 = vcombine.low %v713_v45, %v721_v48  ;;  %v3505_v35 = vld [vmem:[%s4572_s5] sm:$0xff]  }
 0x63d   : > { %1154 = vmatpush1.bf16.msra.mxu0 %v2998_v54  ;;  %1195 = vmatpush1.bf16.msra.mxu1 %v3000_v55  ;;  %v704_v54 = vld [vmem:[%s4571_s4 + $0xf0] sm:$0xff]  ;;  %v697_v55 = vld [vmem:[%s4571_s4 + $0xb8] sm:$0xff] }
 0x63e   : > { %1155 = vmatprep.subr.bf16.mxu0 %v2983_v56  ;;  %1196 = vmatprep.subr.bf16.mxu1 %v2985_v57  ;;  %v705_v56 = vld [vmem:[%s4571_s4 + $0xf8] sm:$0xff]  ;;  %v3006_v57 = vcombine.low %v712_v43, %v720_v44  ;;  %v2991_v59 = vcombine.high %v696_v53, %v704_v54 }
 0x63f   : > { %v2993_v60 = vcombine.high %v697_v55, %v705_v56  ;;  %v2992_v2 = vcombine.low %v697_v55, %v705_v56  ;;  %v3510_v55 = vld [vmem:[%s4572_s5 + $0x1b8] sm:$0xff]  }
 0x641   : > { %1156 = vmatpush1.bf16.msra.mxu0 %v2982_v62  ;;  %1197 = vmatpush1.bf16.msra.mxu1 %v2984_v63  ;;  %v688_v62 = vld [vmem:[%s4571_s4 + $0x70] sm:$0xff]  ;;  %v681_v63 = vld [vmem:[%s4571_s4 + $0x38] sm:$0xff] }
 0x642   : > { %1157 = vmatprep.subr.bf16.mxu0 %v2967_v0  ;;  %1198 = vmatprep.subr.bf16.mxu1 %v2969_v1  ;;  %v689_v0 = vld [vmem:[%s4571_s4 + $0x78] sm:$0xff]  ;;  %v2990_v1 = vcombine.low %v696_v53, %v704_v54  ;;  %v2975_v3 = vcombine.high %v680_v61, %v688_v62  ;;  %v2974_v5 = vcombine.low %v680_v61, %v688_v62  ;;  %v3512_v61 = vld [vmem:[%s4572_s5 + $0x1f0] sm:$0xff]  }
 0x643   : > { %v2977_v4 = vcombine.high %v681_v63, %v689_v0  ;;  %v3509_v54 = vld [vmem:[%s4572_s5 + $0x138] sm:$0xff]   ;;  %v3513_v62 = vld [vmem:[%s4572_s5 + $0x130] sm:$0xff]  }
 0x645   : > { %1158 = vmatpush1.bf16.msra.mxu0 %v2966_v6  ;;  %1199 = vmatpush1.bf16.msra.mxu1 %v2968_v7  ;;  %v2976_v6 = vcombine.low %v681_v63, %v689_v0  ;;  %v3475_v7 = vld [vmem:[%s4572_s5 + $0x78] sm:$0xff]   ;;  %v3514_v63 = vld [vmem:[%s4572_s5 + $0x1b0] sm:$0xff]   ;;  %v3515_v0 = vld [vmem:[%s4572_s5 + $0x168] sm:$0xff]  }
 0x646   : > { %1233 = vmatprep.subr.bf16.mxu0 %v3019_v8  ;;  %1274 = vmatprep.subr.bf16.mxu1 %v3021_v9  ;;  %v3477_v8 = vld [vmem:[%s4572_s5 + $0x38] sm:$0xff]  }
 0x647   : > { %v3478_v9 = vld [vmem:[%s4572_s5 + $0xb8] sm:$0xff]  }
 0x648   : > { %3028 = vmatmul.mubr.msk.bf16.vlgmr.msra.gmra.mxu0 %vm410_vm1, %v3967_v47  ;;  %3029 = vmatmul.mubr.msk.bf16.vlgmr.msra.gmra.mxu1 %vm410_vm1, %v3967_v47 }
 0x649   : > { %1234 = vmatpush1.bf16.msra.mxu0 %v3018_v14  ;;  %1275 = vmatpush1.bf16.msra.mxu1 %v3020_v15  ;;  %v3483_v14 = vld [vmem:[%s4572_s5 + $0x68] sm:$0xff]  }
 0x64a   : > { %1235 = vmatprep.subr.bf16.mxu0 %v3003_v16  ;;  %1276 = vmatprep.subr.bf16.mxu1 %v3005_v17  ;;  %v3485_v15 = vld [vmem:[%s4572_s5 + $0x28] sm:$0xff]   ;;  %v3487_v17 = vld [vmem:[%s4572_s5 + $0x60] sm:$0xff]  }
 0x64b   : > { %1257 = vmatprep.mubr.bf16.mxu0 %v3706_v37  ;;  %1298 = vmatprep.mubr.bf16.mxu1 %v3706_v37  ;;  %v3486_v16 = vld [vmem:[%s4572_s5 + $0xa8] sm:$0xff]  }
 0x64d   : > { %1236 = vmatpush1.bf16.msra.mxu0 %v3002_v22  ;;  %1277 = vmatpush1.bf16.msra.mxu1 %v3004_v23  ;;  %v3492_v22 = vld [vmem:[%s4572_s5 + $0xd8] sm:$0xff]  }
 0x64e   : > { %1237 = vmatprep.subr.bf16.mxu0 %v2987_v24  ;;  %1278 = vmatprep.subr.bf16.mxu1 %v2989_v25  ;;  %v3493_v23 = vld [vmem:[%s4572_s5 + $0x18] sm:$0xff]   ;;  %v3495_v25 = vld [vmem:[%s4572_s5 + $0x50] sm:$0xff]  }
 0x64f   : > { %v3494_v24 = vld [vmem:[%s4572_s5 + $0x98] sm:$0xff]  }
 0x651   : > { %1238 = vmatpush1.bf16.msra.mxu0 %v2986_v30  ;;  %1279 = vmatpush1.bf16.msra.mxu1 %v2988_v31  ;;  %v3500_v30 = vld [vmem:[%s4572_s5 + $0xc8] sm:$0xff]  }
 0x652   : > { %1239 = vmatprep.subr.bf16.mxu0 %v2971_v32  ;;  %1280 = vmatprep.subr.bf16.mxu1 %v2973_v33  ;;  %v3501_v31 = vld [vmem:[%s4572_s5 + $0x8] sm:$0xff]   ;;  %v3503_v33 = vld [vmem:[%s4572_s5 + $0x40] sm:$0xff]  }
 0x653   : > { %v3502_v32 = vld [vmem:[%s4572_s5 + $0x88] sm:$0xff]  }
 0x655   : > { %1240 = vmatpush1.bf16.msra.mxu0 %v2970_v39  ;;  %1281 = vmatpush1.bf16.msra.mxu1 %v2972_v40  ;;  %v3508_v39 = vld [vmem:[%s4572_s5 + $0x1f8] sm:$0xff]  }
 0x656   : > { %1315 = vmatprep.subr.bf16.mxu0 %v3023_v41  ;;  %1356 = vmatprep.subr.bf16.mxu1 %v3025_v42 }
 0x658   : > { %3030 = vmatmul.mubr.msk.bf16.vlgmr.msra.gmra.mxu0 %vm410_vm1, %v3967_v47  ;;  %3031 = vmatmul.mubr.msk.bf16.vlgmr.msra.gmra.mxu1 %vm410_vm1, %v3967_v47 }
 0x659   : > { %1316 = vmatpush1.bf16.msra.mxu0 %v3022_v49  ;;  %1357 = vmatpush1.bf16.msra.mxu1 %v3024_v50 }
 0x65a   : > { %1317 = vmatprep.subr.bf16.mxu0 %v3007_v51  ;;  %1358 = vmatprep.subr.bf16.mxu1 %v3009_v52 }
 0x65b   : > { %1339 = vmatprep.mubr.bf16.mxu0 %v3706_v37  ;;  %1380 = vmatprep.mubr.bf16.mxu1 %v3706_v37  ;;  %v3476_v37 = vld [vmem:[%s4572_s5 + $0xf8] sm:$0xff]  }
 0x65d   : > { %1318 = vmatpush1.bf16.msra.mxu0 %v3006_v57  ;;  %1359 = vmatpush1.bf16.msra.mxu1 %v3008_v58 }
 0x65e   : > { %1319 = vmatprep.subr.bf16.mxu0 %v2991_v59  ;;  %1360 = vmatprep.subr.bf16.mxu1 %v2993_v60  ;;  %v3511_v60 = vld [vmem:[%s4572_s5 + $0x170] sm:$0xff]  }
 0x661   : > { %1320 = vmatpush1.bf16.msra.mxu0 %v2990_v1  ;;  %1361 = vmatpush1.bf16.msra.mxu1 %v2992_v2  ;;  %v3516_v1 = vld [vmem:[%s4572_s5 + $0x1e8] sm:$0xff]  }
 0x662   : > { %1321 = vmatprep.subr.bf16.mxu0 %v2975_v3  ;;  %1362 = vmatprep.subr.bf16.mxu1 %v2977_v4  ;;  %v3517_v2 = vld [vmem:[%s4572_s5 + $0x128] sm:$0xff]   ;;  %v3519_v4 = vld [vmem:[%s4572_s5 + $0x160] sm:$0xff]  }
 0x663   : > { %v3518_v3 = vld [vmem:[%s4572_s5 + $0x1a8] sm:$0xff]  }
 0x665   : > { %1322 = vmatpush1.bf16.msra.mxu0 %v2974_v5  ;;  %1363 = vmatpush1.bf16.msra.mxu1 %v2976_v6  ;;  %v3520_v5 = vld [vmem:[%s4572_s5 + $0x1e0] sm:$0xff]  }
 0x666   : > { %3178 = vmatprep.subr.bf16.mxu0 %v3475_v7  ;;  %3200 = vmatprep.subr.bf16.mxu1 %v3476_v37  ;;  %v3521_v37 = vld [vmem:[%s4572_s5 + $0x120] sm:$0xff]  }
 0x668   : > { %3032 = vmatmul.mubr.msk.bf16.vlgmr.msra.gmra.mxu0 %vm410_vm1, %v3967_v47  ;;  %3033 = vmatmul.mubr.msk.bf16.vlgmr.msra.gmra.mxu1 %vm410_vm1, %v3967_v47  ;;  %v3484_v47 = vld [vmem:[%s4572_s5 + $0xe8] sm:$0xff]  }
 0x669   : > { %3179 = vmatpush3.bf16.msra.mxu0 %v3477_v8  ;;  %3201 = vmatpush3.bf16.msra.mxu1 %v3478_v9  ;;  %v3522_v8 = vld [vmem:[%s4572_s5 + $0x1a0] sm:$0xff]  }
 0x66a   : > { %3180 = vmatprep.subr.bf16.mxu0 %v3479_v10  ;;  %3202 = vmatprep.subr.bf16.mxu1 %v3480_v11  ;;  %v3523_v11 = vld [vmem:[%s4572_s5 + $0x158] sm:$0xff]  }
 0x66d   : > { %3181 = vmatpush3.bf16.msra.mxu0 %v3481_v12  ;;  %3203 = vmatpush3.bf16.msra.mxu1 %v3482_v13  ;;  %v3524_v12 = vld [vmem:[%s4572_s5 + $0x1d8] sm:$0xff]  }
 0x66e   : > { %3182 = vmatprep.subr.bf16.mxu0 %v3483_v14  ;;  %3204 = vmatprep.subr.bf16.mxu1 %v3484_v47 }
 0x671   : > { %3183 = vmatpush3.bf16.msra.mxu0 %v3485_v15  ;;  %3205 = vmatpush3.bf16.msra.mxu1 %v3486_v16 }
 0x672   : > { %3184 = vmatprep.subr.bf16.mxu0 %v3487_v17  ;;  %3206 = vmatprep.subr.bf16.mxu1 %v3488_v18  ;;  %v3525_v18 = vld [vmem:[%s4572_s5 + $0x118] sm:$0xff]  }
 0x675   : > { %3185 = vmatpush3.bf16.msra.mxu0 %v3489_v19  ;;  %3207 = vmatpush3.bf16.msra.mxu1 %v3490_v20  ;;  %v3526_v19 = vld [vmem:[%s4572_s5 + $0x198] sm:$0xff]  }
 0x676   : > { %3186 = vmatprep.subr.bf16.mxu0 %v3491_v21  ;;  %3208 = vmatprep.subr.bf16.mxu1 %v3492_v22  ;;  %v3527_v22 = vld [vmem:[%s4572_s5 + $0x150] sm:$0xff]  }
 0x679   : > { %3187 = vmatpush3.bf16.msra.mxu0 %v3493_v23  ;;  %3209 = vmatpush3.bf16.msra.mxu1 %v3494_v24  ;;  %v3528_v23 = vld [vmem:[%s4572_s5 + $0x1d0] sm:$0xff]  }
 0x67a   : > { %3188 = vmatprep.subr.bf16.mxu0 %v3495_v25  ;;  %3210 = vmatprep.subr.bf16.mxu1 %v3496_v26  ;;  %v3529_v24 = vld [vmem:[%s4572_s5 + $0x110] sm:$0xff]   ;;  %v3531_v26 = vld [vmem:[%s4572_s5 + $0x148] sm:$0xff]  }
 0x67b   : > { %v3530_v25 = vld [vmem:[%s4572_s5 + $0x190] sm:$0xff]  }
 0x67d   : > { %3189 = vmatpush3.bf16.msra.mxu0 %v3497_v27  ;;  %3211 = vmatpush3.bf16.msra.mxu1 %v3498_v28  ;;  %v3532_v27 = vld [vmem:[%s4572_s5 + $0x1c8] sm:$0xff]  }
 0x67e   : > { %3190 = vmatprep.subr.bf16.mxu0 %v3499_v29  ;;  %3212 = vmatprep.subr.bf16.mxu1 %v3500_v30  ;;  %v3533_v28 = vld [vmem:[%s4572_s5 + $0x108] sm:$0xff]   ;;  %v3535_v30 = vld [vmem:[%s4572_s5 + $0x140] sm:$0xff]  }
 0x67f   : > { %v3534_v29 = vld [vmem:[%s4572_s5 + $0x188] sm:$0xff]  }
 0x681   : > { %3191 = vmatpush3.bf16.msra.mxu0 %v3501_v31  ;;  %3213 = vmatpush3.bf16.msra.mxu1 %v3502_v32  ;;  %v3536_v31 = vld [vmem:[%s4572_s5 + $0x1c0] sm:$0xff]  }
 0x682   : > { %3192 = vmatprep.subr.bf16.mxu0 %v3503_v33  ;;  %3214 = vmatprep.subr.bf16.mxu1 %v3504_v34  ;;  %v3537_v34 = vld [vmem:[%s4572_s5 + $0x100] sm:$0xff]  }
 0x685   : > { %3193 = vmatpush3.bf16.msra.mxu0 %v3505_v35  ;;  %3215 = vmatpush3.bf16.msra.mxu1 %v3506_v36  ;;  %v3538_v35 = vld [vmem:[%s4572_s5 + $0x180] sm:$0xff]  }
 0x686   : > { %3222 = vmatprep.subr.bf16.mxu0 %v3507_v38  ;;  %3244 = vmatprep.subr.bf16.mxu1 %v3508_v39 }
 0x6f8   : > { %v1095_v40 = vpop.f32.mrf.mxu0  ;;  %v1136_v41 = vpop.f32.mrf.mxu1 }
 0x6f9   : > { %v1389_v42 = vmax.f32 %v1095_v40, 0.0  ;;  %v1391_v43 = vmax.f32 %v1136_v41, 0.0  ;;  %v3539_v41 = vld [vmem:[%s4572_s5 + $0x278] sm:$0xff]  }
 0x6fa   : > { %v1097_v44 = vpop.f32.mrf.mxu0  ;;  %v1138_v45 = vpop.f32.mrf.mxu1 }
 0x6fb   : > { %v1390_v48 = vmax.f32 %v1097_v44, 0.0  ;;  %v1392_v49 = vmax.f32 %v1138_v45, 0.0  ;;  %v1405_v56 = vpack.c.bf16 %v1389_v42, %v1389_v42  ;;  %v1407_v57 = vpack.c.bf16 %v1391_v43, %v1391_v43  ;;  %v3540_v42 = vld [vmem:[%s4572_s5 + $0x2f8] sm:$0xff]  }
 0x6fc   : > { %v1099_v50 = vpop.f32.mrf.mxu0  ;;  %v1140_v51 = vpop.f32.mrf.mxu1 }
 0x6fd   : > { %v1406_v52 = vpack.c.bf16 %v1390_v48, %v1390_v48  ;;  %v1408_v53 = vpack.c.bf16 %v1392_v49, %v1392_v49  ;;  %v3541_v49 = vld [vmem:[%s4572_s5 + $0x238] sm:$0xff]  }
 0x6fe   : > { %v1100_v58 = vpop.f32.mrf.mxu0  ;;  %v1141_v59 = vpop.f32.mrf.mxu1 }
 0x6ff   : > { %2477 = vmatprep.mubr.bf16.mxu0 %v1406_v52  ;;  %2517 = vmatprep.mubr.bf16.mxu1 %v1408_v53  ;;  %v3545_v59 = vld [vmem:[%s4572_s5 + $0x230] sm:$0xff]  }
 0x700   : > { %2478 = vmatmul.mubr.bf16.vlgmr.msra.gmra.mxu0 %v1405_v56  ;;  %2518 = vmatmul.mubr.bf16.vlgmr.msra.gmra.mxu1 %v1407_v57  ;;  %v3543_v56 = vld [vmem:[%s4572_s5 + $0x270] sm:$0xff]  }
 0x701   : > { %3223 = vmatpush3.bf16.msra.mxu0 %v3509_v54  ;;  %3245 = vmatpush3.bf16.msra.mxu1 %v3510_v55  ;;  %v3542_v54 = vld [vmem:[%s4572_s5 + $0x2b8] sm:$0xff]   ;;  %v3544_v57 = vld [vmem:[%s4572_s5 + $0x2f0] sm:$0xff]  }
 0x702   : > { %3224 = vmatprep.subr.bf16.mxu0 %v3511_v60  ;;  %3246 = vmatprep.subr.bf16.mxu1 %v3512_v61  ;;  %v3546_v60 = vld [vmem:[%s4572_s5 + $0x2b0] sm:$0xff]   ;;  %v3547_v61 = vld [vmem:[%s4572_s5 + $0x268] sm:$0xff]  }
 0x705   : > { %3225 = vmatpush3.bf16.msra.mxu0 %v3513_v62  ;;  %3247 = vmatpush3.bf16.msra.mxu1 %v3514_v63  ;;  %v3548_v62 = vld [vmem:[%s4572_s5 + $0x2e8] sm:$0xff]  }
 0x706   : > { %3226 = vmatprep.subr.bf16.mxu0 %v3515_v0  ;;  %3248 = vmatprep.subr.bf16.mxu1 %v3516_v1  ;;  %v3549_v63 = vld [vmem:[%s4572_s5 + $0x228] sm:$0xff]   ;;  %v3551_v1 = vld [vmem:[%s4572_s5 + $0x260] sm:$0xff]  }
 0x707   : > { %v3550_v0 = vld [vmem:[%s4572_s5 + $0x2a8] sm:$0xff]  }
 0x708   : > { %v4249_v6 = vpop.f32.mrf.mxu0  ;;  %v4251_v7 = vpop.f32.mrf.mxu1 }
 0x709   : > { %3227 = vmatpush3.bf16.msra.mxu0 %v3517_v2  ;;  %3249 = vmatpush3.bf16.msra.mxu1 %v3518_v3  ;;  %v1393_v36 = vmax.f32 %v4249_v6, 0.0  ;;  %v1395_v38 = vmax.f32 %v4251_v7, 0.0  ;;  %v3552_v2 = vld [vmem:[%s4572_s5 + $0x2e0] sm:$0xff]  }
 0x70a   : > { %v1179_v9 = vpop.f32.mrf.mxu0  ;;  %v1220_v10 = vpop.f32.mrf.mxu1  ;;  %3228 = vmatprep.subr.bf16.mxu0 %v3519_v4  ;;  %3250 = vmatprep.subr.bf16.mxu1 %v3520_v5  ;;  %v3553_v5 = vld [vmem:[%s4572_s5 + $0x220] sm:$0xff]  }
 0x70b   : > { %v1394_v13 = vmax.f32 %v1179_v9, 0.0  ;;  %v1396_v14 = vmax.f32 %v1220_v10, 0.0  ;;  %v1409_v50 = vpack.c.bf16 %v1393_v36, %v1393_v36  ;;  %v1411_v51 = vpack.c.bf16 %v1395_v38, %v1395_v38  ;;  %v3556_v9 = vld [vmem:[%s4572_s5 + $0x2d8] sm:$0xff]   ;;  %v3575_v38 = vld [vmem:[%s4572_s5 + $0x370] sm:$0xff]  }
 0x70c   : > { %v1181_v47 = vpop.f32.mrf.mxu0  ;;  %v1222_v15 = vpop.f32.mrf.mxu1  ;;  %v3574_v36 = vld [vmem:[%s4572_s5 + $0x3b8] sm:$0xff]  }
 0x70d   : > { %v1410_v16 = vpack.c.bf16 %v1394_v13, %v1394_v13  ;;  %v1412_v17 = vpack.c.bf16 %v1396_v14, %v1396_v14  ;;  %3229 = vmatpush3.bf16.msra.mxu0 %v3521_v37  ;;  %3251 = vmatpush3.bf16.msra.mxu1 %v3522_v8  ;;  %v3554_v37 = vld [vmem:[%s4572_s5 + $0x2a0] sm:$0xff]   ;;  %v3555_v8 = vld [vmem:[%s4572_s5 + $0x258] sm:$0xff]   ;;  %v3559_v15 = vld [vmem:[%s4572_s5 + $0x250] sm:$0xff]  }
 0x70e   : > { %v1182_v20 = vpop.f32.mrf.mxu0  ;;  %v1223_v21 = vpop.f32.mrf.mxu1  ;;  %3230 = vmatprep.subr.bf16.mxu0 %v3523_v11  ;;  %3252 = vmatprep.subr.bf16.mxu1 %v3524_v12  ;;  %v3557_v12 = vld [vmem:[%s4572_s5 + $0x218] sm:$0xff]  }
 0x70f   : > { %2557 = vmatprep.mubr.bf16.mxu0 %v1410_v16  ;;  %2597 = vmatprep.mubr.bf16.mxu1 %v1412_v17  ;;  %v3558_v47 = vld [vmem:[%s4572_s5 + $0x298] sm:$0xff]   ;;  %v3560_v16 = vld [vmem:[%s4572_s5 + $0x2d0] sm:$0xff]   ;;  %v3564_v20 = vld [vmem:[%s4572_s5 + $0x2c8] sm:$0xff]  }
 0x710   : > { %v3561_v17 = vld [vmem:[%s4572_s5 + $0x210] sm:$0xff]   ;;  %v3565_v21 = vld [vmem:[%s4572_s5 + $0x208] sm:$0xff]  }
 0x711   : > { %3231 = vmatpush3.bf16.msra.mxu0 %v3525_v18  ;;  %3253 = vmatpush3.bf16.msra.mxu1 %v3526_v19  ;;  %v3562_v18 = vld [vmem:[%s4572_s5 + $0x290] sm:$0xff]   ;;  %v3563_v19 = vld [vmem:[%s4572_s5 + $0x248] sm:$0xff]  }
 0x712   : > { %3232 = vmatprep.subr.bf16.mxu0 %v3527_v22  ;;  %3254 = vmatprep.subr.bf16.mxu1 %v3528_v23  ;;  %v3566_v22 = vld [vmem:[%s4572_s5 + $0x288] sm:$0xff]   ;;  %v3567_v23 = vld [vmem:[%s4572_s5 + $0x240] sm:$0xff]  }
 0x715   : > { %3233 = vmatpush3.bf16.msra.mxu0 %v3529_v24  ;;  %3255 = vmatpush3.bf16.msra.mxu1 %v3530_v25  ;;  %v3568_v24 = vld [vmem:[%s4572_s5 + $0x2c0] sm:$0xff]  }
 0x716   : > { %3234 = vmatprep.subr.bf16.mxu0 %v3531_v26  ;;  %3256 = vmatprep.subr.bf16.mxu1 %v3532_v27  ;;  %v3569_v25 = vld [vmem:[%s4572_s5 + $0x200] sm:$0xff]  }
 0x717   : > { %v3570_v27 = vld [vmem:[%s4572_s5 + $0x280] sm:$0xff]  }
 0x718   : > { %v4301_v32 = vpop.f32.mrf.mxu0  ;;  %v4303_v33 = vpop.f32.mrf.mxu1 }
 0x719   : > { %3235 = vmatpush3.bf16.msra.mxu0 %v3533_v28  ;;  %3257 = vmatpush3.bf16.msra.mxu1 %v3534_v29  ;;  %v1397_v26 = vmax.f32 %v4301_v32, 0.0  ;;  %v3571_v28 = vld [vmem:[%s4572_s5 + $0x378] sm:$0xff]   ;;  %v1399_v29 = vmax.f32 %v4303_v33, 0.0 }
 0x71a   : > { %v1261_v39 = vpop.f32.mrf.mxu0  ;;  %v1302_v40 = vpop.f32.mrf.mxu1  ;;  %3236 = vmatprep.subr.bf16.mxu0 %v3535_v30  ;;  %3258 = vmatprep.subr.bf16.mxu1 %v3536_v31  ;;  %v3572_v30 = vld [vmem:[%s4572_s5 + $0x3f8] sm:$0xff]  }
 0x71b   : > { %v1398_v43 = vmax.f32 %v1261_v39, 0.0  ;;  %v1400_v44 = vmax.f32 %v1302_v40, 0.0  ;;  %v3573_v32 = vld [vmem:[%s4572_s5 + $0x338] sm:$0xff]   ;;  %v1415_v33 = vpack.c.bf16 %v1399_v29, %v1399_v29  ;;  %v3576_v40 = vld [vmem:[%s4572_s5 + $0x3f0] sm:$0xff]  }
 0x71c   : > { %v1263_v45 = vpop.f32.mrf.mxu0  ;;  %v1304_v48 = vpop.f32.mrf.mxu1 }
 0x71d   : > { %3237 = vmatpush3.bf16.msra.mxu0 %v3537_v34  ;;  %3259 = vmatpush3.bf16.msra.mxu1 %v3538_v35  ;;  %v1414_v55 = vpack.c.bf16 %v1398_v43, %v1398_v43  ;;  %v1416_v58 = vpack.c.bf16 %v1400_v44, %v1400_v44  ;;  %v1413_v35 = vpack.c.bf16 %v1397_v26, %v1397_v26  ;;  %v3578_v43 = vld [vmem:[%s4572_s5 + $0x3b0] sm:$0xff]   ;;  %v3579_v44 = vld [vmem:[%s4572_s5 + $0x368] sm:$0xff]  }
 0x71e   : > { %v1264_v52 = vpop.f32.mrf.mxu0  ;;  %v1305_v53 = vpop.f32.mrf.mxu1  ;;  %3266 = vmatprep.subr.bf16.mxu0 %v3539_v41  ;;  %3288 = vmatprep.subr.bf16.mxu1 %v3540_v42  ;;  %v3577_v42 = vld [vmem:[%s4572_s5 + $0x330] sm:$0xff]   ;;  %v3580_v45 = vld [vmem:[%s4572_s5 + $0x3e8] sm:$0xff]  }
 0x71f   : > { %v3581_v48 = vld [vmem:[%s4572_s5 + $0x328] sm:$0xff]   ;;  %v3585_v52 = vld [vmem:[%s4572_s5 + $0x320] sm:$0xff]  }
 0x720   : > { %2558 = vmatmul.mubr.bf16.vlgmr.msra.gmra.mxu0 %v1409_v50  ;;  %2598 = vmatmul.mubr.bf16.vlgmr.msra.gmra.mxu1 %v1411_v51  ;;  %v3583_v50 = vld [vmem:[%s4572_s5 + $0x360] sm:$0xff]  }
 0x721   : > { %3267 = vmatpush3.bf16.msra.mxu0 %v3541_v49  ;;  %2637 = vmatprep.mubr.bf16.mxu0 %v1414_v55  ;;  %v3582_v49 = vld [vmem:[%s4572_s5 + $0x3a8] sm:$0xff]   ;;  %v3584_v51 = vld [vmem:[%s4572_s5 + $0x3e0] sm:$0xff]   ;;  %v3588_v55 = vld [vmem:[%s4572_s5 + $0x3d8] sm:$0xff]  }
 0x722   : > { %3289 = vmatpush3.bf16.msra.mxu1 %v3542_v54  ;;  %2677 = vmatprep.mubr.bf16.mxu1 %v1416_v58  ;;  %v3586_v53 = vld [vmem:[%s4572_s5 + $0x3a0] sm:$0xff]   ;;  %v3587_v54 = vld [vmem:[%s4572_s5 + $0x358] sm:$0xff]   ;;  %v3591_v58 = vld [vmem:[%s4572_s5 + $0x350] sm:$0xff]  }
 0x723   : > { %3268 = vmatprep.subr.bf16.mxu0 %v3543_v56  ;;  %3290 = vmatprep.subr.bf16.mxu1 %v3544_v57  ;;  %v3589_v56 = vld [vmem:[%s4572_s5 + $0x318] sm:$0xff]  }
 0x724   : > { %v3590_v57 = vld [vmem:[%s4572_s5 + $0x398] sm:$0xff]  }
 0x725   : > { %3269 = vmatpush3.bf16.msra.mxu0 %v3545_v59  ;;  %v3592_v59 = vld [vmem:[%s4572_s5 + $0x3d0] sm:$0xff]  }
 0x726   : > { %3291 = vmatpush3.bf16.msra.mxu1 %v3546_v60  ;;  %3270 = vmatprep.subr.bf16.mxu0 %v3547_v61  ;;  %v3593_v60 = vld [vmem:[%s4572_s5 + $0x310] sm:$0xff]  }
 0x727   : > { %3292 = vmatprep.subr.bf16.mxu1 %v3548_v62  ;;  %v3594_v61 = vld [vmem:[%s4572_s5 + $0x390] sm:$0xff]   ;;  %v3595_v62 = vld [vmem:[%s4572_s5 + $0x348] sm:$0xff]  }
 0x728   : > { %v4355_v3 = vpop.f32.mrf.mxu0  ;;  %v4357_v4 = vpop.f32.mrf.mxu1 }
 0x729   : > { %3271 = vmatpush3.bf16.msra.mxu0 %v3549_v63  ;;  %v3596_v63 = vld [vmem:[%s4572_s5 + $0x3c8] sm:$0xff]  }
 0x72a   : > { %3293 = vmatpush3.bf16.msra.mxu1 %v3550_v0  ;;  %v1343_v6 = vpop.f32.mrf.mxu0  ;;  %v1384_v7 = vpop.f32.mrf.mxu1  ;;  %3272 = vmatprep.subr.bf16.mxu0 %v3551_v1  ;;  %v3597_v0 = vld [vmem:[%s4572_s5 + $0x308] sm:$0xff]  }
 0x72b   : > { %3294 = vmatprep.subr.bf16.mxu1 %v3552_v2  ;;  %v1402_v31 = vmax.f32 %v1343_v6, 0.0  ;;  %v1404_v34 = vmax.f32 %v1384_v7, 0.0  ;;  %v3598_v1 = vld [vmem:[%s4572_s5 + $0x388] sm:$0xff]   ;;  %v3599_v2 = vld [vmem:[%s4572_s5 + $0x340] sm:$0xff]   ;;  %v1401_v7 = vmax.f32 %v4355_v3, 0.0 }
 0x72c   : > { %v1345_v10 = vpop.f32.mrf.mxu0  ;;  %v1386_v11 = vpop.f32.mrf.mxu1  ;;  %v3601_v6 = vld [vmem:[%s4572_s5 + $0x300] sm:$0xff]  }
 0x72d   : > { %3273 = vmatpush3.bf16.msra.mxu0 %v3553_v5  ;;  %v1418_v39 = vpack.c.bf16 %v1402_v31, %v1402_v31  ;;  %v1420_v41 = vpack.c.bf16 %v1404_v34, %v1404_v34  ;;  %v3600_v5 = vld [vmem:[%s4572_s5 + $0x3c0] sm:$0xff]  }
 0x72e   : > { %3295 = vmatpush3.bf16.msra.mxu1 %v3554_v37  ;;  %v1346_v13 = vpop.f32.mrf.mxu0  ;;  %v1387_v14 = vpop.f32.mrf.mxu1  ;;  %3274 = vmatprep.subr.bf16.mxu0 %v3555_v8  ;;  %v3602_v37 = vld [vmem:[%s4572_s5 + $0x380] sm:$0xff]   ;;  %v1403_v8 = vmax.f32 %v4357_v4, 0.0 }
 0x72f   : > { %3296 = vmatprep.subr.bf16.mxu1 %v3556_v9  ;;  %v1417_v9 = vpack.c.bf16 %v1401_v7, %v1401_v7 }
 0x730   : > { %v1419_v10 = vpack.c.bf16 %v1403_v8, %v1403_v8 }
 0x731   : > { %3275 = vmatpush3.bf16.msra.mxu0 %v3557_v12 }
 0x732   : > { %3297 = vmatpush3.bf16.msra.mxu1 %v3558_v47  ;;  %3276 = vmatprep.subr.bf16.mxu0 %v3559_v15 }
 0x733   : > { %3298 = vmatprep.subr.bf16.mxu1 %v3560_v16 }
 0x735   : > { %3277 = vmatpush3.bf16.msra.mxu0 %v3561_v17 }
 0x736   : > { %3299 = vmatpush3.bf16.msra.mxu1 %v3562_v18  ;;  %3278 = vmatprep.subr.bf16.mxu0 %v3563_v19 }
 0x737   : > { %3300 = vmatprep.subr.bf16.mxu1 %v3564_v20 }
 0x739   : > { %3279 = vmatpush3.bf16.msra.mxu0 %v3565_v21 }
 0x73a   : > { %3301 = vmatpush3.bf16.msra.mxu1 %v3566_v22  ;;  %3280 = vmatprep.subr.bf16.mxu0 %v3567_v23 }
 0x73b   : > { %3302 = vmatprep.subr.bf16.mxu1 %v3568_v24 }
 0x73d   : > { %3281 = vmatpush3.bf16.msra.mxu0 %v3569_v25 }
 0x73e   : > { %3303 = vmatpush3.bf16.msra.mxu1 %v3570_v27  ;;  %3310 = vmatprep.subr.bf16.mxu0 %v3571_v28 }
 0x73f   : > { %3332 = vmatprep.subr.bf16.mxu1 %v3572_v30 }
 0x740   : > { %2638 = vmatmul.mubr.bf16.vlgmr.msra.gmra.mxu0 %v1413_v35 }
 0x741   : > { %2678 = vmatmul.mubr.bf16.vlgmr.msra.gmra.mxu1 %v1415_v33  ;;  %3311 = vmatpush3.bf16.msra.mxu0 %v3573_v32 }
 0x742   : > { %2717 = vmatprep.mubr.bf16.mxu0 %v1418_v39  ;;  %3333 = vmatpush3.bf16.msra.mxu1 %v3574_v36 }
 0x743   : > { %2757 = vmatprep.mubr.bf16.mxu1 %v1420_v41  ;;  %3312 = vmatprep.subr.bf16.mxu0 %v3575_v38 }
 0x744   : > { %3334 = vmatprep.subr.bf16.mxu1 %v3576_v40 }
 0x745   : > { %3313 = vmatpush3.bf16.msra.mxu0 %v3577_v42 }
 0x746   : > { %3335 = vmatpush3.bf16.msra.mxu1 %v3578_v43  ;;  %3314 = vmatprep.subr.bf16.mxu0 %v3579_v44 }
 0x747   : > { %3336 = vmatprep.subr.bf16.mxu1 %v3580_v45 }
 0x749   : > { %3315 = vmatpush3.bf16.msra.mxu0 %v3581_v48 }
 0x74a   : > { %3337 = vmatpush3.bf16.msra.mxu1 %v3582_v49  ;;  %3316 = vmatprep.subr.bf16.mxu0 %v3583_v50 }
 0x74b   : > { %3338 = vmatprep.subr.bf16.mxu1 %v3584_v51 }
 0x74d   : > { %3317 = vmatpush3.bf16.msra.mxu0 %v3585_v52 }
 0x74e   : > { %3339 = vmatpush3.bf16.msra.mxu1 %v3586_v53  ;;  %3318 = vmatprep.subr.bf16.mxu0 %v3587_v54 }
 0x74f   : > { %3340 = vmatprep.subr.bf16.mxu1 %v3588_v55 }
 0x751   : > { %3319 = vmatpush3.bf16.msra.mxu0 %v3589_v56 }
 0x752   : > { %3341 = vmatpush3.bf16.msra.mxu1 %v3590_v57  ;;  %3320 = vmatprep.subr.bf16.mxu0 %v3591_v58 }
 0x753   : > { %3342 = vmatprep.subr.bf16.mxu1 %v3592_v59 }
 0x755   : > { %3321 = vmatpush3.bf16.msra.mxu0 %v3593_v60 }
 0x756   : > { %3343 = vmatpush3.bf16.msra.mxu1 %v3594_v61  ;;  %3322 = vmatprep.subr.bf16.mxu0 %v3595_v62 }
 0x757   : > { %3344 = vmatprep.subr.bf16.mxu1 %v3596_v63 }
 0x759   : > { %3323 = vmatpush3.bf16.msra.mxu0 %v3597_v0 }
 0x75a   : > { %3345 = vmatpush3.bf16.msra.mxu1 %v3598_v1  ;;  %3324 = vmatprep.subr.bf16.mxu0 %v3599_v2 }
 0x75b   : > { %3346 = vmatprep.subr.bf16.mxu1 %v3600_v5 }
 0x75d   : > { %3325 = vmatpush3.bf16.msra.mxu0 %v3601_v6 }
 0x75e   : > { %3347 = vmatpush3.bf16.msra.mxu1 %v3602_v37 }
 0x760   : > { %2718 = vmatmul.mubr.bf16.vlgmr.msra.gmra.mxu0 %v1417_v9 }
 0x761   : > { %2758 = vmatmul.mubr.bf16.vlgmr.msra.gmra.mxu1 %v1419_v10 }
 0x7c0   : > { %v3194_v11 = vpop.f32.mrf.mxu0  ;;  %v3216_v12 = vpop.f32.mrf.mxu1 }
 0x7c2   : > { %v3195_v13 = vpop.f32.mrf.mxu0  ;;  %v3217_v14 = vpop.f32.mrf.mxu1 }
 0x7c3   : > { %v3196_v3 = vadd.f32 %v3195_v13, %v3194_v11  ;;  %v3218_v47 = vadd.f32 %v3217_v14, %v3216_v12 }
 0x7c4   : > { %v3197_v15 = vpop.f32.mrf.mxu0  ;;  %v3219_v16 = vpop.f32.mrf.mxu1 }
 0x7c5   : > { %v2480_v17 = vadd.f32 %v3196_v3, %v3963_v46 }
 0x7c6   : > { %v3198_v18 = vpop.f32.mrf.mxu0  ;;  %v3220_v19 = vpop.f32.mrf.mxu1 }
 0x7c7   : > { %v2520_v4 = vadd.f32 %v3218_v47, %v2480_v17 }
 0x7e0   : > { %v3238_v20 = vpop.f32.mrf.mxu0  ;;  %v3260_v21 = vpop.f32.mrf.mxu1 }
 0x7e2   : > { %v3239_v22 = vpop.f32.mrf.mxu0  ;;  %v3261_v23 = vpop.f32.mrf.mxu1 }
 0x7e3   : > { %v3240_v46 = vadd.f32 %v3239_v22, %v3238_v20  ;;  %v3262_v38 = vadd.f32 %v3261_v23, %v3260_v21 }
 0x7e4   : > { %v3241_v24 = vpop.f32.mrf.mxu0  ;;  %v3263_v25 = vpop.f32.mrf.mxu1 }
 0x7e5   : > { %v2560_v33 = vadd.f32 %v3240_v46, %v2520_v4 }
 0x7e6   : > { %v3242_v26 = vpop.f32.mrf.mxu0  ;;  %v3264_v27 = vpop.f32.mrf.mxu1 }
 0x7e7   : > { %v2600_v40 = vadd.f32 %v3262_v38, %v2560_v33 }
 0x800   : > { %v3282_v28 = vpop.f32.mrf.mxu0 }
 0x801   : > { %v3304_v29 = vpop.f32.mrf.mxu1 }
 0x802   : > { %v3283_v30 = vpop.f32.mrf.mxu0 }
 0x803   : > { %v3305_v31 = vpop.f32.mrf.mxu1  ;;  %v3284_v39 = vadd.f32 %v3283_v30, %v3282_v28 }
 0x804   : > { %v3285_v34 = vpop.f32.mrf.mxu0  ;;  %v3306_v43 = vadd.f32 %v3305_v31, %v3304_v29 }
 0x805   : > { %v3307_v32 = vpop.f32.mrf.mxu1  ;;  %v2640_v41 = vadd.f32 %v3284_v39, %v2600_v40 }
 0x806   : > { %v3286_v35 = vpop.f32.mrf.mxu0 }
 0x807   : > { %v3308_v36 = vpop.f32.mrf.mxu1  ;;  %v2680_v48 = vadd.f32 %v3306_v43, %v2640_v41 }
 0x820   : > { %v3326_v42 = vpop.f32.mrf.mxu0 }
 0x821   : > { %v3348_v44 = vpop.f32.mrf.mxu1 }
 0x822   : > { %v3327_v45 = vpop.f32.mrf.mxu0 }
 0x823   : > { %v3328_v49 = vadd.f32 %v3327_v45, %v3326_v42  ;;  %v3349_v50 = vpop.f32.mrf.mxu1 }
 0x824   : > { %v3329_v51 = vpop.f32.mrf.mxu0  ;;  %v3350_v53 = vadd.f32 %v3349_v50, %v3348_v44 }
 0x825   : > { %v2720_v52 = vadd.f32 %v3328_v49, %v2680_v48  ;;  %v3351_v54 = vpop.f32.mrf.mxu1 }
 0x826   : > { %v3330_v55 = vpop.f32.mrf.mxu0 }
 0x827   : > { %v3352_v56 = vpop.f32.mrf.mxu1  ;;  %v2760_v57 = vadd.f32 %v3350_v53, %v2720_v52 }
 0x829   : > { %v2765_v58 = vsel %vm410_vm1, %v2760_v57, 0.0 }
 0x82a   : > { %2766 = vadd.xlane.f32.xlu1 %v2765_v58 }
 0x8b3   : > { %v2767_v59 = vpop.xlane.xlu1 %2766 }
 0x8b4   : > { %v2768_v60 = vmul.f32 0.015625, %v2767_v59 }
 0x8b6   : > { %v2769_v61 = vsub.f32 %v2760_v57, %v2768_v60 }
 0x8b8   : > { %v2770_v62 = vmul.f32 %v2769_v61, %v2769_v61 }
 0x8ba   : > { %v2771_v63 = vsel %vm410_vm1, %v2770_v62, 0.0 }
 0x8bb   : > { %2772 = vadd.xlane.f32.xlu1 %v2771_v63 }
 0x944   : > { %v2773_v0 = vpop.xlane.xlu1 %2772 }
 0x945   : > { %v2774_v1 = vmul.f32 0.015625, %v2773_v0 }
 0x947   : > { %v2775_v2 = vadd.f32 1e-05, %v2774_v1 }
 0x949   : > { %3605 = vrsqrt.f32 %v2775_v2 }
 0x956   : > { %v3606_v5 = vpop.eup %3605 }
 0x957   : > { %v2777_v6 = vmul.f32 %v3606_v5, %v2769_v61 }
 0x959   : > { %2778 = vst.msk [vmem:[%s3849_s10] sm:$0xff] %vm410_vm1, %v2777_v6 }
 0x95a PF: > { %s3163_s9 = sshll.u32 %s3687_s28, 1  ;;  %s2802_s17 = sshll.u32 %s331_s13, 4  ;;  %s2803_s17 = int_to_ptr.vmem [resolvable:$true] %s2802_s17 }
 0x95b   : > { %s2798_s16 = sadd.s32 %s3683_s27, %s3163_s9  ;;  %s4598_s29 = sld [smem:[#allocation15_spill]] }
 0x95c   : > { %s3164_s18 = sshll.u32 %s2798_s16, 7  ;;  %s4600_s30 = sand.u32 1, %s3675_s25  }
 0x95d   : > { %s2784_s8 = scalar_lea.sflag [#allocation4], %s4600_s30  ;;  %s3607_s12 = scalar_lea.vmem %s2803_s17, 128 }
 0x95e   : > { %p3608_p2 = scmp.ne.s32.totalorder %s2803_s17, %s3607_s12  ;;  %s3707_s10 = smov [#allocation3]  }
 0x95f   : > { %s3611_s15 = sshll.u32 %s3707_s10, 4  ;;  %s3612_s15 = int_to_ptr.vmem [resolvable:$false] %s3611_s15 }
 0x960   : > { %p3609_p4 = pnand %p3608_p2, %p3799_p3  ;;  %s3613_s28 = scalar_lea.vmem %s3612_s15, 256 }
 0x961   : > { %s4599_s11 = smov %s4598_s29  ;;  %s2800_s24 = scalar_lea.hbm %s4598_s29, %s3164_s18 }
 0x962   : > { %p3610_p5 = pneg %p3609_p4  ;;  %p3614_p6 = scmp.lt.s32.totalorder %s2803_s17, %s3612_s15 }
 0x963   : > { %p3615_p7 = scmp.lt.s32.totalorder %s3613_s28, %s3607_s12 }
 0x965   : > { %p3616_p9 = por %p3615_p7, %p3614_p6 }
 0x967   : > { %p3617_p10 = pnand %p3616_p9, %p3610_p5 }
 0x969   : > { %3620 = shalt.err (!%p3617_p10)
}
 0x96a   : > { %s3621_s27 = scalar_lea.hbm %s2800_s24, 128  ;;  %s3625_s19 = scalar_lea.hbm %s4599_s11, 512 }
 0x96b   : > { %p3622_p11 = scmp.ne.s32.totalorder %s2800_s24, %s3621_s27  ;;  %p3626_p0 = scmp.lt.s32.totalorder %s2800_s24, %s4599_s11 }
 0x96c   : > { %p3627_p1 = scmp.lt.s32.totalorder %s3625_s19, %s3621_s27 }
 0x96d   : > { %p3623_p12 = pnand %p3622_p11, %p3799_p3 }
 0x96e   : > { %p3628_p2 = por %p3627_p1, %p3626_p0 }
 0x96f   : > { %p3624_p13 = pneg %p3623_p12 }
 0x971   : > { %p3629_p4 = pnand %p3628_p2, %p3624_p13 }
 0x973   : > { %3632 = shalt.err (!%p3629_p4)
}
 0x974   : > { %3378 = dma.vmem_to_hbm [thread:$0]  (%p3799_p3), %s2803_s17, 128, %s2800_s24, %s2784_s8  }
 0x975 PF: > { %s4601_s23 = sld [smem:[#allocation10_spill]] }
 0x976   : > { %s4602_s9 = sld [smem:[#allocation6_spill]] }
 0x97b   : > { %p3384_p5 = scmp.ge.s32.totalorder %s4601_s23, 2 }
 0x97c   : > { %s2821_s18 = sand.u32 1, %s4602_s9  }
 0x97d   : > { %p3381_p6 = pnand %p3384_p5, %p3808_p8  ;;  %s2822_s7 = scalar_lea.sflag [#allocation4], %s2821_s18 }
 0x97f   : > { %p3382_p7 = pneg %p3381_p6 }
 0x981   : > { %3666 = dma.done.wait (%p3382_p7), %s2822_s7, 128  }
 0x982   : > { %3668 = vsyncadd (%p3382_p7), %s2822_s7, 4294967168  ;;  %s21_s8 = sadd.s32 1, %s4601_s23   ;;  %s4604_s26 = sld [smem:[#allocation7_spill]] }
 0x983   : > { %p18_p9 = scmp.ge.s32.totalorder %s21_s8, 6   ;;  %s4605_s29 = sld [smem:[#allocation14_spill]] }
 0x984   : > { %s4606_s27 = sld [smem:[#allocation8_spill]]  ;;  %s4610_s24 = smov %s3675_s25 }
 0x985   : > { %s4607_s28 = sld [smem:[#allocation9_spill]] }
 0x986   : > { %s4608_s14 = sld [smem:[#allocation11_spill]] }
 0x987   : > { %s4609_s30 = sld [smem:[#allocation12_spill]] }
 0x988   : > { %s4611_s25 = smov %s4604_s26  ;;  %20 = sbr.rel (!%p18_p9) target bundleno = 7 (0x7), region = 108 }
 0x989   : > { %s4612_s26 = smov %s4605_s29 }
 0x98c   : > { %s4613_s29 = smov %s4608_s14 }
 0x98d   :  { %2827 = vsyncpa [#allocation4], 1 }
 0x98e   :  { %2829 = vsyncpa [#allocation4 + $0x1], 1 }

</bundles_post_ra>
